<compile_context>
chip_gen: v7x
topology: tpu7x:2x2x1
jax: 0.10.0
libtpu: 0.0.40
codegen_flags: <defaults>
</compile_context>

<pallas_src>
import functools

import jax
import jax.numpy as jnp
from jax.experimental import pallas as pl
from jax.experimental.pallas import tpu as pltpu

# ---------------- small synthetic hyper-parameters (lane-dense) ----------------
B = 2            # batch
C = 3            # image channels
IMG = 16         # image H = W
PATCH = 8        # conv kernel = stride (ViT patch size)
NP = (IMG // PATCH) ** 2     # patches per image
S_V = NP + 1                 # vision sequence length (CLS + patches)
D_V = 128        # CLIP vision hidden dim
H_V = 4          # CLIP vision heads
MLP_V = 256
N_VIS_LAYERS = 1
CLIP_OUT = 128   # clip.visual_projection output dim
D_G = 128        # PhoGPT hidden dim (wte embedding_dim)
H_G = 4
MLP_G = 256
N_DEC_LAYERS = 1
VOCAB = 128
SEQ = 8          # caption length
LN_EPS = 1e-5
NEG_INF = -1e9

VMEM = pl.BlockSpec(memory_space=pltpu.MemorySpace.VMEM)


# ---------------- in-kernel helpers (operate on values, traced inline) ---------
def _mm(a, b):
    """a @ b on the MXU: bf16 operands, f32 accumulation."""
    return jax.lax.dot_general(
        a.astype(jnp.bfloat16), b.astype(jnp.bfloat16),
        dimension_numbers=(((1,), (0,)), ((), ())),
        preferred_element_type=jnp.float32)


def _mm_t(a, b):
    """a @ b.T without materializing a transposed copy of b."""
    return jax.lax.dot_general(
        a.astype(jnp.bfloat16), b.astype(jnp.bfloat16),
        dimension_numbers=(((1,), (1,)), ((), ())),
        preferred_element_type=jnp.float32)


def _layernorm(x, g, b):
    mu = jnp.mean(x, axis=-1, keepdims=True)
    var = jnp.mean(jnp.square(x - mu), axis=-1, keepdims=True)
    return (x - mu) * jax.lax.rsqrt(var + LN_EPS) * g + b


def _act(x, kind):
    if kind == "quick_gelu":            # CLIP MLP activation
        return x * jax.nn.sigmoid(1.702 * x)
    # TODO(synk): HF MPT/PhoGPT uses exact (erf) GELU; tanh approximation kept
    # because erf lowering inside Mosaic is not guaranteed.
    return jax.nn.gelu(x, approximate=True)


def _same_batch_mask(m, s):
    """Block-diagonal same-batch mask for a flattened (batch*seq) sequence."""
    row = jax.lax.broadcasted_iota(jnp.int32, (m, m), 0)
    col = jax.lax.broadcasted_iota(jnp.int32, (m, m), 1)
    same = None
    for b in range(m // s):
        rb = (row >= b * s) & (row < (b + 1) * s)
        cb = (col >= b * s) & (col < (b + 1) * s)
        blk = rb & cb
        same = blk if same is None else (same | blk)
    return same, row, col


def _mha(x, ap, n_heads, biases):
    """Fused-QKV multi-head attention on a flattened (M, D) sequence."""
    m, d = x.shape
    dh = d // n_heads
    scale = dh ** -0.5
    qkv = _mm(x, ap["wqkv"][...]) + ap["bqkv"][...]          # (M, 3D), one matmul
    q, k, v = qkv[:, :d], qkv[:, d:2 * d], qkv[:, 2 * d:]
    outs = []
    for h in range(n_heads):                                 # static unroll
        sl = slice(h * dh, (h + 1) * dh)
        s = _mm_t(q[:, sl], k[:, sl]) * scale + biases[h]    # (M, M) f32 scores
        s = s - jnp.max(s, axis=-1, keepdims=True)
        p = jnp.exp(s)
        p = p * pl.reciprocal(jnp.sum(p, axis=-1, keepdims=True), approx=True)
        outs.append(_mm(p, v[:, sl]))                        # (M, dh)
    o = jnp.concatenate(outs, axis=-1)                       # (M, D)
    return _mm(o, ap["wo"][...]) + ap["bo"][...]


def _block(h, lp, n_heads, biases, act):
    """Pre-norm transformer block: h += attn(ln1(h)); h += mlp(ln2(h))."""
    x = _layernorm(h, lp["ln1_g"][...], lp["ln1_b"][...])
    h = h + _mha(x, lp["attn"], n_heads, biases)
    x = _layernorm(h, lp["ln2_g"][...], lp["ln2_b"][...])
    x = _act(_mm(x, lp["w1"][...]) + lp["b1"][...], act)
    x = _mm(x, lp["w2"][...]) + lp["b2"][...]
    return h + x


# ---------------- the single fused forward kernel -------------------------------
def _fused_forward_kernel(treedef, *refs):
    out_ref = refs[-1]
    tree = jax.tree_util.tree_unflatten(treedef, refs[:-1])
    P = tree["params"]
    patches = tree["patches"][...]        # (B*NP, C*PATCH*PATCH) f32
    cap = tree["cap_ids"][...]            # (B*SEQ, 1) int32
    lab = tree["labels"][...]             # (B*SEQ, 1) int32, -1 => ignored

    # ---------------- CLIP vision encoder ------------------------------------
    pe = _mm(patches, P["patch_w"][...])                    # patch conv as matmul (no bias)
    cls = P["class_emb"][...]                               # (1, D_V)
    rows = []
    for b in range(B):                                      # [CLS, patches] per image
        rows.append(cls)
        rows.append(pe[b * NP:(b + 1) * NP, :])
    h = jnp.concatenate(rows, axis=0)                       # (B*S_V, D_V)
    h = h + jnp.concatenate([P["pos_emb"][...]] * B, axis=0)
    h = _layernorm(h, P["pre_ln_g"][...], P["pre_ln_b"][...])

    same_v, _, _ = _same_batch_mask(B * S_V, S_V)           # no cross-batch attention
    vis_bias = jnp.where(same_v, 0.0, NEG_INF).astype(jnp.float32)
    vis_biases = [vis_bias] * H_V
    for lp in P["vis_layers"]:
        h = _block(h, lp, H_V, vis_biases, act="quick_gelu")

    pooled = jnp.concatenate(
        [h[b * S_V:b * S_V + 1, :] for b in range(B)], axis=0)        # CLS tokens
    pooled = _layernorm(pooled, P["post_ln_g"][...], P["post_ln_b"][...])
    feats = _mm(pooled, P["visual_proj_w"][...])            # clip.visual_projection (no bias)
    img_emb = _mm(feats, P["proj_w"][...]) + P["proj_b"][...]   # self.projection

    # ---------------- PhoGPT (MPT-style) decoder ------------------------------
    vid = jax.lax.broadcasted_iota(jnp.int32, (B * SEQ, VOCAB), 1)
    tok = _mm((vid == cap).astype(jnp.float32), P["wte"][...])   # wte gather as one-hot matmul
    img_rows = jnp.concatenate(
        [jnp.broadcast_to(img_emb[b:b + 1, :], (SEQ, D_G)) for b in range(B)], axis=0)
    h = tok + img_rows                                      # inputs_embeds

    same_d, row, col = _same_batch_mask(B * SEQ, SEQ)
    causal = same_d & (col <= row)
    dist = (col - row).astype(jnp.float32)                  # == kpos - qpos within a batch
    dec_biases = [
        jnp.where(causal, (2.0 ** (-8.0 * (hh + 1) / H_G)) * dist, NEG_INF)
        for hh in range(H_G)
    ]                                                       # ALiBi + causal, built in-kernel
    for lp in P["dec_layers"]:
        h = _block(h, lp, H_G, dec_biases, act="gelu")

    h = _layernorm(h, P["ln_f_g"][...], P["ln_f_b"][...])
    logits = _mm_t(h, P["wte"][...])                        # tied LM head, no wte.T copy

    # ---------------- shifted cross-entropy (mean over valid positions) -------
    m = jnp.max(logits, axis=-1, keepdims=True)
    lse = jnp.log(jnp.sum(jnp.exp(logits - m), axis=-1, keepdims=True)) + m
    gold = jnp.sum(logits * (vid == lab).astype(jnp.float32), axis=-1, keepdims=True)
    valid = (lab >= 0).astype(jnp.float32)                  # last position per batch ignored
    loss = jnp.sum(valid * (lse - gold)) / jnp.sum(valid)
    out_ref[...] = loss.reshape(1, 1)


# ---------------- wrapper: one pallas_call for the whole forward ----------------
def forward(images, captions, params):
    b = images.shape[0]
    # Patch extraction for the kernel==stride Conv2d (pure layout work, done once in XLA).
    nh, nw = IMG // PATCH, IMG // PATCH
    x = images.reshape(b, C, nh, PATCH, nw, PATCH).transpose(0, 2, 4, 1, 3, 5)
    patches = x.reshape(b * nh * nw, C * PATCH * PATCH).astype(jnp.float32)

    cap_ids = captions.reshape(b * SEQ, 1).astype(jnp.int32)
    # HF causal-LM shift: labels[t] = captions[t+1], last position ignored (-1).
    labels = jnp.concatenate(
        [captions[:, 1:], jnp.full((b, 1), -1, jnp.int32)], axis=1
    ).reshape(b * SEQ, 1).astype(jnp.int32)

    inputs = {"patches": patches, "cap_ids": cap_ids, "labels": labels, "params": params}
    leaves, treedef = jax.tree_util.tree_flatten(inputs)

    loss = pl.pallas_call(
        functools.partial(_fused_forward_kernel, treedef),
        out_shape=jax.ShapeDtypeStruct((1, 1), jnp.float32),
        in_specs=[VMEM] * len(leaves),
        out_specs=VMEM,
    )(*leaves)
    return loss[0, 0]


# ---------------- deterministic synthetic parameters ---------------------------
def init_params(key):
    keys = iter(jax.random.split(key, 64))

    def w(shape):   # matmul weights stored in bf16 (halves HBM/VMEM traffic)
        return (0.02 * jax.random.normal(next(keys), shape, jnp.float32)).astype(jnp.bfloat16)

    def f32(shape):
        return 0.02 * jax.random.normal(next(keys), shape, jnp.float32)

    def layer(d, mlp):
        return {
            "ln1_g": jnp.ones((1, d), jnp.float32), "ln1_b": jnp.zeros((1, d), jnp.float32),
            "ln2_g": jnp.ones((1, d), jnp.float32), "ln2_b": jnp.zeros((1, d), jnp.float32),
            "attn": {
                "wqkv": w((d, 3 * d)), "bqkv": jnp.zeros((1, 3 * d), jnp.float32),
                "wo": w((d, d)), "bo": jnp.zeros((1, d), jnp.float32),
            },
            "w1": w((d, mlp)), "b1": jnp.zeros((1, mlp), jnp.float32),
            "w2": w((mlp, d)), "b2": jnp.zeros((1, d), jnp.float32),
        }

    return {
        "patch_w": w((C * PATCH * PATCH, D_V)),
        "class_emb": f32((1, D_V)),
        "pos_emb": f32((S_V, D_V)),
        "pre_ln_g": jnp.ones((1, D_V), jnp.float32), "pre_ln_b": jnp.zeros((1, D_V), jnp.float32),
        "post_ln_g": jnp.ones((1, D_V), jnp.float32), "post_ln_b": jnp.zeros((1, D_V), jnp.float32),
        "vis_layers": [layer(D_V, MLP_V) for _ in range(N_VIS_LAYERS)],
        "visual_proj_w": w((D_V, CLIP_OUT)),
        "proj_w": w((CLIP_OUT, D_G)), "proj_b": jnp.zeros((1, D_G), jnp.float32),
        "wte": w((VOCAB, D_G)),
        "dec_layers": [layer(D_G, MLP_G) for _ in range(N_DEC_LAYERS)],
        "ln_f_g": jnp.ones((1, D_G), jnp.float32), "ln_f_b": jnp.zeros((1, D_G), jnp.float32),
    }


# TODO(synk): tokenizer + autoregressive `generate()` path (host-side string ops,
# dynamic-length decode loop) is not implemented; only the training forward (loss) is.

if __name__ == "__main__":
    key = jax.random.PRNGKey(0)
    k_img, k_cap, k_par = jax.random.split(key, 3)
    images = jax.random.normal(k_img, (B, C, IMG, IMG), jnp.float32)      # NCHW like PyTorch
    captions = jax.random.randint(k_cap, (B, SEQ), 0, VOCAB, jnp.int32)
    params = init_params(k_par)

    loss = jax.jit(forward)(images, captions, params)
    loss = jax.block_until_ready(loss)
    assert loss.shape == () and bool(jnp.isfinite(loss))
    print("KERNEL_OK")
</pallas_src>

<mosaic_0001>
module attributes {stable_mosaic.version = 11 : i64} {
  func.func @_fused_forward_kernel(%arg0: memref<16x1xi32, #tpu.memory_space<vmem>>, %arg1: memref<16x1xi32, #tpu.memory_space<vmem>>, %arg2: memref<1x128xf32, #tpu.memory_space<vmem>>, %arg3: memref<1x128xf32, #tpu.memory_space<vmem>>, %arg4: memref<1x384xf32, #tpu.memory_space<vmem>>, %arg5: memref<128x128xbf16, #tpu.memory_space<vmem>>, %arg6: memref<128x384xbf16, #tpu.memory_space<vmem>>, %arg7: memref<1x256xf32, #tpu.memory_space<vmem>>, %arg8: memref<1x128xf32, #tpu.memory_space<vmem>>, %arg9: memref<1x128xf32, #tpu.memory_space<vmem>>, %arg10: memref<1x128xf32, #tpu.memory_space<vmem>>, %arg11: memref<1x128xf32, #tpu.memory_space<vmem>>, %arg12: memref<1x128xf32, #tpu.memory_space<vmem>>, %arg13: memref<128x256xbf16, #tpu.memory_space<vmem>>, %arg14: memref<256x128xbf16, #tpu.memory_space<vmem>>, %arg15: memref<1x128xf32, #tpu.memory_space<vmem>>, %arg16: memref<1x128xf32, #tpu.memory_space<vmem>>, %arg17: memref<192x128xbf16, #tpu.memory_space<vmem>>, %arg18: memref<5x128xf32, #tpu.memory_space<vmem>>, %arg19: memref<1x128xf32, #tpu.memory_space<vmem>>, %arg20: memref<1x128xf32, #tpu.memory_space<vmem>>, %arg21: memref<1x128xf32, #tpu.memory_space<vmem>>, %arg22: memref<1x128xf32, #tpu.memory_space<vmem>>, %arg23: memref<1x128xf32, #tpu.memory_space<vmem>>, %arg24: memref<128x128xbf16, #tpu.memory_space<vmem>>, %arg25: memref<1x128xf32, #tpu.memory_space<vmem>>, %arg26: memref<1x384xf32, #tpu.memory_space<vmem>>, %arg27: memref<128x128xbf16, #tpu.memory_space<vmem>>, %arg28: memref<128x384xbf16, #tpu.memory_space<vmem>>, %arg29: memref<1x256xf32, #tpu.memory_space<vmem>>, %arg30: memref<1x128xf32, #tpu.memory_space<vmem>>, %arg31: memref<1x128xf32, #tpu.memory_space<vmem>>, %arg32: memref<1x128xf32, #tpu.memory_space<vmem>>, %arg33: memref<1x128xf32, #tpu.memory_space<vmem>>, %arg34: memref<1x128xf32, #tpu.memory_space<vmem>>, %arg35: memref<128x256xbf16, #tpu.memory_space<vmem>>, %arg36: memref<256x128xbf16, #tpu.memory_space<vmem>>, %arg37: memref<128x128xbf16, #tpu.memory_space<vmem>>, %arg38: memref<128x128xbf16, #tpu.memory_space<vmem>>, %arg39: memref<8x192xf32, #tpu.memory_space<vmem>>, %arg40: memref<1x1xf32, #tpu.memory_space<vmem>>) attributes {dimension_semantics = [], scalar_prefetch = 0 : i64, scratch_operands = 0 : i64, tpu.core_type = #tpu.core_type<tc>} {
    %c0 = arith.constant 0 : index
    %c0_0 = arith.constant 0 : index
    %0 = vector.load %arg39[%c0, %c0_0] : memref<8x192xf32, #tpu.memory_space<vmem>>, vector<8x192xf32>
    %c0_1 = arith.constant 0 : index
    %c0_2 = arith.constant 0 : index
    %1 = vector.load %arg0[%c0_1, %c0_2] : memref<16x1xi32, #tpu.memory_space<vmem>>, vector<16x1xi32>
    %c0_3 = arith.constant 0 : index
    %c0_4 = arith.constant 0 : index
    %2 = vector.load %arg1[%c0_3, %c0_4] : memref<16x1xi32, #tpu.memory_space<vmem>>, vector<16x1xi32>
    %c0_5 = arith.constant 0 : index
    %c0_6 = arith.constant 0 : index
    %3 = vector.load %arg17[%c0_5, %c0_6] : memref<192x128xbf16, #tpu.memory_space<vmem>>, vector<192x128xbf16>
    %4 = arith.truncf %0 : vector<8x192xf32> to vector<8x192xbf16>
    %cst = arith.constant dense<0.000000e+00> : vector<8x128xf32>
    %5 = tpu.matmul %4, %3, %cst {dimension_numbers = #tpu.dot_dimension_numbers<[1], [0], [0], [1], [0, 0, 1, 1], [], []>} : vector<8x192xbf16>, vector<192x128xbf16>, vector<8x128xf32> -> vector<8x128xf32>
    %c0_7 = arith.constant 0 : index
    %c0_8 = arith.constant 0 : index
    %6 = vector.load %arg2[%c0_7, %c0_8] : memref<1x128xf32, #tpu.memory_space<vmem>>, vector<1x128xf32>
    %7 = vector.extract_strided_slice %5 {offsets = [0, 0], sizes = [4, 128], strides = [1, 1]} : vector<8x128xf32> to vector<4x128xf32>
    %8 = vector.extract_strided_slice %5 {offsets = [4, 0], sizes = [4, 128], strides = [1, 1]} : vector<8x128xf32> to vector<4x128xf32>
    %9 = tpu.concatenate %6, %7, %6, %8 in 0 : vector<1x128xf32>, vector<4x128xf32>, vector<1x128xf32>, vector<4x128xf32> -> vector<10x128xf32>
    %c0_9 = arith.constant 0 : index
    %c0_10 = arith.constant 0 : index
    %10 = vector.load %arg18[%c0_9, %c0_10] : memref<5x128xf32, #tpu.memory_space<vmem>>, vector<5x128xf32>
    %11 = tpu.concatenate %10, %10 in 0 : vector<5x128xf32>, vector<5x128xf32> -> vector<10x128xf32>
    %12 = arith.addf %9, %11 : vector<10x128xf32>
    %c0_11 = arith.constant 0 : index
    %c0_12 = arith.constant 0 : index
    %13 = vector.load %arg22[%c0_11, %c0_12] : memref<1x128xf32, #tpu.memory_space<vmem>>, vector<1x128xf32>
    %c0_13 = arith.constant 0 : index
    %c0_14 = arith.constant 0 : index
    %14 = vector.load %arg21[%c0_13, %c0_14] : memref<1x128xf32, #tpu.memory_space<vmem>>, vector<1x128xf32>
    %cst_15 = arith.constant dense<0.000000e+00> : vector<10xf32>
    %15 = vector.multi_reduction <add>, %12, %cst_15 [1] : vector<10x128xf32> to vector<10xf32>
    %16 = vector.shape_cast %15 : vector<10xf32> to vector<10x1xf32>
    %cst_16 = arith.constant 1.280000e+02 : f32
    %17 = vector.broadcast %cst_16 : f32 to vector<10x1xf32>
    %18 = arith.divf %16, %17 : vector<10x1xf32>
    %19 = vector.broadcast %18 : vector<10x1xf32> to vector<10x128xf32>
    %20 = arith.subf %12, %19 : vector<10x128xf32>
    %21 = arith.mulf %20, %20 : vector<10x128xf32>
    %cst_17 = arith.constant dense<0.000000e+00> : vector<10xf32>
    %22 = vector.multi_reduction <add>, %21, %cst_17 [1] : vector<10x128xf32> to vector<10xf32>
    %23 = vector.shape_cast %22 : vector<10xf32> to vector<10x1xf32>
    %cst_18 = arith.constant 1.280000e+02 : f32
    %24 = vector.broadcast %cst_18 : f32 to vector<10x1xf32>
    %25 = arith.divf %23, %24 : vector<10x1xf32>
    %26 = vector.broadcast %18 : vector<10x1xf32> to vector<10x128xf32>
    %27 = arith.subf %12, %26 : vector<10x128xf32>
    %cst_19 = arith.constant 9.99999974E-6 : f32
    %28 = vector.broadcast %cst_19 : f32 to vector<10x1xf32>
    %29 = arith.addf %25, %28 : vector<10x1xf32>
    %30 = math.rsqrt %29 : vector<10x1xf32>
    %31 = vector.broadcast %30 : vector<10x1xf32> to vector<10x128xf32>
    %32 = arith.mulf %27, %31 : vector<10x128xf32>
    %33 = vector.broadcast %13 : vector<1x128xf32> to vector<10x128xf32>
    %34 = arith.mulf %32, %33 : vector<10x128xf32>
    %35 = vector.broadcast %14 : vector<1x128xf32> to vector<10x128xf32>
    %36 = arith.addf %34, %35 : vector<10x128xf32>
    %37 = tpu.iota {dimensions = array<i32: 0>} : vector<10x10xi32>
    %38 = tpu.iota {dimensions = array<i32: 1>} : vector<10x10xi32>
    %c0_i32 = arith.constant 0 : i32
    %39 = vector.broadcast %c0_i32 : i32 to vector<10x10xi32>
    %40 = arith.cmpi sge, %37, %39 : vector<10x10xi32>
    %c5_i32 = arith.constant 5 : i32
    %41 = vector.broadcast %c5_i32 : i32 to vector<10x10xi32>
    %42 = arith.cmpi slt, %37, %41 : vector<10x10xi32>
    %43 = arith.andi %40, %42 : vector<10x10xi1>
    %c0_i32_20 = arith.constant 0 : i32
    %44 = vector.broadcast %c0_i32_20 : i32 to vector<10x10xi32>
    %45 = arith.cmpi sge, %38, %44 : vector<10x10xi32>
    %c5_i32_21 = arith.constant 5 : i32
    %46 = vector.broadcast %c5_i32_21 : i32 to vector<10x10xi32>
    %47 = arith.cmpi slt, %38, %46 : vector<10x10xi32>
    %48 = arith.andi %45, %47 : vector<10x10xi1>
    %49 = arith.andi %43, %48 : vector<10x10xi1>
    %c5_i32_22 = arith.constant 5 : i32
    %50 = vector.broadcast %c5_i32_22 : i32 to vector<10x10xi32>
    %51 = arith.cmpi sge, %37, %50 : vector<10x10xi32>
    %c10_i32 = arith.constant 10 : i32
    %52 = vector.broadcast %c10_i32 : i32 to vector<10x10xi32>
    %53 = arith.cmpi slt, %37, %52 : vector<10x10xi32>
    %54 = arith.andi %51, %53 : vector<10x10xi1>
    %c5_i32_23 = arith.constant 5 : i32
    %55 = vector.broadcast %c5_i32_23 : i32 to vector<10x10xi32>
    %56 = arith.cmpi sge, %38, %55 : vector<10x10xi32>
    %c10_i32_24 = arith.constant 10 : i32
    %57 = vector.broadcast %c10_i32_24 : i32 to vector<10x10xi32>
    %58 = arith.cmpi slt, %38, %57 : vector<10x10xi32>
    %59 = arith.andi %56, %58 : vector<10x10xi1>
    %60 = arith.andi %54, %59 : vector<10x10xi1>
    %61 = arith.ori %49, %60 : vector<10x10xi1>
    %cst_25 = arith.constant 0.000000e+00 : f32
    %cst_26 = arith.constant -1.000000e+09 : f32
    %62 = vector.broadcast %cst_25 : f32 to vector<10x10xf32>
    %63 = vector.broadcast %cst_26 : f32 to vector<10x10xf32>
    %64 = arith.select %61, %62, %63 : vector<10x10xi1>, vector<10x10xf32>
    %c0_27 = arith.constant 0 : index
    %c0_28 = arith.constant 0 : index
    %65 = vector.load %arg32[%c0_27, %c0_28] : memref<1x128xf32, #tpu.memory_space<vmem>>, vector<1x128xf32>
    %c0_29 = arith.constant 0 : index
    %c0_30 = arith.constant 0 : index
    %66 = vector.load %arg31[%c0_29, %c0_30] : memref<1x128xf32, #tpu.memory_space<vmem>>, vector<1x128xf32>
    %cst_31 = arith.constant dense<0.000000e+00> : vector<10xf32>
    %67 = vector.multi_reduction <add>, %36, %cst_31 [1] : vector<10x128xf32> to vector<10xf32>
    %68 = vector.shape_cast %67 : vector<10xf32> to vector<10x1xf32>
    %cst_32 = arith.constant 1.280000e+02 : f32
    %69 = vector.broadcast %cst_32 : f32 to vector<10x1xf32>
    %70 = arith.divf %68, %69 : vector<10x1xf32>
    %71 = vector.broadcast %70 : vector<10x1xf32> to vector<10x128xf32>
    %72 = arith.subf %36, %71 : vector<10x128xf32>
    %73 = arith.mulf %72, %72 : vector<10x128xf32>
    %cst_33 = arith.constant dense<0.000000e+00> : vector<10xf32>
    %74 = vector.multi_reduction <add>, %73, %cst_33 [1] : vector<10x128xf32> to vector<10xf32>
    %75 = vector.shape_cast %74 : vector<10xf32> to vector<10x1xf32>
    %cst_34 = arith.constant 1.280000e+02 : f32
    %76 = vector.broadcast %cst_34 : f32 to vector<10x1xf32>
    %77 = arith.divf %75, %76 : vector<10x1xf32>
    %78 = vector.broadcast %70 : vector<10x1xf32> to vector<10x128xf32>
    %79 = arith.subf %36, %78 : vector<10x128xf32>
    %cst_35 = arith.constant 9.99999974E-6 : f32
    %80 = vector.broadcast %cst_35 : f32 to vector<10x1xf32>
    %81 = arith.addf %77, %80 : vector<10x1xf32>
    %82 = math.rsqrt %81 : vector<10x1xf32>
    %83 = vector.broadcast %82 : vector<10x1xf32> to vector<10x128xf32>
    %84 = arith.mulf %79, %83 : vector<10x128xf32>
    %85 = vector.broadcast %65 : vector<1x128xf32> to vector<10x128xf32>
    %86 = arith.mulf %84, %85 : vector<10x128xf32>
    %87 = vector.broadcast %66 : vector<1x128xf32> to vector<10x128xf32>
    %88 = arith.addf %86, %87 : vector<10x128xf32>
    %c0_36 = arith.constant 0 : index
    %c0_37 = arith.constant 0 : index
    %89 = vector.load %arg28[%c0_36, %c0_37] : memref<128x384xbf16, #tpu.memory_space<vmem>>, vector<128x384xbf16>
    %90 = arith.truncf %88 : vector<10x128xf32> to vector<10x128xbf16>
    %cst_38 = arith.constant dense<0.000000e+00> : vector<10x384xf32>
    %91 = tpu.matmul %90, %89, %cst_38 {dimension_numbers = #tpu.dot_dimension_numbers<[1], [0], [0], [1], [0, 0, 1, 1], [], []>} : vector<10x128xbf16>, vector<128x384xbf16>, vector<10x384xf32> -> vector<10x384xf32>
    %c0_39 = arith.constant 0 : index
    %c0_40 = arith.constant 0 : index
    %92 = vector.load %arg26[%c0_39, %c0_40] : memref<1x384xf32, #tpu.memory_space<vmem>>, vector<1x384xf32>
    %93 = vector.broadcast %92 : vector<1x384xf32> to vector<10x384xf32>
    %94 = arith.addf %91, %93 : vector<10x384xf32>
    %95 = vector.extract_strided_slice %94 {offsets = [0, 0], sizes = [10, 128], strides = [1, 1]} : vector<10x384xf32> to vector<10x128xf32>
    %96 = vector.extract_strided_slice %94 {offsets = [0, 128], sizes = [10, 128], strides = [1, 1]} : vector<10x384xf32> to vector<10x128xf32>
    %97 = vector.extract_strided_slice %94 {offsets = [0, 256], sizes = [10, 128], strides = [1, 1]} : vector<10x384xf32> to vector<10x128xf32>
    %98 = vector.extract_strided_slice %95 {offsets = [0, 0], sizes = [10, 32], strides = [1, 1]} : vector<10x128xf32> to vector<10x32xf32>
    %99 = vector.extract_strided_slice %96 {offsets = [0, 0], sizes = [10, 32], strides = [1, 1]} : vector<10x128xf32> to vector<10x32xf32>
    %100 = arith.truncf %98 : vector<10x32xf32> to vector<10x32xbf16>
    %101 = arith.truncf %99 : vector<10x32xf32> to vector<10x32xbf16>
    %cst_41 = arith.constant dense<0.000000e+00> : vector<10x10xf32>
    %102 = tpu.matmul %100, %101, %cst_41 {dimension_numbers = #tpu.dot_dimension_numbers<[1], [1], [0], [0], [0, 0, 1, 0], [], []>} : vector<10x32xbf16>, vector<10x32xbf16>, vector<10x10xf32> -> vector<10x10xf32>
    %cst_42 = arith.constant 0.176776692 : f32
    %103 = vector.broadcast %cst_42 : f32 to vector<10x10xf32>
    %104 = arith.mulf %102, %103 : vector<10x10xf32>
    %105 = arith.addf %104, %64 : vector<10x10xf32>
    %cst_43 = arith.constant dense<0xFF800000> : vector<10xf32>
    %106 = vector.multi_reduction <maximumf>, %105, %cst_43 [1] : vector<10x10xf32> to vector<10xf32>
    %107 = vector.shape_cast %106 : vector<10xf32> to vector<10x1xf32>
    %108 = vector.broadcast %107 : vector<10x1xf32> to vector<10x10xf32>
    %109 = arith.subf %105, %108 : vector<10x10xf32>
    %110 = math.exp %109 : vector<10x10xf32>
    %cst_44 = arith.constant dense<0.000000e+00> : vector<10xf32>
    %111 = vector.multi_reduction <add>, %110, %cst_44 [1] : vector<10x10xf32> to vector<10xf32>
    %112 = vector.shape_cast %111 : vector<10xf32> to vector<10x1xf32>
    %113 = tpu.reciprocal %112 {approx = true} : vector<10x1xf32> -> vector<10x1xf32>
    %114 = vector.broadcast %113 : vector<10x1xf32> to vector<10x10xf32>
    %115 = arith.mulf %110, %114 : vector<10x10xf32>
    %116 = vector.extract_strided_slice %97 {offsets = [0, 0], sizes = [10, 32], strides = [1, 1]} : vector<10x128xf32> to vector<10x32xf32>
    %117 = arith.truncf %115 : vector<10x10xf32> to vector<10x10xbf16>
    %118 = arith.truncf %116 : vector<10x32xf32> to vector<10x32xbf16>
    %cst_45 = arith.constant dense<0.000000e+00> : vector<10x32xf32>
    %119 = tpu.matmul %117, %118, %cst_45 {dimension_numbers = #tpu.dot_dimension_numbers<[1], [0], [0], [1], [0, 0, 1, 1], [], []>} : vector<10x10xbf16>, vector<10x32xbf16>, vector<10x32xf32> -> vector<10x32xf32>
    %120 = vector.extract_strided_slice %95 {offsets = [0, 32], sizes = [10, 32], strides = [1, 1]} : vector<10x128xf32> to vector<10x32xf32>
    %121 = vector.extract_strided_slice %96 {offsets = [0, 32], sizes = [10, 32], strides = [1, 1]} : vector<10x128xf32> to vector<10x32xf32>
    %122 = arith.truncf %120 : vector<10x32xf32> to vector<10x32xbf16>
    %123 = arith.truncf %121 : vector<10x32xf32> to vector<10x32xbf16>
    %cst_46 = arith.constant dense<0.000000e+00> : vector<10x10xf32>
    %124 = tpu.matmul %122, %123, %cst_46 {dimension_numbers = #tpu.dot_dimension_numbers<[1], [1], [0], [0], [0, 0, 1, 0], [], []>} : vector<10x32xbf16>, vector<10x32xbf16>, vector<10x10xf32> -> vector<10x10xf32>
    %cst_47 = arith.constant 0.176776692 : f32
    %125 = vector.broadcast %cst_47 : f32 to vector<10x10xf32>
    %126 = arith.mulf %124, %125 : vector<10x10xf32>
    %127 = arith.addf %126, %64 : vector<10x10xf32>
    %cst_48 = arith.constant dense<0xFF800000> : vector<10xf32>
    %128 = vector.multi_reduction <maximumf>, %127, %cst_48 [1] : vector<10x10xf32> to vector<10xf32>
    %129 = vector.shape_cast %128 : vector<10xf32> to vector<10x1xf32>
    %130 = vector.broadcast %129 : vector<10x1xf32> to vector<10x10xf32>
    %131 = arith.subf %127, %130 : vector<10x10xf32>
    %132 = math.exp %131 : vector<10x10xf32>
    %cst_49 = arith.constant dense<0.000000e+00> : vector<10xf32>
    %133 = vector.multi_reduction <add>, %132, %cst_49 [1] : vector<10x10xf32> to vector<10xf32>
    %134 = vector.shape_cast %133 : vector<10xf32> to vector<10x1xf32>
    %135 = tpu.reciprocal %134 {approx = true} : vector<10x1xf32> -> vector<10x1xf32>
    %136 = vector.broadcast %135 : vector<10x1xf32> to vector<10x10xf32>
    %137 = arith.mulf %132, %136 : vector<10x10xf32>
    %138 = vector.extract_strided_slice %97 {offsets = [0, 32], sizes = [10, 32], strides = [1, 1]} : vector<10x128xf32> to vector<10x32xf32>
    %139 = arith.truncf %137 : vector<10x10xf32> to vector<10x10xbf16>
    %140 = arith.truncf %138 : vector<10x32xf32> to vector<10x32xbf16>
    %cst_50 = arith.constant dense<0.000000e+00> : vector<10x32xf32>
    %141 = tpu.matmul %139, %140, %cst_50 {dimension_numbers = #tpu.dot_dimension_numbers<[1], [0], [0], [1], [0, 0, 1, 1], [], []>} : vector<10x10xbf16>, vector<10x32xbf16>, vector<10x32xf32> -> vector<10x32xf32>
    %142 = vector.extract_strided_slice %95 {offsets = [0, 64], sizes = [10, 32], strides = [1, 1]} : vector<10x128xf32> to vector<10x32xf32>
    %143 = vector.extract_strided_slice %96 {offsets = [0, 64], sizes = [10, 32], strides = [1, 1]} : vector<10x128xf32> to vector<10x32xf32>
    %144 = arith.truncf %142 : vector<10x32xf32> to vector<10x32xbf16>
    %145 = arith.truncf %143 : vector<10x32xf32> to vector<10x32xbf16>
    %cst_51 = arith.constant dense<0.000000e+00> : vector<10x10xf32>
    %146 = tpu.matmul %144, %145, %cst_51 {dimension_numbers = #tpu.dot_dimension_numbers<[1], [1], [0], [0], [0, 0, 1, 0], [], []>} : vector<10x32xbf16>, vector<10x32xbf16>, vector<10x10xf32> -> vector<10x10xf32>
    %cst_52 = arith.constant 0.176776692 : f32
    %147 = vector.broadcast %cst_52 : f32 to vector<10x10xf32>
    %148 = arith.mulf %146, %147 : vector<10x10xf32>
    %149 = arith.addf %148, %64 : vector<10x10xf32>
    %cst_53 = arith.constant dense<0xFF800000> : vector<10xf32>
    %150 = vector.multi_reduction <maximumf>, %149, %cst_53 [1] : vector<10x10xf32> to vector<10xf32>
    %151 = vector.shape_cast %150 : vector<10xf32> to vector<10x1xf32>
    %152 = vector.broadcast %151 : vector<10x1xf32> to vector<10x10xf32>
    %153 = arith.subf %149, %152 : vector<10x10xf32>
    %154 = math.exp %153 : vector<10x10xf32>
    %cst_54 = arith.constant dense<0.000000e+00> : vector<10xf32>
    %155 = vector.multi_reduction <add>, %154, %cst_54 [1] : vector<10x10xf32> to vector<10xf32>
    %156 = vector.shape_cast %155 : vector<10xf32> to vector<10x1xf32>
    %157 = tpu.reciprocal %156 {approx = true} : vector<10x1xf32> -> vector<10x1xf32>
    %158 = vector.broadcast %157 : vector<10x1xf32> to vector<10x10xf32>
    %159 = arith.mulf %154, %158 : vector<10x10xf32>
    %160 = vector.extract_strided_slice %97 {offsets = [0, 64], sizes = [10, 32], strides = [1, 1]} : vector<10x128xf32> to vector<10x32xf32>
    %161 = arith.truncf %159 : vector<10x10xf32> to vector<10x10xbf16>
    %162 = arith.truncf %160 : vector<10x32xf32> to vector<10x32xbf16>
    %cst_55 = arith.constant dense<0.000000e+00> : vector<10x32xf32>
    %163 = tpu.matmul %161, %162, %cst_55 {dimension_numbers = #tpu.dot_dimension_numbers<[1], [0], [0], [1], [0, 0, 1, 1], [], []>} : vector<10x10xbf16>, vector<10x32xbf16>, vector<10x32xf32> -> vector<10x32xf32>
    %164 = vector.extract_strided_slice %95 {offsets = [0, 96], sizes = [10, 32], strides = [1, 1]} : vector<10x128xf32> to vector<10x32xf32>
    %165 = vector.extract_strided_slice %96 {offsets = [0, 96], sizes = [10, 32], strides = [1, 1]} : vector<10x128xf32> to vector<10x32xf32>
    %166 = arith.truncf %164 : vector<10x32xf32> to vector<10x32xbf16>
    %167 = arith.truncf %165 : vector<10x32xf32> to vector<10x32xbf16>
    %cst_56 = arith.constant dense<0.000000e+00> : vector<10x10xf32>
    %168 = tpu.matmul %166, %167, %cst_56 {dimension_numbers = #tpu.dot_dimension_numbers<[1], [1], [0], [0], [0, 0, 1, 0], [], []>} : vector<10x32xbf16>, vector<10x32xbf16>, vector<10x10xf32> -> vector<10x10xf32>
    %cst_57 = arith.constant 0.176776692 : f32
    %169 = vector.broadcast %cst_57 : f32 to vector<10x10xf32>
    %170 = arith.mulf %168, %169 : vector<10x10xf32>
    %171 = arith.addf %170, %64 : vector<10x10xf32>
    %cst_58 = arith.constant dense<0xFF800000> : vector<10xf32>
    %172 = vector.multi_reduction <maximumf>, %171, %cst_58 [1] : vector<10x10xf32> to vector<10xf32>
    %173 = vector.shape_cast %172 : vector<10xf32> to vector<10x1xf32>
    %174 = vector.broadcast %173 : vector<10x1xf32> to vector<10x10xf32>
    %175 = arith.subf %171, %174 : vector<10x10xf32>
    %176 = math.exp %175 : vector<10x10xf32>
    %cst_59 = arith.constant dense<0.000000e+00> : vector<10xf32>
    %177 = vector.multi_reduction <add>, %176, %cst_59 [1] : vector<10x10xf32> to vector<10xf32>
    %178 = vector.shape_cast %177 : vector<10xf32> to vector<10x1xf32>
    %179 = tpu.reciprocal %178 {approx = true} : vector<10x1xf32> -> vector<10x1xf32>
    %180 = vector.broadcast %179 : vector<10x1xf32> to vector<10x10xf32>
    %181 = arith.mulf %176, %180 : vector<10x10xf32>
    %182 = vector.extract_strided_slice %97 {offsets = [0, 96], sizes = [10, 32], strides = [1, 1]} : vector<10x128xf32> to vector<10x32xf32>
    %183 = arith.truncf %181 : vector<10x10xf32> to vector<10x10xbf16>
    %184 = arith.truncf %182 : vector<10x32xf32> to vector<10x32xbf16>
    %cst_60 = arith.constant dense<0.000000e+00> : vector<10x32xf32>
    %185 = tpu.matmul %183, %184, %cst_60 {dimension_numbers = #tpu.dot_dimension_numbers<[1], [0], [0], [1], [0, 0, 1, 1], [], []>} : vector<10x10xbf16>, vector<10x32xbf16>, vector<10x32xf32> -> vector<10x32xf32>
    %186 = tpu.concatenate %119, %141, %163, %185 in 1 : vector<10x32xf32>, vector<10x32xf32>, vector<10x32xf32>, vector<10x32xf32> -> vector<10x128xf32>
    %c0_61 = arith.constant 0 : index
    %c0_62 = arith.constant 0 : index
    %187 = vector.load %arg27[%c0_61, %c0_62] : memref<128x128xbf16, #tpu.memory_space<vmem>>, vector<128x128xbf16>
    %188 = arith.truncf %186 : vector<10x128xf32> to vector<10x128xbf16>
    %cst_63 = arith.constant dense<0.000000e+00> : vector<10x128xf32>
    %189 = tpu.matmul %188, %187, %cst_63 {dimension_numbers = #tpu.dot_dimension_numbers<[1], [0], [0], [1], [0, 0, 1, 1], [], []>} : vector<10x128xbf16>, vector<128x128xbf16>, vector<10x128xf32> -> vector<10x128xf32>
    %c0_64 = arith.constant 0 : index
    %c0_65 = arith.constant 0 : index
    %190 = vector.load %arg25[%c0_64, %c0_65] : memref<1x128xf32, #tpu.memory_space<vmem>>, vector<1x128xf32>
    %191 = vector.broadcast %190 : vector<1x128xf32> to vector<10x128xf32>
    %192 = arith.addf %189, %191 : vector<10x128xf32>
    %193 = arith.addf %36, %192 : vector<10x128xf32>
    %c0_66 = arith.constant 0 : index
    %c0_67 = arith.constant 0 : index
    %194 = vector.load %arg34[%c0_66, %c0_67] : memref<1x128xf32, #tpu.memory_space<vmem>>, vector<1x128xf32>
    %c0_68 = arith.constant 0 : index
    %c0_69 = arith.constant 0 : index
    %195 = vector.load %arg33[%c0_68, %c0_69] : memref<1x128xf32, #tpu.memory_space<vmem>>, vector<1x128xf32>
    %cst_70 = arith.constant dense<0.000000e+00> : vector<10xf32>
    %196 = vector.multi_reduction <add>, %193, %cst_70 [1] : vector<10x128xf32> to vector<10xf32>
    %197 = vector.shape_cast %196 : vector<10xf32> to vector<10x1xf32>
    %cst_71 = arith.constant 1.280000e+02 : f32
    %198 = vector.broadcast %cst_71 : f32 to vector<10x1xf32>
    %199 = arith.divf %197, %198 : vector<10x1xf32>
    %200 = vector.broadcast %199 : vector<10x1xf32> to vector<10x128xf32>
    %201 = arith.subf %193, %200 : vector<10x128xf32>
    %202 = arith.mulf %201, %201 : vector<10x128xf32>
    %cst_72 = arith.constant dense<0.000000e+00> : vector<10xf32>
    %203 = vector.multi_reduction <add>, %202, %cst_72 [1] : vector<10x128xf32> to vector<10xf32>
    %204 = vector.shape_cast %203 : vector<10xf32> to vector<10x1xf32>
    %cst_73 = arith.constant 1.280000e+02 : f32
    %205 = vector.broadcast %cst_73 : f32 to vector<10x1xf32>
    %206 = arith.divf %204, %205 : vector<10x1xf32>
    %207 = vector.broadcast %199 : vector<10x1xf32> to vector<10x128xf32>
    %208 = arith.subf %193, %207 : vector<10x128xf32>
    %cst_74 = arith.constant 9.99999974E-6 : f32
    %209 = vector.broadcast %cst_74 : f32 to vector<10x1xf32>
    %210 = arith.addf %206, %209 : vector<10x1xf32>
    %211 = math.rsqrt %210 : vector<10x1xf32>
    %212 = vector.broadcast %211 : vector<10x1xf32> to vector<10x128xf32>
    %213 = arith.mulf %208, %212 : vector<10x128xf32>
    %214 = vector.broadcast %194 : vector<1x128xf32> to vector<10x128xf32>
    %215 = arith.mulf %213, %214 : vector<10x128xf32>
    %216 = vector.broadcast %195 : vector<1x128xf32> to vector<10x128xf32>
    %217 = arith.addf %215, %216 : vector<10x128xf32>
    %c0_75 = arith.constant 0 : index
    %c0_76 = arith.constant 0 : index
    %218 = vector.load %arg35[%c0_75, %c0_76] : memref<128x256xbf16, #tpu.memory_space<vmem>>, vector<128x256xbf16>
    %219 = arith.truncf %217 : vector<10x128xf32> to vector<10x128xbf16>
    %cst_77 = arith.constant dense<0.000000e+00> : vector<10x256xf32>
    %220 = tpu.matmul %219, %218, %cst_77 {dimension_numbers = #tpu.dot_dimension_numbers<[1], [0], [0], [1], [0, 0, 1, 1], [], []>} : vector<10x128xbf16>, vector<128x256xbf16>, vector<10x256xf32> -> vector<10x256xf32>
    %c0_78 = arith.constant 0 : index
    %c0_79 = arith.constant 0 : index
    %221 = vector.load %arg29[%c0_78, %c0_79] : memref<1x256xf32, #tpu.memory_space<vmem>>, vector<1x256xf32>
    %222 = vector.broadcast %221 : vector<1x256xf32> to vector<10x256xf32>
    %223 = arith.addf %220, %222 : vector<10x256xf32>
    %cst_80 = arith.constant 1.702000e+00 : f32
    %224 = vector.broadcast %cst_80 : f32 to vector<10x256xf32>
    %225 = arith.mulf %224, %223 : vector<10x256xf32>
    %226 = arith.negf %225 : vector<10x256xf32>
    %227 = math.exp %226 : vector<10x256xf32>
    %cst_81 = arith.constant 1.000000e+00 : f32
    %228 = vector.broadcast %cst_81 : f32 to vector<10x256xf32>
    %229 = arith.addf %228, %227 : vector<10x256xf32>
    %230 = arith.divf %228, %229 : vector<10x256xf32>
    %231 = arith.mulf %223, %230 : vector<10x256xf32>
    %c0_82 = arith.constant 0 : index
    %c0_83 = arith.constant 0 : index
    %232 = vector.load %arg36[%c0_82, %c0_83] : memref<256x128xbf16, #tpu.memory_space<vmem>>, vector<256x128xbf16>
    %233 = arith.truncf %231 : vector<10x256xf32> to vector<10x256xbf16>
    %cst_84 = arith.constant dense<0.000000e+00> : vector<10x128xf32>
    %234 = tpu.matmul %233, %232, %cst_84 {dimension_numbers = #tpu.dot_dimension_numbers<[1], [0], [0], [1], [0, 0, 1, 1], [], []>} : vector<10x256xbf16>, vector<256x128xbf16>, vector<10x128xf32> -> vector<10x128xf32>
    %c0_85 = arith.constant 0 : index
    %c0_86 = arith.constant 0 : index
    %235 = vector.load %arg30[%c0_85, %c0_86] : memref<1x128xf32, #tpu.memory_space<vmem>>, vector<1x128xf32>
    %236 = vector.broadcast %235 : vector<1x128xf32> to vector<10x128xf32>
    %237 = arith.addf %234, %236 : vector<10x128xf32>
    %238 = arith.addf %193, %237 : vector<10x128xf32>
    %239 = vector.extract_strided_slice %238 {offsets = [0, 0], sizes = [1, 128], strides = [1, 1]} : vector<10x128xf32> to vector<1x128xf32>
    %240 = vector.extract_strided_slice %238 {offsets = [5, 0], sizes = [1, 128], strides = [1, 1]} : vector<10x128xf32> to vector<1x128xf32>
    %241 = tpu.concatenate %239, %240 in 0 : vector<1x128xf32>, vector<1x128xf32> -> vector<2x128xf32>
    %c0_87 = arith.constant 0 : index
    %c0_88 = arith.constant 0 : index
    %242 = vector.load %arg20[%c0_87, %c0_88] : memref<1x128xf32, #tpu.memory_space<vmem>>, vector<1x128xf32>
    %c0_89 = arith.constant 0 : index
    %c0_90 = arith.constant 0 : index
    %243 = vector.load %arg19[%c0_89, %c0_90] : memref<1x128xf32, #tpu.memory_space<vmem>>, vector<1x128xf32>
    %cst_91 = arith.constant dense<0.000000e+00> : vector<2xf32>
    %244 = vector.multi_reduction <add>, %241, %cst_91 [1] : vector<2x128xf32> to vector<2xf32>
    %245 = vector.shape_cast %244 : vector<2xf32> to vector<2x1xf32>
    %cst_92 = arith.constant 1.280000e+02 : f32
    %246 = vector.broadcast %cst_92 : f32 to vector<2x1xf32>
    %247 = arith.divf %245, %246 : vector<2x1xf32>
    %248 = vector.broadcast %247 : vector<2x1xf32> to vector<2x128xf32>
    %249 = arith.subf %241, %248 : vector<2x128xf32>
    %250 = arith.mulf %249, %249 : vector<2x128xf32>
    %cst_93 = arith.constant dense<0.000000e+00> : vector<2xf32>
    %251 = vector.multi_reduction <add>, %250, %cst_93 [1] : vector<2x128xf32> to vector<2xf32>
    %252 = vector.shape_cast %251 : vector<2xf32> to vector<2x1xf32>
    %cst_94 = arith.constant 1.280000e+02 : f32
    %253 = vector.broadcast %cst_94 : f32 to vector<2x1xf32>
    %254 = arith.divf %252, %253 : vector<2x1xf32>
    %255 = vector.broadcast %247 : vector<2x1xf32> to vector<2x128xf32>
    %256 = arith.subf %241, %255 : vector<2x128xf32>
    %cst_95 = arith.constant 9.99999974E-6 : f32
    %257 = vector.broadcast %cst_95 : f32 to vector<2x1xf32>
    %258 = arith.addf %254, %257 : vector<2x1xf32>
    %259 = math.rsqrt %258 : vector<2x1xf32>
    %260 = vector.broadcast %259 : vector<2x1xf32> to vector<2x128xf32>
    %261 = arith.mulf %256, %260 : vector<2x128xf32>
    %262 = vector.broadcast %242 : vector<1x128xf32> to vector<2x128xf32>
    %263 = arith.mulf %261, %262 : vector<2x128xf32>
    %264 = vector.broadcast %243 : vector<1x128xf32> to vector<2x128xf32>
    %265 = arith.addf %263, %264 : vector<2x128xf32>
    %c0_96 = arith.constant 0 : index
    %c0_97 = arith.constant 0 : index
    %266 = vector.load %arg37[%c0_96, %c0_97] : memref<128x128xbf16, #tpu.memory_space<vmem>>, vector<128x128xbf16>
    %267 = arith.truncf %265 : vector<2x128xf32> to vector<2x128xbf16>
    %cst_98 = arith.constant dense<0.000000e+00> : vector<2x128xf32>
    %268 = tpu.matmul %267, %266, %cst_98 {dimension_numbers = #tpu.dot_dimension_numbers<[1], [0], [0], [1], [0, 0, 1, 1], [], []>} : vector<2x128xbf16>, vector<128x128xbf16>, vector<2x128xf32> -> vector<2x128xf32>
    %c0_99 = arith.constant 0 : index
    %c0_100 = arith.constant 0 : index
    %269 = vector.load %arg24[%c0_99, %c0_100] : memref<128x128xbf16, #tpu.memory_space<vmem>>, vector<128x128xbf16>
    %270 = arith.truncf %268 : vector<2x128xf32> to vector<2x128xbf16>
    %cst_101 = arith.constant dense<0.000000e+00> : vector<2x128xf32>
    %271 = tpu.matmul %270, %269, %cst_101 {dimension_numbers = #tpu.dot_dimension_numbers<[1], [0], [0], [1], [0, 0, 1, 1], [], []>} : vector<2x128xbf16>, vector<128x128xbf16>, vector<2x128xf32> -> vector<2x128xf32>
    %c0_102 = arith.constant 0 : index
    %c0_103 = arith.constant 0 : index
    %272 = vector.load %arg23[%c0_102, %c0_103] : memref<1x128xf32, #tpu.memory_space<vmem>>, vector<1x128xf32>
    %273 = vector.broadcast %272 : vector<1x128xf32> to vector<2x128xf32>
    %274 = arith.addf %271, %273 : vector<2x128xf32>
    %275 = tpu.iota {dimensions = array<i32: 1>} : vector<16x128xi32>
    %276 = vector.broadcast %1 : vector<16x1xi32> to vector<16x128xi32>
    %277 = arith.cmpi eq, %275, %276 : vector<16x128xi32>
    %278 = arith.extui %277 : vector<16x128xi1> to vector<16x128xi32>
    %279 = arith.sitofp %278 : vector<16x128xi32> to vector<16x128xf32>
    %c0_104 = arith.constant 0 : index
    %c0_105 = arith.constant 0 : index
    %280 = vector.load %arg38[%c0_104, %c0_105] : memref<128x128xbf16, #tpu.memory_space<vmem>>, vector<128x128xbf16>
    %281 = arith.truncf %279 : vector<16x128xf32> to vector<16x128xbf16>
    %cst_106 = arith.constant dense<0.000000e+00> : vector<16x128xf32>
    %282 = tpu.matmul %281, %280, %cst_106 {dimension_numbers = #tpu.dot_dimension_numbers<[1], [0], [0], [1], [0, 0, 1, 1], [], []>} : vector<16x128xbf16>, vector<128x128xbf16>, vector<16x128xf32> -> vector<16x128xf32>
    %283 = vector.extract_strided_slice %274 {offsets = [0, 0], sizes = [1, 128], strides = [1, 1]} : vector<2x128xf32> to vector<1x128xf32>
    %284 = vector.shape_cast %283 : vector<1x128xf32> to vector<1x128xf32>
    %285 = vector.broadcast %284 : vector<1x128xf32> to vector<8x128xf32>
    %286 = vector.extract_strided_slice %274 {offsets = [1, 0], sizes = [1, 128], strides = [1, 1]} : vector<2x128xf32> to vector<1x128xf32>
    %287 = vector.shape_cast %286 : vector<1x128xf32> to vector<1x128xf32>
    %288 = vector.broadcast %287 : vector<1x128xf32> to vector<8x128xf32>
    %289 = tpu.concatenate %285, %288 in 0 : vector<8x128xf32>, vector<8x128xf32> -> vector<16x128xf32>
    %290 = arith.addf %282, %289 : vector<16x128xf32>
    %291 = tpu.iota {dimensions = array<i32: 0>} : vector<16x16xi32>
    %292 = tpu.iota {dimensions = array<i32: 1>} : vector<16x16xi32>
    %c0_i32_107 = arith.constant 0 : i32
    %293 = vector.broadcast %c0_i32_107 : i32 to vector<16x16xi32>
    %294 = arith.cmpi sge, %291, %293 : vector<16x16xi32>
    %c8_i32 = arith.constant 8 : i32
    %295 = vector.broadcast %c8_i32 : i32 to vector<16x16xi32>
    %296 = arith.cmpi slt, %291, %295 : vector<16x16xi32>
    %297 = arith.andi %294, %296 : vector<16x16xi1>
    %c0_i32_108 = arith.constant 0 : i32
    %298 = vector.broadcast %c0_i32_108 : i32 to vector<16x16xi32>
    %299 = arith.cmpi sge, %292, %298 : vector<16x16xi32>
    %c8_i32_109 = arith.constant 8 : i32
    %300 = vector.broadcast %c8_i32_109 : i32 to vector<16x16xi32>
    %301 = arith.cmpi slt, %292, %300 : vector<16x16xi32>
    %302 = arith.andi %299, %301 : vector<16x16xi1>
    %303 = arith.andi %297, %302 : vector<16x16xi1>
    %c8_i32_110 = arith.constant 8 : i32
    %304 = vector.broadcast %c8_i32_110 : i32 to vector<16x16xi32>
    %305 = arith.cmpi sge, %291, %304 : vector<16x16xi32>
    %c16_i32 = arith.constant 16 : i32
    %306 = vector.broadcast %c16_i32 : i32 to vector<16x16xi32>
    %307 = arith.cmpi slt, %291, %306 : vector<16x16xi32>
    %308 = arith.andi %305, %307 : vector<16x16xi1>
    %c8_i32_111 = arith.constant 8 : i32
    %309 = vector.broadcast %c8_i32_111 : i32 to vector<16x16xi32>
    %310 = arith.cmpi sge, %292, %309 : vector<16x16xi32>
    %c16_i32_112 = arith.constant 16 : i32
    %311 = vector.broadcast %c16_i32_112 : i32 to vector<16x16xi32>
    %312 = arith.cmpi slt, %292, %311 : vector<16x16xi32>
    %313 = arith.andi %310, %312 : vector<16x16xi1>
    %314 = arith.andi %308, %313 : vector<16x16xi1>
    %315 = arith.ori %303, %314 : vector<16x16xi1>
    %316 = arith.cmpi sle, %292, %291 : vector<16x16xi32>
    %317 = arith.andi %315, %316 : vector<16x16xi1>
    %318 = arith.subi %292, %291 : vector<16x16xi32>
    %319 = arith.sitofp %318 : vector<16x16xi32> to vector<16x16xf32>
    %cst_113 = arith.constant 2.500000e-01 : f32
    %320 = vector.broadcast %cst_113 : f32 to vector<16x16xf32>
    %321 = arith.mulf %320, %319 : vector<16x16xf32>
    %cst_114 = arith.constant -1.000000e+09 : f32
    %322 = vector.broadcast %cst_114 : f32 to vector<16x16xf32>
    %323 = arith.select %317, %321, %322 : vector<16x16xi1>, vector<16x16xf32>
    %cst_115 = arith.constant 6.250000e-02 : f32
    %324 = vector.broadcast %cst_115 : f32 to vector<16x16xf32>
    %325 = arith.mulf %324, %319 : vector<16x16xf32>
    %cst_116 = arith.constant -1.000000e+09 : f32
    %326 = vector.broadcast %cst_116 : f32 to vector<16x16xf32>
    %327 = arith.select %317, %325, %326 : vector<16x16xi1>, vector<16x16xf32>
    %cst_117 = arith.constant 1.562500e-02 : f32
    %328 = vector.broadcast %cst_117 : f32 to vector<16x16xf32>
    %329 = arith.mulf %328, %319 : vector<16x16xf32>
    %cst_118 = arith.constant -1.000000e+09 : f32
    %330 = vector.broadcast %cst_118 : f32 to vector<16x16xf32>
    %331 = arith.select %317, %329, %330 : vector<16x16xi1>, vector<16x16xf32>
    %cst_119 = arith.constant 3.906250e-03 : f32
    %332 = vector.broadcast %cst_119 : f32 to vector<16x16xf32>
    %333 = arith.mulf %332, %319 : vector<16x16xf32>
    %cst_120 = arith.constant -1.000000e+09 : f32
    %334 = vector.broadcast %cst_120 : f32 to vector<16x16xf32>
    %335 = arith.select %317, %333, %334 : vector<16x16xi1>, vector<16x16xf32>
    %c0_121 = arith.constant 0 : index
    %c0_122 = arith.constant 0 : index
    %336 = vector.load %arg10[%c0_121, %c0_122] : memref<1x128xf32, #tpu.memory_space<vmem>>, vector<1x128xf32>
    %c0_123 = arith.constant 0 : index
    %c0_124 = arith.constant 0 : index
    %337 = vector.load %arg9[%c0_123, %c0_124] : memref<1x128xf32, #tpu.memory_space<vmem>>, vector<1x128xf32>
    %cst_125 = arith.constant dense<0.000000e+00> : vector<16xf32>
    %338 = vector.multi_reduction <add>, %290, %cst_125 [1] : vector<16x128xf32> to vector<16xf32>
    %339 = vector.shape_cast %338 : vector<16xf32> to vector<16x1xf32>
    %cst_126 = arith.constant 1.280000e+02 : f32
    %340 = vector.broadcast %cst_126 : f32 to vector<16x1xf32>
    %341 = arith.divf %339, %340 : vector<16x1xf32>
    %342 = vector.broadcast %341 : vector<16x1xf32> to vector<16x128xf32>
    %343 = arith.subf %290, %342 : vector<16x128xf32>
    %344 = arith.mulf %343, %343 : vector<16x128xf32>
    %cst_127 = arith.constant dense<0.000000e+00> : vector<16xf32>
    %345 = vector.multi_reduction <add>, %344, %cst_127 [1] : vector<16x128xf32> to vector<16xf32>
    %346 = vector.shape_cast %345 : vector<16xf32> to vector<16x1xf32>
    %cst_128 = arith.constant 1.280000e+02 : f32
    %347 = vector.broadcast %cst_128 : f32 to vector<16x1xf32>
    %348 = arith.divf %346, %347 : vector<16x1xf32>
    %349 = vector.broadcast %341 : vector<16x1xf32> to vector<16x128xf32>
    %350 = arith.subf %290, %349 : vector<16x128xf32>
    %cst_129 = arith.constant 9.99999974E-6 : f32
    %351 = vector.broadcast %cst_129 : f32 to vector<16x1xf32>
    %352 = arith.addf %348, %351 : vector<16x1xf32>
    %353 = math.rsqrt %352 : vector<16x1xf32>
    %354 = vector.broadcast %353 : vector<16x1xf32> to vector<16x128xf32>
    %355 = arith.mulf %350, %354 : vector<16x128xf32>
    %356 = vector.broadcast %336 : vector<1x128xf32> to vector<16x128xf32>
    %357 = arith.mulf %355, %356 : vector<16x128xf32>
    %358 = vector.broadcast %337 : vector<1x128xf32> to vector<16x128xf32>
    %359 = arith.addf %357, %358 : vector<16x128xf32>
    %c0_130 = arith.constant 0 : index
    %c0_131 = arith.constant 0 : index
    %360 = vector.load %arg6[%c0_130, %c0_131] : memref<128x384xbf16, #tpu.memory_space<vmem>>, vector<128x384xbf16>
    %361 = arith.truncf %359 : vector<16x128xf32> to vector<16x128xbf16>
    %cst_132 = arith.constant dense<0.000000e+00> : vector<16x384xf32>
    %362 = tpu.matmul %361, %360, %cst_132 {dimension_numbers = #tpu.dot_dimension_numbers<[1], [0], [0], [1], [0, 0, 1, 1], [], []>} : vector<16x128xbf16>, vector<128x384xbf16>, vector<16x384xf32> -> vector<16x384xf32>
    %c0_133 = arith.constant 0 : index
    %c0_134 = arith.constant 0 : index
    %363 = vector.load %arg4[%c0_133, %c0_134] : memref<1x384xf32, #tpu.memory_space<vmem>>, vector<1x384xf32>
    %364 = vector.broadcast %363 : vector<1x384xf32> to vector<16x384xf32>
    %365 = arith.addf %362, %364 : vector<16x384xf32>
    %366 = vector.extract_strided_slice %365 {offsets = [0, 0], sizes = [16, 128], strides = [1, 1]} : vector<16x384xf32> to vector<16x128xf32>
    %367 = vector.extract_strided_slice %365 {offsets = [0, 128], sizes = [16, 128], strides = [1, 1]} : vector<16x384xf32> to vector<16x128xf32>
    %368 = vector.extract_strided_slice %365 {offsets = [0, 256], sizes = [16, 128], strides = [1, 1]} : vector<16x384xf32> to vector<16x128xf32>
    %369 = vector.extract_strided_slice %366 {offsets = [0, 0], sizes = [16, 32], strides = [1, 1]} : vector<16x128xf32> to vector<16x32xf32>
    %370 = vector.extract_strided_slice %367 {offsets = [0, 0], sizes = [16, 32], strides = [1, 1]} : vector<16x128xf32> to vector<16x32xf32>
    %371 = arith.truncf %369 : vector<16x32xf32> to vector<16x32xbf16>
    %372 = arith.truncf %370 : vector<16x32xf32> to vector<16x32xbf16>
    %cst_135 = arith.constant dense<0.000000e+00> : vector<16x16xf32>
    %373 = tpu.matmul %371, %372, %cst_135 {dimension_numbers = #tpu.dot_dimension_numbers<[1], [1], [0], [0], [0, 0, 1, 0], [], []>} : vector<16x32xbf16>, vector<16x32xbf16>, vector<16x16xf32> -> vector<16x16xf32>
    %cst_136 = arith.constant 0.176776692 : f32
    %374 = vector.broadcast %cst_136 : f32 to vector<16x16xf32>
    %375 = arith.mulf %373, %374 : vector<16x16xf32>
    %376 = arith.addf %375, %323 : vector<16x16xf32>
    %cst_137 = arith.constant dense<0xFF800000> : vector<16xf32>
    %377 = vector.multi_reduction <maximumf>, %376, %cst_137 [1] : vector<16x16xf32> to vector<16xf32>
    %378 = vector.shape_cast %377 : vector<16xf32> to vector<16x1xf32>
    %379 = vector.broadcast %378 : vector<16x1xf32> to vector<16x16xf32>
    %380 = arith.subf %376, %379 : vector<16x16xf32>
    %381 = math.exp %380 : vector<16x16xf32>
    %cst_138 = arith.constant dense<0.000000e+00> : vector<16xf32>
    %382 = vector.multi_reduction <add>, %381, %cst_138 [1] : vector<16x16xf32> to vector<16xf32>
    %383 = vector.shape_cast %382 : vector<16xf32> to vector<16x1xf32>
    %384 = tpu.reciprocal %383 {approx = true} : vector<16x1xf32> -> vector<16x1xf32>
    %385 = vector.broadcast %384 : vector<16x1xf32> to vector<16x16xf32>
    %386 = arith.mulf %381, %385 : vector<16x16xf32>
    %387 = vector.extract_strided_slice %368 {offsets = [0, 0], sizes = [16, 32], strides = [1, 1]} : vector<16x128xf32> to vector<16x32xf32>
    %388 = arith.truncf %386 : vector<16x16xf32> to vector<16x16xbf16>
    %389 = arith.truncf %387 : vector<16x32xf32> to vector<16x32xbf16>
    %cst_139 = arith.constant dense<0.000000e+00> : vector<16x32xf32>
    %390 = tpu.matmul %388, %389, %cst_139 {dimension_numbers = #tpu.dot_dimension_numbers<[1], [0], [0], [1], [0, 0, 1, 1], [], []>} : vector<16x16xbf16>, vector<16x32xbf16>, vector<16x32xf32> -> vector<16x32xf32>
    %391 = vector.extract_strided_slice %366 {offsets = [0, 32], sizes = [16, 32], strides = [1, 1]} : vector<16x128xf32> to vector<16x32xf32>
    %392 = vector.extract_strided_slice %367 {offsets = [0, 32], sizes = [16, 32], strides = [1, 1]} : vector<16x128xf32> to vector<16x32xf32>
    %393 = arith.truncf %391 : vector<16x32xf32> to vector<16x32xbf16>
    %394 = arith.truncf %392 : vector<16x32xf32> to vector<16x32xbf16>
    %cst_140 = arith.constant dense<0.000000e+00> : vector<16x16xf32>
    %395 = tpu.matmul %393, %394, %cst_140 {dimension_numbers = #tpu.dot_dimension_numbers<[1], [1], [0], [0], [0, 0, 1, 0], [], []>} : vector<16x32xbf16>, vector<16x32xbf16>, vector<16x16xf32> -> vector<16x16xf32>
    %cst_141 = arith.constant 0.176776692 : f32
    %396 = vector.broadcast %cst_141 : f32 to vector<16x16xf32>
    %397 = arith.mulf %395, %396 : vector<16x16xf32>
    %398 = arith.addf %397, %327 : vector<16x16xf32>
    %cst_142 = arith.constant dense<0xFF800000> : vector<16xf32>
    %399 = vector.multi_reduction <maximumf>, %398, %cst_142 [1] : vector<16x16xf32> to vector<16xf32>
    %400 = vector.shape_cast %399 : vector<16xf32> to vector<16x1xf32>
    %401 = vector.broadcast %400 : vector<16x1xf32> to vector<16x16xf32>
    %402 = arith.subf %398, %401 : vector<16x16xf32>
    %403 = math.exp %402 : vector<16x16xf32>
    %cst_143 = arith.constant dense<0.000000e+00> : vector<16xf32>
    %404 = vector.multi_reduction <add>, %403, %cst_143 [1] : vector<16x16xf32> to vector<16xf32>
    %405 = vector.shape_cast %404 : vector<16xf32> to vector<16x1xf32>
    %406 = tpu.reciprocal %405 {approx = true} : vector<16x1xf32> -> vector<16x1xf32>
    %407 = vector.broadcast %406 : vector<16x1xf32> to vector<16x16xf32>
    %408 = arith.mulf %403, %407 : vector<16x16xf32>
    %409 = vector.extract_strided_slice %368 {offsets = [0, 32], sizes = [16, 32], strides = [1, 1]} : vector<16x128xf32> to vector<16x32xf32>
    %410 = arith.truncf %408 : vector<16x16xf32> to vector<16x16xbf16>
    %411 = arith.truncf %409 : vector<16x32xf32> to vector<16x32xbf16>
    %cst_144 = arith.constant dense<0.000000e+00> : vector<16x32xf32>
    %412 = tpu.matmul %410, %411, %cst_144 {dimension_numbers = #tpu.dot_dimension_numbers<[1], [0], [0], [1], [0, 0, 1, 1], [], []>} : vector<16x16xbf16>, vector<16x32xbf16>, vector<16x32xf32> -> vector<16x32xf32>
    %413 = vector.extract_strided_slice %366 {offsets = [0, 64], sizes = [16, 32], strides = [1, 1]} : vector<16x128xf32> to vector<16x32xf32>
    %414 = vector.extract_strided_slice %367 {offsets = [0, 64], sizes = [16, 32], strides = [1, 1]} : vector<16x128xf32> to vector<16x32xf32>
    %415 = arith.truncf %413 : vector<16x32xf32> to vector<16x32xbf16>
    %416 = arith.truncf %414 : vector<16x32xf32> to vector<16x32xbf16>
    %cst_145 = arith.constant dense<0.000000e+00> : vector<16x16xf32>
    %417 = tpu.matmul %415, %416, %cst_145 {dimension_numbers = #tpu.dot_dimension_numbers<[1], [1], [0], [0], [0, 0, 1, 0], [], []>} : vector<16x32xbf16>, vector<16x32xbf16>, vector<16x16xf32> -> vector<16x16xf32>
    %cst_146 = arith.constant 0.176776692 : f32
    %418 = vector.broadcast %cst_146 : f32 to vector<16x16xf32>
    %419 = arith.mulf %417, %418 : vector<16x16xf32>
    %420 = arith.addf %419, %331 : vector<16x16xf32>
    %cst_147 = arith.constant dense<0xFF800000> : vector<16xf32>
    %421 = vector.multi_reduction <maximumf>, %420, %cst_147 [1] : vector<16x16xf32> to vector<16xf32>
    %422 = vector.shape_cast %421 : vector<16xf32> to vector<16x1xf32>
    %423 = vector.broadcast %422 : vector<16x1xf32> to vector<16x16xf32>
    %424 = arith.subf %420, %423 : vector<16x16xf32>
    %425 = math.exp %424 : vector<16x16xf32>
    %cst_148 = arith.constant dense<0.000000e+00> : vector<16xf32>
    %426 = vector.multi_reduction <add>, %425, %cst_148 [1] : vector<16x16xf32> to vector<16xf32>
    %427 = vector.shape_cast %426 : vector<16xf32> to vector<16x1xf32>
    %428 = tpu.reciprocal %427 {approx = true} : vector<16x1xf32> -> vector<16x1xf32>
    %429 = vector.broadcast %428 : vector<16x1xf32> to vector<16x16xf32>
    %430 = arith.mulf %425, %429 : vector<16x16xf32>
    %431 = vector.extract_strided_slice %368 {offsets = [0, 64], sizes = [16, 32], strides = [1, 1]} : vector<16x128xf32> to vector<16x32xf32>
    %432 = arith.truncf %430 : vector<16x16xf32> to vector<16x16xbf16>
    %433 = arith.truncf %431 : vector<16x32xf32> to vector<16x32xbf16>
    %cst_149 = arith.constant dense<0.000000e+00> : vector<16x32xf32>
    %434 = tpu.matmul %432, %433, %cst_149 {dimension_numbers = #tpu.dot_dimension_numbers<[1], [0], [0], [1], [0, 0, 1, 1], [], []>} : vector<16x16xbf16>, vector<16x32xbf16>, vector<16x32xf32> -> vector<16x32xf32>
    %435 = vector.extract_strided_slice %366 {offsets = [0, 96], sizes = [16, 32], strides = [1, 1]} : vector<16x128xf32> to vector<16x32xf32>
    %436 = vector.extract_strided_slice %367 {offsets = [0, 96], sizes = [16, 32], strides = [1, 1]} : vector<16x128xf32> to vector<16x32xf32>
    %437 = arith.truncf %435 : vector<16x32xf32> to vector<16x32xbf16>
    %438 = arith.truncf %436 : vector<16x32xf32> to vector<16x32xbf16>
    %cst_150 = arith.constant dense<0.000000e+00> : vector<16x16xf32>
    %439 = tpu.matmul %437, %438, %cst_150 {dimension_numbers = #tpu.dot_dimension_numbers<[1], [1], [0], [0], [0, 0, 1, 0], [], []>} : vector<16x32xbf16>, vector<16x32xbf16>, vector<16x16xf32> -> vector<16x16xf32>
    %cst_151 = arith.constant 0.176776692 : f32
    %440 = vector.broadcast %cst_151 : f32 to vector<16x16xf32>
    %441 = arith.mulf %439, %440 : vector<16x16xf32>
    %442 = arith.addf %441, %335 : vector<16x16xf32>
    %cst_152 = arith.constant dense<0xFF800000> : vector<16xf32>
    %443 = vector.multi_reduction <maximumf>, %442, %cst_152 [1] : vector<16x16xf32> to vector<16xf32>
    %444 = vector.shape_cast %443 : vector<16xf32> to vector<16x1xf32>
    %445 = vector.broadcast %444 : vector<16x1xf32> to vector<16x16xf32>
    %446 = arith.subf %442, %445 : vector<16x16xf32>
    %447 = math.exp %446 : vector<16x16xf32>
    %cst_153 = arith.constant dense<0.000000e+00> : vector<16xf32>
    %448 = vector.multi_reduction <add>, %447, %cst_153 [1] : vector<16x16xf32> to vector<16xf32>
    %449 = vector.shape_cast %448 : vector<16xf32> to vector<16x1xf32>
    %450 = tpu.reciprocal %449 {approx = true} : vector<16x1xf32> -> vector<16x1xf32>
    %451 = vector.broadcast %450 : vector<16x1xf32> to vector<16x16xf32>
    %452 = arith.mulf %447, %451 : vector<16x16xf32>
    %453 = vector.extract_strided_slice %368 {offsets = [0, 96], sizes = [16, 32], strides = [1, 1]} : vector<16x128xf32> to vector<16x32xf32>
    %454 = arith.truncf %452 : vector<16x16xf32> to vector<16x16xbf16>
    %455 = arith.truncf %453 : vector<16x32xf32> to vector<16x32xbf16>
    %cst_154 = arith.constant dense<0.000000e+00> : vector<16x32xf32>
    %456 = tpu.matmul %454, %455, %cst_154 {dimension_numbers = #tpu.dot_dimension_numbers<[1], [0], [0], [1], [0, 0, 1, 1], [], []>} : vector<16x16xbf16>, vector<16x32xbf16>, vector<16x32xf32> -> vector<16x32xf32>
    %457 = tpu.concatenate %390, %412, %434, %456 in 1 : vector<16x32xf32>, vector<16x32xf32>, vector<16x32xf32>, vector<16x32xf32> -> vector<16x128xf32>
    %c0_155 = arith.constant 0 : index
    %c0_156 = arith.constant 0 : index
    %458 = vector.load %arg5[%c0_155, %c0_156] : memref<128x128xbf16, #tpu.memory_space<vmem>>, vector<128x128xbf16>
    %459 = arith.truncf %457 : vector<16x128xf32> to vector<16x128xbf16>
    %cst_157 = arith.constant dense<0.000000e+00> : vector<16x128xf32>
    %460 = tpu.matmul %459, %458, %cst_157 {dimension_numbers = #tpu.dot_dimension_numbers<[1], [0], [0], [1], [0, 0, 1, 1], [], []>} : vector<16x128xbf16>, vector<128x128xbf16>, vector<16x128xf32> -> vector<16x128xf32>
    %c0_158 = arith.constant 0 : index
    %c0_159 = arith.constant 0 : index
    %461 = vector.load %arg3[%c0_158, %c0_159] : memref<1x128xf32, #tpu.memory_space<vmem>>, vector<1x128xf32>
    %462 = vector.broadcast %461 : vector<1x128xf32> to vector<16x128xf32>
    %463 = arith.addf %460, %462 : vector<16x128xf32>
    %464 = arith.addf %290, %463 : vector<16x128xf32>
    %c0_160 = arith.constant 0 : index
    %c0_161 = arith.constant 0 : index
    %465 = vector.load %arg12[%c0_160, %c0_161] : memref<1x128xf32, #tpu.memory_space<vmem>>, vector<1x128xf32>
    %c0_162 = arith.constant 0 : index
    %c0_163 = arith.constant 0 : index
    %466 = vector.load %arg11[%c0_162, %c0_163] : memref<1x128xf32, #tpu.memory_space<vmem>>, vector<1x128xf32>
    %cst_164 = arith.constant dense<0.000000e+00> : vector<16xf32>
    %467 = vector.multi_reduction <add>, %464, %cst_164 [1] : vector<16x128xf32> to vector<16xf32>
    %468 = vector.shape_cast %467 : vector<16xf32> to vector<16x1xf32>
    %cst_165 = arith.constant 1.280000e+02 : f32
    %469 = vector.broadcast %cst_165 : f32 to vector<16x1xf32>
    %470 = arith.divf %468, %469 : vector<16x1xf32>
    %471 = vector.broadcast %470 : vector<16x1xf32> to vector<16x128xf32>
    %472 = arith.subf %464, %471 : vector<16x128xf32>
    %473 = arith.mulf %472, %472 : vector<16x128xf32>
    %cst_166 = arith.constant dense<0.000000e+00> : vector<16xf32>
    %474 = vector.multi_reduction <add>, %473, %cst_166 [1] : vector<16x128xf32> to vector<16xf32>
    %475 = vector.shape_cast %474 : vector<16xf32> to vector<16x1xf32>
    %cst_167 = arith.constant 1.280000e+02 : f32
    %476 = vector.broadcast %cst_167 : f32 to vector<16x1xf32>
    %477 = arith.divf %475, %476 : vector<16x1xf32>
    %478 = vector.broadcast %470 : vector<16x1xf32> to vector<16x128xf32>
    %479 = arith.subf %464, %478 : vector<16x128xf32>
    %cst_168 = arith.constant 9.99999974E-6 : f32
    %480 = vector.broadcast %cst_168 : f32 to vector<16x1xf32>
    %481 = arith.addf %477, %480 : vector<16x1xf32>
    %482 = math.rsqrt %481 : vector<16x1xf32>
    %483 = vector.broadcast %482 : vector<16x1xf32> to vector<16x128xf32>
    %484 = arith.mulf %479, %483 : vector<16x128xf32>
    %485 = vector.broadcast %465 : vector<1x128xf32> to vector<16x128xf32>
    %486 = arith.mulf %484, %485 : vector<16x128xf32>
    %487 = vector.broadcast %466 : vector<1x128xf32> to vector<16x128xf32>
    %488 = arith.addf %486, %487 : vector<16x128xf32>
    %c0_169 = arith.constant 0 : index
    %c0_170 = arith.constant 0 : index
    %489 = vector.load %arg13[%c0_169, %c0_170] : memref<128x256xbf16, #tpu.memory_space<vmem>>, vector<128x256xbf16>
    %490 = arith.truncf %488 : vector<16x128xf32> to vector<16x128xbf16>
    %cst_171 = arith.constant dense<0.000000e+00> : vector<16x256xf32>
    %491 = tpu.matmul %490, %489, %cst_171 {dimension_numbers = #tpu.dot_dimension_numbers<[1], [0], [0], [1], [0, 0, 1, 1], [], []>} : vector<16x128xbf16>, vector<128x256xbf16>, vector<16x256xf32> -> vector<16x256xf32>
    %c0_172 = arith.constant 0 : index
    %c0_173 = arith.constant 0 : index
    %492 = vector.load %arg7[%c0_172, %c0_173] : memref<1x256xf32, #tpu.memory_space<vmem>>, vector<1x256xf32>
    %493 = vector.broadcast %492 : vector<1x256xf32> to vector<16x256xf32>
    %494 = arith.addf %491, %493 : vector<16x256xf32>
    %495 = arith.mulf %494, %494 : vector<16x256xf32>
    %496 = arith.mulf %494, %495 : vector<16x256xf32>
    %cst_174 = arith.constant 4.471500e-02 : f32
    %497 = vector.broadcast %cst_174 : f32 to vector<16x256xf32>
    %498 = arith.mulf %497, %496 : vector<16x256xf32>
    %499 = arith.addf %494, %498 : vector<16x256xf32>
    %cst_175 = arith.constant 0.797884583 : f32
    %500 = vector.broadcast %cst_175 : f32 to vector<16x256xf32>
    %501 = arith.mulf %500, %499 : vector<16x256xf32>
    %502 = math.tanh %501 : vector<16x256xf32>
    %cst_176 = arith.constant 1.000000e+00 : f32
    %503 = vector.broadcast %cst_176 : f32 to vector<16x256xf32>
    %504 = arith.addf %503, %502 : vector<16x256xf32>
    %cst_177 = arith.constant 5.000000e-01 : f32
    %505 = vector.broadcast %cst_177 : f32 to vector<16x256xf32>
    %506 = arith.mulf %505, %504 : vector<16x256xf32>
    %507 = arith.mulf %494, %506 : vector<16x256xf32>
    %c0_178 = arith.constant 0 : index
    %c0_179 = arith.constant 0 : index
    %508 = vector.load %arg14[%c0_178, %c0_179] : memref<256x128xbf16, #tpu.memory_space<vmem>>, vector<256x128xbf16>
    %509 = arith.truncf %507 : vector<16x256xf32> to vector<16x256xbf16>
    %cst_180 = arith.constant dense<0.000000e+00> : vector<16x128xf32>
    %510 = tpu.matmul %509, %508, %cst_180 {dimension_numbers = #tpu.dot_dimension_numbers<[1], [0], [0], [1], [0, 0, 1, 1], [], []>} : vector<16x256xbf16>, vector<256x128xbf16>, vector<16x128xf32> -> vector<16x128xf32>
    %c0_181 = arith.constant 0 : index
    %c0_182 = arith.constant 0 : index
    %511 = vector.load %arg8[%c0_181, %c0_182] : memref<1x128xf32, #tpu.memory_space<vmem>>, vector<1x128xf32>
    %512 = vector.broadcast %511 : vector<1x128xf32> to vector<16x128xf32>
    %513 = arith.addf %510, %512 : vector<16x128xf32>
    %514 = arith.addf %464, %513 : vector<16x128xf32>
    %c0_183 = arith.constant 0 : index
    %c0_184 = arith.constant 0 : index
    %515 = vector.load %arg16[%c0_183, %c0_184] : memref<1x128xf32, #tpu.memory_space<vmem>>, vector<1x128xf32>
    %c0_185 = arith.constant 0 : index
    %c0_186 = arith.constant 0 : index
    %516 = vector.load %arg15[%c0_185, %c0_186] : memref<1x128xf32, #tpu.memory_space<vmem>>, vector<1x128xf32>
    %cst_187 = arith.constant dense<0.000000e+00> : vector<16xf32>
    %517 = vector.multi_reduction <add>, %514, %cst_187 [1] : vector<16x128xf32> to vector<16xf32>
    %518 = vector.shape_cast %517 : vector<16xf32> to vector<16x1xf32>
    %cst_188 = arith.constant 1.280000e+02 : f32
    %519 = vector.broadcast %cst_188 : f32 to vector<16x1xf32>
    %520 = arith.divf %518, %519 : vector<16x1xf32>
    %521 = vector.broadcast %520 : vector<16x1xf32> to vector<16x128xf32>
    %522 = arith.subf %514, %521 : vector<16x128xf32>
    %523 = arith.mulf %522, %522 : vector<16x128xf32>
    %cst_189 = arith.constant dense<0.000000e+00> : vector<16xf32>
    %524 = vector.multi_reduction <add>, %523, %cst_189 [1] : vector<16x128xf32> to vector<16xf32>
    %525 = vector.shape_cast %524 : vector<16xf32> to vector<16x1xf32>
    %cst_190 = arith.constant 1.280000e+02 : f32
    %526 = vector.broadcast %cst_190 : f32 to vector<16x1xf32>
    %527 = arith.divf %525, %526 : vector<16x1xf32>
    %528 = vector.broadcast %520 : vector<16x1xf32> to vector<16x128xf32>
    %529 = arith.subf %514, %528 : vector<16x128xf32>
    %cst_191 = arith.constant 9.99999974E-6 : f32
    %530 = vector.broadcast %cst_191 : f32 to vector<16x1xf32>
    %531 = arith.addf %527, %530 : vector<16x1xf32>
    %532 = math.rsqrt %531 : vector<16x1xf32>
    %533 = vector.broadcast %532 : vector<16x1xf32> to vector<16x128xf32>
    %534 = arith.mulf %529, %533 : vector<16x128xf32>
    %535 = vector.broadcast %515 : vector<1x128xf32> to vector<16x128xf32>
    %536 = arith.mulf %534, %535 : vector<16x128xf32>
    %537 = vector.broadcast %516 : vector<1x128xf32> to vector<16x128xf32>
    %538 = arith.addf %536, %537 : vector<16x128xf32>
    %c0_192 = arith.constant 0 : index
    %c0_193 = arith.constant 0 : index
    %539 = vector.load %arg38[%c0_192, %c0_193] : memref<128x128xbf16, #tpu.memory_space<vmem>>, vector<128x128xbf16>
    %540 = arith.truncf %538 : vector<16x128xf32> to vector<16x128xbf16>
    %cst_194 = arith.constant dense<0.000000e+00> : vector<16x128xf32>
    %541 = tpu.matmul %540, %539, %cst_194 {dimension_numbers = #tpu.dot_dimension_numbers<[1], [1], [0], [0], [0, 0, 1, 0], [], []>} : vector<16x128xbf16>, vector<128x128xbf16>, vector<16x128xf32> -> vector<16x128xf32>
    %cst_195 = arith.constant dense<0xFF800000> : vector<16xf32>
    %542 = vector.multi_reduction <maximumf>, %541, %cst_195 [1] : vector<16x128xf32> to vector<16xf32>
    %543 = vector.shape_cast %542 : vector<16xf32> to vector<16x1xf32>
    %544 = vector.broadcast %543 : vector<16x1xf32> to vector<16x128xf32>
    %545 = arith.subf %541, %544 : vector<16x128xf32>
    %546 = math.exp %545 : vector<16x128xf32>
    %cst_196 = arith.constant dense<0.000000e+00> : vector<16xf32>
    %547 = vector.multi_reduction <add>, %546, %cst_196 [1] : vector<16x128xf32> to vector<16xf32>
    %548 = vector.shape_cast %547 : vector<16xf32> to vector<16x1xf32>
    %549 = math.log %548 : vector<16x1xf32>
    %550 = arith.addf %549, %543 : vector<16x1xf32>
    %551 = vector.broadcast %2 : vector<16x1xi32> to vector<16x128xi32>
    %552 = arith.cmpi eq, %275, %551 : vector<16x128xi32>
    %553 = arith.extui %552 : vector<16x128xi1> to vector<16x128xi32>
    %554 = arith.sitofp %553 : vector<16x128xi32> to vector<16x128xf32>
    %555 = arith.mulf %541, %554 : vector<16x128xf32>
    %cst_197 = arith.constant dense<0.000000e+00> : vector<16xf32>
    %556 = vector.multi_reduction <add>, %555, %cst_197 [1] : vector<16x128xf32> to vector<16xf32>
    %557 = vector.shape_cast %556 : vector<16xf32> to vector<16x1xf32>
    %c0_i32_198 = arith.constant 0 : i32
    %558 = vector.broadcast %c0_i32_198 : i32 to vector<16x1xi32>
    %559 = arith.cmpi sge, %2, %558 : vector<16x1xi32>
    %560 = arith.extui %559 : vector<16x1xi1> to vector<16x1xi32>
    %561 = arith.sitofp %560 : vector<16x1xi32> to vector<16x1xf32>
    %562 = arith.subf %550, %557 : vector<16x1xf32>
    %563 = arith.mulf %561, %562 : vector<16x1xf32>
    %564 = vector.shape_cast %563 : vector<16x1xf32> to vector<1x16x1xf32>
    %cst_199 = arith.constant dense<0.000000e+00> : vector<1xf32>
    %565 = vector.multi_reduction <add>, %564, %cst_199 [1, 2] : vector<1x16x1xf32> to vector<1xf32>
    %566 = vector.shape_cast %565 : vector<1xf32> to vector<1x1x1xf32>
    %567 = vector.extract %566[0, 0, 0] : f32 from vector<1x1x1xf32>
    %568 = vector.shape_cast %561 : vector<16x1xf32> to vector<1x16x1xf32>
    %cst_200 = arith.constant dense<0.000000e+00> : vector<1xf32>
    %569 = vector.multi_reduction <add>, %568, %cst_200 [1, 2] : vector<1x16x1xf32> to vector<1xf32>
    %570 = vector.shape_cast %569 : vector<1xf32> to vector<1x1x1xf32>
    %571 = vector.extract %570[0, 0, 0] : f32 from vector<1x1x1xf32>
    %572 = arith.divf %567, %571 : f32
    %573 = vector.broadcast %572 : f32 to vector<1x1xf32>
    %c0_201 = arith.constant 0 : index
    %c0_202 = arith.constant 0 : index
    %574 = vector.load %arg40[%c0_201, %c0_202] : memref<1x1xf32, #tpu.memory_space<vmem>>, vector<1x1xf32>
    tpu.vector_store %arg40[%c0_201, %c0_202], %573 {strides = array<i32>} : memref<1x1xf32, #tpu.memory_space<vmem>>, vector<1x1xf32>,
    return
  }
}

</mosaic_0001>

<bundles_post_ra>
// kernel: forward.1
= control target key start
LH: loop header
LB: loop body
LE: loop exit
PB: predicated region body
PF: predicated region fallthrough
CT: control target
= control target key end

     0   :  { %s5597_s6 = smov 1   ;;  %s5598_s10 = smov 2   ;;  %s6569_s0 = inlined_call_operand.smem [shape: u32[41], index: -1, kind: input, shape index: {}] }
   0x1   :  { %s5676_s5 = sld [smem:[%s6569_s0]]   ;;  %s5599_s14 = smov 3  }
   0x2   :  { %s5681_s9 = sld [smem:[%s6569_s0 + %s5597_s6]]   ;;  %s5600_s18 = smov 4  }
   0x3   :  { %s5686_s13 = sld [smem:[%s6569_s0 + %s5598_s10]]   ;;  %s5601_s22 = smov 5  }
   0x4   :  { %s5691_s17 = sld [smem:[%s6569_s0 + %s5599_s14]]   ;;  %s5602_s26 = smov 6  }
   0x5   :  { %s5696_s21 = sld [smem:[%s6569_s0 + %s5600_s18]]   ;;  %s5603_s30 = smov 7  }
   0x6   :  { %s5701_s25 = sld [smem:[%s6569_s0 + %s5601_s22]]   ;;  %s5604_s4 = smov 8  }
   0x7   :  { %6586 = sst [smem:[#allocation48_spill]] %s5676_s5  ;;  %s5605_s10 = smov 9  }
   0x8   :  { %6587 = sst [smem:[#allocation49_spill]] %s5681_s9  ;;  %s5606_s15 = smov 10  }
   0x9   :  { %6588 = sst [smem:[#allocation50_spill]] %s5686_s13  ;;  %s5607_s20 = smov 11  }
   0xa   :  { %6589 = sst [smem:[#allocation51_spill]] %s5691_s17  ;;  %s5609_s1 = smov 13  }
   0xb   :  { %6590 = sst [smem:[#allocation52_spill]] %s5696_s21  ;;  %s5610_s7 = smov 14  }
   0xc   :  { %s5706_s29 = sld [smem:[%s6569_s0 + %s5602_s26]]   ;;  %s5608_s26 = smov 12  }
   0xd   :  { %s5711_s3 = sld [smem:[%s6569_s0 + %s5603_s30]]   ;;  %s5612_s22 = smov 16  }
   0xe   :  { %s5716_s8 = sld [smem:[%s6569_s0 + %s5604_s4]]   ;;  %s5613_s28 = smov 17  }
   0xf   :  { %s5721_s14 = sld [smem:[%s6569_s0 + %s5605_s10]]  }
  0x10   :  { %s5726_s19 = sld [smem:[%s6569_s0 + %s5606_s15]]   ;;  %s5611_s15 = smov 15  }
  0x11   :  { %s5731_s24 = sld [smem:[%s6569_s0 + %s5607_s20]]  }
  0x12   :  { %6591 = sst [smem:[#allocation53_spill]] %s5706_s29 }
  0x13   :  { %6592 = sst [smem:[#allocation54_spill]] %s5711_s3 }
  0x14   :  { %6593 = sst [smem:[#allocation55_spill]] %s5716_s8 }
  0x15   :  { %6594 = sst [smem:[#allocation56_spill]] %s5721_s14 }
  0x16   :  { %6595 = sst [smem:[#allocation57_spill]] %s5726_s19 }
  0x17   :  { %6596 = sst [smem:[#allocation58_spill]] %s5731_s24 }
  0x18   :  { %s5736_s30 = sld [smem:[%s6569_s0 + %s5608_s26]]  }
  0x19   :  { %s5741_s6 = sld [smem:[%s6569_s0 + %s5609_s1]]  }
  0x1a   :  { %s5746_s12 = sld [smem:[%s6569_s0 + %s5610_s7]]   ;;  %s5614_s7 = smov 18  }
  0x1b   :  { %s5751_s20 = sld [smem:[%s6569_s0 + %s5611_s15]]   ;;  %s5615_s15 = smov 19  }
  0x1c   :  { %s5756_s27 = sld [smem:[%s6569_s0 + %s5612_s22]]   ;;  %s5616_s22 = smov 20  }
  0x1d   :  { %s5761_s4 = sld [smem:[%s6569_s0 + %s5613_s28]]   ;;  %s5617_s28 = smov 21  }
  0x1e   :  { %6597 = sst [smem:[#allocation59_spill]] %s5736_s30 }
  0x1f   :  { %6598 = sst [smem:[#allocation60_spill]] %s5741_s6 }
  0x20   :  { %6599 = sst [smem:[#allocation61_spill]] %s5746_s12 }
  0x21   :  { %s5766_s9 = sld [smem:[%s6569_s0 + %s5614_s7]]   ;;  %s5618_s7 = smov 22  }
  0x22   :  { %s5771_s8 = sld [smem:[%s6569_s0 + %s5615_s15]]   ;;  %s5619_s15 = smov 23  }
  0x23   :  { %6600 = sst [smem:[#allocation62_spill]] %s5761_s4 }
  0x24   :  { %s5776_s3 = sld [smem:[%s6569_s0 + %s5616_s22]]   ;;  %s5620_s22 = smov 24  }
  0x25   :  { %s5781_s12 = sld [smem:[%s6569_s0 + %s5617_s28]]   ;;  %s5621_s28 = smov 25  }
  0x26   :  { %s5786_s24 = sld [smem:[%s6569_s0 + %s5618_s7]]   ;;  %s5622_s7 = smov 26  }
  0x27   :  { %s5791_s30 = sld [smem:[%s6569_s0 + %s5619_s15]]   ;;  %s5623_s15 = smov 27  }
  0x28   :  { %s5796_s6 = sld [smem:[%s6569_s0 + %s5620_s22]]   ;;  %s5624_s22 = smov 28  }
  0x29   :  { %s5801_s17 = sld [smem:[%s6569_s0 + %s5621_s28]]   ;;  %s5625_s28 = smov 29  }
  0x2a   :  { %s5806_s21 = sld [smem:[%s6569_s0 + %s5622_s7]]   ;;  %s5626_s7 = smov 30  }
  0x2b   :  { %s5811_s14 = sld [smem:[%s6569_s0 + %s5623_s15]]   ;;  %s5627_s15 = smov 31  }
  0x2c   :  { %s5816_s19 = sld [smem:[%s6569_s0 + %s5624_s22]]   ;;  %s5628_s22 = smov 32  }
  0x2d   :  { %s5821_s29 = sld [smem:[%s6569_s0 + %s5625_s28]]   ;;  %s5629_s28 = smov 33  }
  0x2e   :  { %s5826_s5 = sld [smem:[%s6569_s0 + %s5626_s7]]   ;;  %s5630_s7 = smov 34  }
  0x2f   :  { %6601 = sst [smem:[#allocation63_spill]] %s5801_s17 }
  0x30   :  { %s5831_s13 = sld [smem:[%s6569_s0 + %s5627_s15]]   ;;  %s5631_s15 = smov 35  }
  0x31   :  { %6602 = sst [smem:[#allocation64_spill]] %s5811_s14 }
  0x32   :  { %6603 = sst [smem:[#allocation65_spill]] %s5816_s19 }
  0x33   :  { %s5836_s19 = sld [smem:[%s6569_s0 + %s5628_s22]]   ;;  %s5632_s22 = smov 36  }
  0x34   :  { %6604 = sst [smem:[#allocation66_spill]] %s5826_s5 }
  0x35   :  { %s5841_s4 = sld [smem:[%s6569_s0 + %s5629_s28]]   ;;  %s5633_s28 = smov 37  }
  0x36   :  { %s5846_s5 = sld [smem:[%s6569_s0 + %s5630_s7]]   ;;  %s5634_s7 = smov 38  }
  0x37   :  { %s5851_s14 = sld [smem:[%s6569_s0 + %s5631_s15]]   ;;  %s5635_s15 = smov 39  }
  0x38   :  { %s5861_s17 = sld [smem:[%s6569_s0 + %s5633_s28]]  }
  0x39   :  { %6605 = sst [smem:[#allocation67_spill]] %s5836_s19 }
  0x3a   :  { %s5856_s19 = sld [smem:[%s6569_s0 + %s5632_s22]]   ;;  %s5636_s22 = smov 40  }
  0x3c   :  { %6606 = sst [smem:[#allocation68_spill]] %s5846_s5 }
  0x3d   :  { %6607 = sst [smem:[#allocation69_spill]] %s5851_s14 }
  0x3e   :  { %s5866_s5 = sld [smem:[%s6569_s0 + %s5634_s7]]  }
  0x3f   :  { %s5871_s14 = sld [smem:[%s6569_s0 + %s5635_s15]]  }
  0x40   :  { %6608 = sst [smem:[#allocation70_spill]] %s5856_s19 }
  0x41   :  { %s5876_s19 = sld [smem:[%s6569_s0 + %s5636_s22]]  }
  0x42   :  { %86 = vsyncpa [#allocation3], 0 }
  0x43   :  { %87 = vsyncpa [#allocation6], 0 }
  0x44   :  { %88 = vsyncpa [#allocation9], 0 }
  0x45   :  { %89 = vsyncpa [#allocation12], 0 }
  0x46   :  { %90 = vsyncpa [#allocation15], 0 }
  0x47   :  { %91 = vsyncpa [#allocation18], 0 }
  0x48   :  { %92 = vsyncpa [#allocation21], 0 }
  0x49   :  { %93 = vsyncpa [#allocation24], 0 }
  0x4a   :  { %94 = vsyncpa [#allocation27], 0 }
  0x4b   :  { %95 = vsyncpa [#allocation30], 0 }
  0x4c   :  { %96 = vsyncpa [#allocation33], 0 }
  0x4d   :  { %97 = vsyncpa [#allocation4], 0  ;;  %s5637_s28 = smov [#allocation5]   ;;  %s5638_s2 = smov [#allocation8]  }
  0x4e   :  { %s144_s1 = sshll.u32 %s5637_s28, 4  ;;  %s166_s0 = sshll.u32 %s5638_s2, 4  ;;  %s145_s1 = int_to_ptr.vmem [resolvable:$true] %s144_s1  ;;  %s167_s0 = int_to_ptr.vmem [resolvable:$true] %s166_s0 }
  0x4f   :  { %s5089_s7 = scalar_lea.hbm %s5751_s20, 16 }
  0x50   :  { %p5090_p0 = scmp.ne.s32.totalorder %s5751_s20, %s5089_s7  ;;  %p5093_p1 = scmp.lt.u32.totalorder %s5089_s7, %s5751_s20 }
  0x52   :  { %p5095_p2 = pnand %p5093_p1, %p5090_p0 }
  0x54   :  { %5098 = shalt.err (!%p5095_p2)
}
  0x55   :  { %s5099_s10 = scalar_lea.vmem %s145_s1, 16  ;;  %s5103_s11 = scalar_lea.vmem %s145_s1, 32 }
  0x56   :  { %p5100_p3 = scmp.ne.s32.totalorder %s145_s1, %s5099_s10  ;;  %p5104_p4 = scmp.lt.s32.totalorder %s145_s1, %s145_s1 }
  0x57   :  { %p5105_p5 = scmp.lt.s32.totalorder %s5103_s11, %s5099_s10 }
  0x59   :  { %p5106_p6 = por %p5105_p5, %p5104_p4 }
  0x5b   :  { %p5107_p7 = pnand %p5106_p6, %p5100_p3 }
  0x5d   :  { %5110 = shalt.err (!%p5107_p7)
}
  0x5e   :  { %147 = dma.hbm_to_vmem [thread:$0]  %s5751_s20, 16, %s145_s1, [#allocation6]  }
  0x5f   :  { %s5111_s15 = scalar_lea.hbm %s5766_s9, 128 }
  0x60   :  { %p5112_p8 = scmp.ne.s32.totalorder %s5766_s9, %s5111_s15  ;;  %p5115_p9 = scmp.lt.u32.totalorder %s5111_s15, %s5766_s9 }
  0x62   :  { %p5117_p10 = pnand %p5115_p9, %p5112_p8 }
  0x64   :  { %5120 = shalt.err (!%p5117_p10)
}
  0x65   :  { %s5121_s16 = scalar_lea.vmem %s167_s0, 128  ;;  %p5126_p12 = scmp.lt.s32.totalorder %s167_s0, %s167_s0 }
  0x66   :  { %p5122_p11 = scmp.ne.s32.totalorder %s167_s0, %s5121_s16  ;;  %p5127_p13 = scmp.lt.s32.totalorder %s5121_s16, %s5121_s16 }
  0x68   :  { %p5128_p0 = por %p5127_p13, %p5126_p12 }
  0x6a   :  { %p5129_p1 = pnand %p5128_p0, %p5122_p11 }
  0x6c   :  { %5132 = shalt.err (!%p5129_p1)
}
  0x6d   :  { %169 = dma.hbm_to_vmem [thread:$0]  %s5766_s9, 128, %s167_s0, [#allocation9]  }
  0x6e   :  { %s5639_s18 = smov [#allocation11]   ;;  %s5640_s20 = smov [#allocation14]  }
  0x6f   :  { %s186_s22 = sshll.u32 %s5639_s18, 4  ;;  %s206_s23 = sshll.u32 %s5640_s20, 4  ;;  %s187_s22 = int_to_ptr.vmem [resolvable:$true] %s186_s22  ;;  %s207_s23 = int_to_ptr.vmem [resolvable:$true] %s206_s23 }
  0x70   :  { %s5133_s26 = scalar_lea.hbm %s5776_s3, 16 }
  0x71   :  { %p5134_p2 = scmp.ne.s32.totalorder %s5776_s3, %s5133_s26  ;;  %p5137_p3 = scmp.lt.u32.totalorder %s5133_s26, %s5776_s3 }
  0x73   :  { %p5139_p4 = pnand %p5137_p3, %p5134_p2 }
  0x75   :  { %5142 = shalt.err (!%p5139_p4)
}
  0x76   :  { %s5143_s28 = scalar_lea.vmem %s187_s22, 16  ;;  %s5147_s1 = scalar_lea.vmem %s187_s22, 32 }
  0x77   :  { %p5144_p5 = scmp.ne.s32.totalorder %s187_s22, %s5143_s28  ;;  %p5148_p6 = scmp.lt.s32.totalorder %s187_s22, %s187_s22 }
  0x78   :  { %p5149_p7 = scmp.lt.s32.totalorder %s5147_s1, %s5143_s28 }
  0x7a   :  { %p5150_p8 = por %p5149_p7, %p5148_p6 }
  0x7c   :  { %p5151_p9 = pnand %p5150_p8, %p5144_p5 }
  0x7e   :  { %5154 = shalt.err (!%p5151_p9)
}
  0x7f   :  { %189 = dma.hbm_to_vmem [thread:$0]  %s5776_s3, 16, %s187_s22, [#allocation12]  }
  0x80   :  { %s5155_s9 = scalar_lea.hbm %s5786_s24, 16 }
  0x81   :  { %p5156_p10 = scmp.ne.s32.totalorder %s5786_s24, %s5155_s9  ;;  %p5159_p11 = scmp.lt.u32.totalorder %s5155_s9, %s5786_s24 }
  0x83   :  { %p5161_p12 = pnand %p5159_p11, %p5156_p10 }
  0x85   :  { %5164 = shalt.err (!%p5161_p12)
}
  0x86   :  { %s5165_s2 = scalar_lea.vmem %s207_s23, 16  ;;  %s5169_s0 = scalar_lea.vmem %s207_s23, 32 }
  0x87   :  { %p5166_p13 = scmp.ne.s32.totalorder %s207_s23, %s5165_s2  ;;  %p5170_p0 = scmp.lt.s32.totalorder %s207_s23, %s207_s23 }
  0x88   :  { %p5171_p1 = scmp.lt.s32.totalorder %s5169_s0, %s5165_s2 }
  0x8a   :  { %p5172_p2 = por %p5171_p1, %p5170_p0 }
  0x8c   :  { %p5173_p3 = pnand %p5172_p2, %p5166_p13 }
  0x8e   :  { %5176 = shalt.err (!%p5173_p3)
}
  0x8f   :  { %209 = dma.hbm_to_vmem [thread:$0]  %s5786_s24, 16, %s207_s23, [#allocation15]  }
  0x90   :  { %s5641_s7 = smov [#allocation17]   ;;  %s5642_s10 = smov [#allocation20]  }
  0x91   :  { %s225_s3 = sshll.u32 %s5641_s7, 4  ;;  %s248_s11 = sshll.u32 %s5642_s10, 4  ;;  %s226_s3 = int_to_ptr.vmem [resolvable:$true] %s225_s3  ;;  %s5894_s11 = int_to_ptr.vmem [resolvable:$true] %s248_s11 }
  0x92   :  { %s5177_s15 = scalar_lea.hbm %s5796_s6, 1024 }
  0x93   :  { %p5178_p4 = scmp.ne.s32.totalorder %s5796_s6, %s5177_s15  ;;  %p5181_p5 = scmp.lt.u32.totalorder %s5177_s15, %s5796_s6 }
  0x95   :  { %p5183_p6 = pnand %p5181_p5, %p5178_p4 }
  0x97   :  { %5186 = shalt.err (!%p5183_p6)
}
  0x98   :  { %s5187_s16 = scalar_lea.vmem %s226_s3, 1024  ;;  %p5192_p8 = scmp.lt.s32.totalorder %s226_s3, %s226_s3 }
  0x99   :  { %p5188_p7 = scmp.ne.s32.totalorder %s226_s3, %s5187_s16  ;;  %p5193_p9 = scmp.lt.s32.totalorder %s5187_s16, %s5187_s16 }
  0x9b   :  { %p5194_p10 = por %p5193_p9, %p5192_p8 }
  0x9d   :  { %p5195_p11 = pnand %p5194_p10, %p5188_p7 }
  0x9f   :  { %5198 = shalt.err (!%p5195_p11)
}
  0xa0   :  { %s5643_s24 = smov 64   ;;  %s5644_s18 = smov 4  }
  0xa1   :  { %231 = dma.hbm_to_vmem [thread:$0]  %s5796_s6, 1024, %s226_s3, [#allocation18], %s5643_s24, %s5643_s24, %s5644_s18  }
  0xa2   :  { %s5199_s22 = scalar_lea.hbm %s5806_s21, 48 }
  0xa3   :  { %p5200_p12 = scmp.ne.s32.totalorder %s5806_s21, %s5199_s22  ;;  %p5203_p13 = scmp.lt.u32.totalorder %s5199_s22, %s5806_s21 }
  0xa5   :  { %p5205_p0 = pnand %p5203_p13, %p5200_p12 }
  0xa7   :  { %5208 = shalt.err (!%p5205_p0)
}
  0xa8   :  { %s5209_s20 = scalar_lea.vmem %s5894_s11, 48  ;;  %s5213_s23 = scalar_lea.vmem %s5894_s11, 64 }
  0xa9   :  { %p5210_p1 = scmp.ne.s32.totalorder %s5894_s11, %s5209_s20  ;;  %p5214_p2 = scmp.lt.s32.totalorder %s5894_s11, %s5894_s11 }
  0xaa   :  { %p5215_p3 = scmp.lt.s32.totalorder %s5213_s23, %s5209_s20 }
  0xac   :  { %p5216_p4 = por %p5215_p3, %p5214_p2 }
  0xae   :  { %p5217_p5 = pnand %p5216_p4, %p5210_p1 }
  0xb0   :  { %5220 = shalt.err (!%p5217_p5)
}
  0xb1   :  { %251 = dma.hbm_to_vmem [thread:$0]  %s5806_s21, 48, %s5894_s11, [#allocation21]  }
  0xb2   :  { %s5645_s6 = smov [#allocation23]   ;;  %s5646_s28 = smov [#allocation26]  }
  0xb3   :  { %s272_s26 = sshll.u32 %s5645_s6, 4  ;;  %s292_s1 = sshll.u32 %s5646_s28, 4  ;;  %s273_s26 = int_to_ptr.vmem [resolvable:$true] %s272_s26  ;;  %s293_s1 = int_to_ptr.vmem [resolvable:$true] %s292_s1 }
  0xb4   :  { %s5221_s9 = scalar_lea.hbm %s5821_s29, 32 }
  0xb5   :  { %p5222_p6 = scmp.ne.s32.totalorder %s5821_s29, %s5221_s9  ;;  %p5225_p7 = scmp.lt.u32.totalorder %s5221_s9, %s5821_s29 }
  0xb7   :  { %p5227_p8 = pnand %p5225_p7, %p5222_p6 }
  0xb9   :  { %5230 = shalt.err (!%p5227_p8)
}
  0xba   :  { %s5231_s2 = scalar_lea.vmem %s273_s26, 32  ;;  %p5236_p10 = scmp.lt.s32.totalorder %s273_s26, %s273_s26 }
  0xbb   :  { %p5232_p9 = scmp.ne.s32.totalorder %s273_s26, %s5231_s2  ;;  %p5237_p11 = scmp.lt.s32.totalorder %s5231_s2, %s5231_s2 }
  0xbd   :  { %p5238_p12 = por %p5237_p11, %p5236_p10 }
  0xbf   :  { %p5239_p13 = pnand %p5238_p12, %p5232_p9 }
  0xc1   :  { %5242 = shalt.err (!%p5239_p13)
}
  0xc2   :  { %275 = dma.hbm_to_vmem [thread:$0]  %s5821_s29, 32, %s273_s26, [#allocation24]  }
  0xc3   :  { %s5243_s21 = scalar_lea.hbm %s5831_s13, 16 }
  0xc4   :  { %p5244_p0 = scmp.ne.s32.totalorder %s5831_s13, %s5243_s21  ;;  %p5247_p1 = scmp.lt.u32.totalorder %s5243_s21, %s5831_s13 }
  0xc6   :  { %p5249_p2 = pnand %p5247_p1, %p5244_p0 }
  0xc8   :  { %5252 = shalt.err (!%p5249_p2)
}
  0xc9   :  { %s5253_s0 = scalar_lea.vmem %s293_s1, 16  ;;  %s5257_s7 = scalar_lea.vmem %s293_s1, 32 }
  0xca   :  { %p5254_p3 = scmp.ne.s32.totalorder %s293_s1, %s5253_s0  ;;  %p5258_p4 = scmp.lt.s32.totalorder %s293_s1, %s293_s1 }
  0xcb   :  { %p5259_p5 = scmp.lt.s32.totalorder %s5257_s7, %s5253_s0 }
  0xcd   :  { %p5260_p6 = por %p5259_p5, %p5258_p4 }
  0xcf   :  { %p5261_p7 = pnand %p5260_p6, %p5254_p3 }
  0xd1   :  { %5264 = shalt.err (!%p5261_p7)
}
  0xd2   :  { %295 = dma.hbm_to_vmem [thread:$0]  %s5831_s13, 16, %s293_s1, [#allocation27]  }
  0xd3   :  { %s5647_s3 = smov [#allocation29]   ;;  %s5648_s10 = smov [#allocation32]  }
  0xd4   :  { %s312_s29 = sshll.u32 %s5647_s3, 4  ;;  %s335_s11 = sshll.u32 %s5648_s10, 4  ;;  %s313_s29 = int_to_ptr.vmem [resolvable:$true] %s312_s29  ;;  %s5921_s11 = int_to_ptr.vmem [resolvable:$true] %s335_s11 }
  0xd5   :  { %s5265_s15 = scalar_lea.hbm %s5841_s4, 16 }
  0xd6   :  { %p5266_p8 = scmp.ne.s32.totalorder %s5841_s4, %s5265_s15  ;;  %p5269_p9 = scmp.lt.u32.totalorder %s5265_s15, %s5841_s4 }
  0xd8   :  { %p5271_p10 = pnand %p5269_p9, %p5266_p8 }
  0xda   :  { %5274 = shalt.err (!%p5271_p10)
}
  0xdb   :  { %s5275_s16 = scalar_lea.vmem %s313_s29, 16  ;;  %s5279_s22 = scalar_lea.vmem %s313_s29, 32 }
  0xdc   :  { %p5276_p11 = scmp.ne.s32.totalorder %s313_s29, %s5275_s16  ;;  %p5280_p12 = scmp.lt.s32.totalorder %s313_s29, %s313_s29 }
  0xdd   :  { %p5281_p13 = scmp.lt.s32.totalorder %s5279_s22, %s5275_s16 }
  0xdf   :  { %p5282_p0 = por %p5281_p13, %p5280_p12 }
  0xe1   :  { %p5283_p1 = pnand %p5282_p0, %p5276_p11 }
  0xe3   :  { %5286 = shalt.err (!%p5283_p1)
}
  0xe4   :  { %315 = dma.hbm_to_vmem [thread:$0]  %s5841_s4, 16, %s313_s29, [#allocation30]  }
  0xe5   :  { %s5287_s13 = scalar_lea.hbm %s5861_s17, 1024 }
  0xe6   :  { %p5288_p2 = scmp.ne.s32.totalorder %s5861_s17, %s5287_s13  ;;  %p5291_p3 = scmp.lt.u32.totalorder %s5287_s13, %s5861_s17 }
  0xe8   :  { %p5293_p4 = pnand %p5291_p3, %p5288_p2 }
  0xea   :  { %5296 = shalt.err (!%p5293_p4)
}
  0xeb   :  { %s5297_s20 = scalar_lea.vmem %s5921_s11, 1024  ;;  %p5302_p6 = scmp.lt.s32.totalorder %s5921_s11, %s5921_s11 }
  0xec   :  { %p5298_p5 = scmp.ne.s32.totalorder %s5921_s11, %s5297_s20  ;;  %p5303_p7 = scmp.lt.s32.totalorder %s5297_s20, %s5297_s20 }
  0xee   :  { %p5304_p8 = por %p5303_p7, %p5302_p6 }
  0xf0   :  { %p5305_p9 = pnand %p5304_p8, %p5298_p5 }
  0xf2   :  { %5308 = shalt.err (!%p5305_p9)
}
  0xf3   :  { %341 = dma.hbm_to_vmem [thread:$0]  %s5861_s17, 1024, %s5921_s11, [#allocation33], %s5643_s24, %s5643_s24, %s5644_s18  }
  0xf4   :  { %s5649_s4 = smov [#allocation2]   ;;  %s5650_s6 = smov [#allocation7]  }
  0xf5   :  { %s113_s23 = sshll.u32 %s5649_s4, 4  ;;  %s154_s26 = sshll.u32 %s5650_s6, 4  ;;  %s114_s23 = int_to_ptr.vmem [resolvable:$true] %s113_s23  ;;  %s155_s26 = int_to_ptr.vmem [resolvable:$true] %s154_s26 }
  0xf6   :  { %s5309_s28 = scalar_lea.hbm %s5701_s25, 1024 }
  0xf7   :  { %p5310_p10 = scmp.ne.s32.totalorder %s5701_s25, %s5309_s28  ;;  %p5313_p11 = scmp.lt.u32.totalorder %s5309_s28, %s5701_s25 }
  0xf9   :  { %p5315_p12 = pnand %p5313_p11, %p5310_p10 }
  0xfb   :  { %5318 = shalt.err (!%p5315_p12)
}
  0xfc   :  { %s5319_s1 = scalar_lea.vmem %s114_s23, 1024  ;;  %p5324_p0 = scmp.lt.s32.totalorder %s114_s23, %s114_s23 }
  0xfd   :  { %p5320_p13 = scmp.ne.s32.totalorder %s114_s23, %s5319_s1  ;;  %p5325_p1 = scmp.lt.s32.totalorder %s5319_s1, %s5319_s1 }
  0xff   :  { %p5326_p2 = por %p5325_p1, %p5324_p0 }
 0x101   :  { %p5327_p3 = pnand %p5326_p2, %p5320_p13 }
 0x103   :  { %5330 = shalt.err (!%p5327_p3)
}
 0x104   :  { %119 = dma.hbm_to_vmem [thread:$0]  %s5701_s25, 1024, %s114_s23, [#allocation3], %s5643_s24, %s5643_s24, %s5644_s18  }
 0x105   :  { %s5331_s17 = scalar_lea.hbm %s5756_s27, 16 }
 0x106   :  { %p5332_p4 = scmp.ne.s32.totalorder %s5756_s27, %s5331_s17  ;;  %p5335_p5 = scmp.lt.u32.totalorder %s5331_s17, %s5756_s27 }
 0x108   :  { %p5337_p6 = pnand %p5335_p5, %p5332_p4 }
 0x10a   :  { %5340 = shalt.err (!%p5337_p6)
}
 0x10b   :  { %s5341_s9 = scalar_lea.vmem %s155_s26, 16  ;;  %s5345_s2 = scalar_lea.vmem %s155_s26, 32 }
 0x10c   :  { %p5342_p7 = scmp.ne.s32.totalorder %s155_s26, %s5341_s9  ;;  %p5346_p8 = scmp.lt.s32.totalorder %s155_s26, %s155_s26 }
 0x10d   :  { %p5347_p9 = scmp.lt.s32.totalorder %s5345_s2, %s5341_s9 }
 0x10f   :  { %p5348_p10 = por %p5347_p9, %p5346_p8 }
 0x111   :  { %p5349_p11 = pnand %p5348_p10, %p5342_p7 }
 0x113   :  { %5352 = shalt.err (!%p5349_p11)
}
 0x114   :  { %157 = dma.hbm_to_vmem [thread:$0]  %s5756_s27, 16, %s155_s26, [#allocation6]  }
 0x115   :  { %s5651_s21 = smov [#allocation10]   ;;  %s5652_s0 = smov [#allocation13]  }
 0x116   :  { %s176_s25 = sshll.u32 %s5651_s21, 4  ;;  %s196_s7 = sshll.u32 %s5652_s0, 4  ;;  %s177_s25 = int_to_ptr.vmem [resolvable:$true] %s176_s25  ;;  %s197_s7 = int_to_ptr.vmem [resolvable:$true] %s196_s7 }
 0x117   :  { %s5353_s3 = scalar_lea.hbm %s5771_s8, 16 }
 0x118   :  { %p5354_p12 = scmp.ne.s32.totalorder %s5771_s8, %s5353_s3  ;;  %p5357_p13 = scmp.lt.u32.totalorder %s5353_s3, %s5771_s8 }
 0x11a   :  { %p5359_p0 = pnand %p5357_p13, %p5354_p12 }
 0x11c   :  { %5362 = shalt.err (!%p5359_p0)
}
 0x11d   :  { %s5363_s29 = scalar_lea.vmem %s177_s25, 16  ;;  %s5367_s10 = scalar_lea.vmem %s177_s25, 32 }
 0x11e   :  { %p5364_p1 = scmp.ne.s32.totalorder %s177_s25, %s5363_s29  ;;  %p5368_p2 = scmp.lt.s32.totalorder %s177_s25, %s177_s25 }
 0x11f   :  { %p5369_p3 = scmp.lt.s32.totalorder %s5367_s10, %s5363_s29 }
 0x121   :  { %p5370_p4 = por %p5369_p3, %p5368_p2 }
 0x123   :  { %p5371_p5 = pnand %p5370_p4, %p5364_p1 }
 0x125   :  { %5374 = shalt.err (!%p5371_p5)
}
 0x126   :  { %179 = dma.hbm_to_vmem [thread:$0]  %s5771_s8, 16, %s177_s25, [#allocation9]  }
 0x127   :  { %s5375_s27 = scalar_lea.hbm %s5781_s12, 16 }
 0x128   :  { %p5376_p6 = scmp.ne.s32.totalorder %s5781_s12, %s5375_s27  ;;  %p5379_p7 = scmp.lt.u32.totalorder %s5375_s27, %s5781_s12 }
 0x12a   :  { %p5381_p8 = pnand %p5379_p7, %p5376_p6 }
 0x12c   :  { %5384 = shalt.err (!%p5381_p8)
}
 0x12d   :  { %s5385_s11 = scalar_lea.vmem %s197_s7, 16  ;;  %s5389_s15 = scalar_lea.vmem %s197_s7, 32 }
 0x12e   :  { %p5386_p9 = scmp.ne.s32.totalorder %s197_s7, %s5385_s11  ;;  %p5390_p10 = scmp.lt.s32.totalorder %s197_s7, %s197_s7 }
 0x12f   :  { %p5391_p11 = scmp.lt.s32.totalorder %s5389_s15, %s5385_s11 }
 0x131   :  { %p5392_p12 = por %p5391_p11, %p5390_p10 }
 0x133   :  { %p5393_p13 = pnand %p5392_p12, %p5386_p9 }
 0x135   :  { %5396 = shalt.err (!%p5393_p13)
}
 0x136   :  { %199 = dma.hbm_to_vmem [thread:$0]  %s5781_s12, 16, %s197_s7, [#allocation12]  }
 0x137   :  { %s5653_s16 = smov [#allocation16]   ;;  %s5654_s22 = smov [#allocation19]  }
 0x138   :  { %s216_s8 = sshll.u32 %s5653_s16, 4  ;;  %s238_s13 = sshll.u32 %s5654_s22, 4  ;;  %s217_s8 = int_to_ptr.vmem [resolvable:$true] %s216_s8  ;;  %s239_s13 = int_to_ptr.vmem [resolvable:$true] %s238_s13 }
 0x139   :  { %s5397_s20 = scalar_lea.hbm %s5791_s30, 16 }
 0x13a   :  { %p5398_p0 = scmp.ne.s32.totalorder %s5791_s30, %s5397_s20  ;;  %p5401_p1 = scmp.lt.u32.totalorder %s5397_s20, %s5791_s30 }
 0x13c   :  { %p5403_p2 = pnand %p5401_p1, %p5398_p0 }
 0x13e   :  { %5406 = shalt.err (!%p5403_p2)
}
 0x13f   :  { %s5407_s4 = scalar_lea.vmem %s217_s8, 16  ;;  %s5411_s23 = scalar_lea.vmem %s217_s8, 32 }
 0x140   :  { %p5408_p3 = scmp.ne.s32.totalorder %s217_s8, %s5407_s4  ;;  %p5412_p4 = scmp.lt.s32.totalorder %s217_s8, %s217_s8 }
 0x141   :  { %p5413_p5 = scmp.lt.s32.totalorder %s5411_s23, %s5407_s4 }
 0x143   :  { %p5414_p6 = por %p5413_p5, %p5412_p4 }
 0x145   :  { %p5415_p7 = pnand %p5414_p6, %p5408_p3 }
 0x147   :  { %5418 = shalt.err (!%p5415_p7)
}
 0x148   :  { %s6609_s12 = sld [smem:[#allocation63_spill]] }
 0x149   :  { %219 = dma.hbm_to_vmem [thread:$0]  %s5791_s30, 16, %s217_s8, [#allocation15]  }
 0x14e   :  { %s5419_s6 = scalar_lea.hbm %s6609_s12, 16 }
 0x14f   :  { %p5420_p8 = scmp.ne.s32.totalorder %s6609_s12, %s5419_s6  ;;  %p5423_p9 = scmp.lt.u32.totalorder %s5419_s6, %s6609_s12 }
 0x151   :  { %p5425_p10 = pnand %p5423_p9, %p5420_p8 }
 0x153   :  { %5428 = shalt.err (!%p5425_p10)
}
 0x154   :  { %s5429_s26 = scalar_lea.vmem %s239_s13, 16  ;;  %s5433_s28 = scalar_lea.vmem %s239_s13, 32 }
 0x155   :  { %p5430_p11 = scmp.ne.s32.totalorder %s239_s13, %s5429_s26  ;;  %p5434_p12 = scmp.lt.s32.totalorder %s239_s13, %s239_s13 }
 0x156   :  { %p5435_p13 = scmp.lt.s32.totalorder %s5433_s28, %s5429_s26 }
 0x158   :  { %p5436_p0 = por %p5435_p13, %p5434_p12 }
 0x15a   :  { %p5437_p1 = pnand %p5436_p0, %p5430_p11 }
 0x15c   :  { %5440 = shalt.err (!%p5437_p1)
}
 0x15d   :  { %s6610_s1 = sld [smem:[#allocation64_spill]]  ;;  %s5655_s17 = smov [#allocation22]  }
 0x15e   :  { %241 = dma.hbm_to_vmem [thread:$0]  %s6609_s12, 16, %s239_s13, [#allocation18]  }
 0x15f   :  { %s257_s30 = sshll.u32 %s5655_s17, 4  ;;  %s5656_s9 = smov [#allocation25]   ;;  %s258_s30 = int_to_ptr.vmem [resolvable:$true] %s257_s30 }
 0x160   :  { %s282_s2 = sshll.u32 %s5656_s9, 4  ;;  %s283_s2 = int_to_ptr.vmem [resolvable:$true] %s282_s2 }
 0x163   :  { %s5441_s21 = scalar_lea.hbm %s6610_s1, 1024 }
 0x164   :  { %p5442_p2 = scmp.ne.s32.totalorder %s6610_s1, %s5441_s21  ;;  %p5445_p3 = scmp.lt.u32.totalorder %s5441_s21, %s6610_s1 }
 0x166   :  { %p5447_p4 = pnand %p5445_p3, %p5442_p2 }
 0x168   :  { %5450 = shalt.err (!%p5447_p4)
}
 0x169   :  { %s5451_s25 = scalar_lea.vmem %s258_s30, 1024  ;;  %p5456_p6 = scmp.lt.s32.totalorder %s258_s30, %s258_s30 }
 0x16a   :  { %p5452_p5 = scmp.ne.s32.totalorder %s258_s30, %s5451_s25  ;;  %p5457_p7 = scmp.lt.s32.totalorder %s5451_s25, %s5451_s25 }
 0x16c   :  { %p5458_p8 = por %p5457_p7, %p5456_p6 }
 0x16e   :  { %p5459_p9 = pnand %p5458_p8, %p5452_p5 }
 0x170   :  { %5462 = shalt.err (!%p5459_p9)
}
 0x171   :  { %s6611_s0 = sld [smem:[#allocation66_spill]] }
 0x172   :  { %263 = dma.hbm_to_vmem [thread:$0]  %s6610_s1, 1024, %s258_s30, [#allocation21], %s5643_s24, %s5643_s24, %s5644_s18  }
 0x177   :  { %s5463_s7 = scalar_lea.hbm %s6611_s0, 16 }
 0x178   :  { %p5464_p10 = scmp.ne.s32.totalorder %s6611_s0, %s5463_s7  ;;  %p5467_p11 = scmp.lt.u32.totalorder %s5463_s7, %s6611_s0 }
 0x17a   :  { %p5469_p12 = pnand %p5467_p11, %p5464_p10 }
 0x17c   :  { %5472 = shalt.err (!%p5469_p12)
}
 0x17d   :  { %s5473_s3 = scalar_lea.vmem %s283_s2, 16  ;;  %s5477_s29 = scalar_lea.vmem %s283_s2, 32 }
 0x17e   :  { %p5474_p13 = scmp.ne.s32.totalorder %s283_s2, %s5473_s3  ;;  %p5478_p0 = scmp.lt.s32.totalorder %s283_s2, %s283_s2 }
 0x17f   :  { %p5479_p1 = scmp.lt.s32.totalorder %s5477_s29, %s5473_s3 }
 0x181   :  { %p5480_p2 = por %p5479_p1, %p5478_p0 }
 0x183   :  { %p5481_p3 = pnand %p5480_p2, %p5474_p13 }
 0x185   :  { %5484 = shalt.err (!%p5481_p3)
}
 0x186   :  { %s6612_s10 = sld [smem:[#allocation67_spill]]  ;;  %s5657_s27 = smov [#allocation28]  }
 0x187   :  { %285 = dma.hbm_to_vmem [thread:$0]  %s6611_s0, 16, %s283_s2, [#allocation24]  }
 0x188   :  { %s302_s11 = sshll.u32 %s5657_s27, 4  ;;  %s5658_s15 = smov [#allocation31]   ;;  %s303_s11 = int_to_ptr.vmem [resolvable:$true] %s302_s11 }
 0x189   :  { %s322_s16 = sshll.u32 %s5658_s15, 4  ;;  %s323_s16 = int_to_ptr.vmem [resolvable:$true] %s322_s16 }
 0x18c   :  { %s5485_s8 = scalar_lea.hbm %s6612_s10, 16 }
 0x18d   :  { %p5486_p4 = scmp.ne.s32.totalorder %s6612_s10, %s5485_s8  ;;  %p5489_p5 = scmp.lt.u32.totalorder %s5485_s8, %s6612_s10 }
 0x18f   :  { %p5491_p6 = pnand %p5489_p5, %p5486_p4 }
 0x191   :  { %5494 = shalt.err (!%p5491_p6)
}
 0x192   :  { %s5495_s22 = scalar_lea.vmem %s303_s11, 16  ;;  %s5499_s13 = scalar_lea.vmem %s303_s11, 32 }
 0x193   :  { %p5496_p7 = scmp.ne.s32.totalorder %s303_s11, %s5495_s22  ;;  %p5500_p8 = scmp.lt.s32.totalorder %s303_s11, %s303_s11 }
 0x194   :  { %p5501_p9 = scmp.lt.s32.totalorder %s5499_s13, %s5495_s22 }
 0x196   :  { %p5502_p10 = por %p5501_p9, %p5500_p8 }
 0x198   :  { %p5503_p11 = pnand %p5502_p10, %p5496_p7 }
 0x19a   :  { %5506 = shalt.err (!%p5503_p11)
}
 0x19b   :  { %s6613_s20 = sld [smem:[#allocation68_spill]] }
 0x19c   :  { %305 = dma.hbm_to_vmem [thread:$0]  %s6612_s10, 16, %s303_s11, [#allocation27]  }
 0x1a1   :  { %s5507_s4 = scalar_lea.hbm %s6613_s20, 16 }
 0x1a2   :  { %p5508_p12 = scmp.ne.s32.totalorder %s6613_s20, %s5507_s4  ;;  %p5511_p13 = scmp.lt.u32.totalorder %s5507_s4, %s6613_s20 }
 0x1a4   :  { %p5513_p0 = pnand %p5511_p13, %p5508_p12 }
 0x1a6   :  { %5516 = shalt.err (!%p5513_p0)
}
 0x1a7   :  { %s5517_s23 = scalar_lea.vmem %s323_s16, 16  ;;  %s5521_s12 = scalar_lea.vmem %s323_s16, 32 }
 0x1a8   :  { %p5518_p1 = scmp.ne.s32.totalorder %s323_s16, %s5517_s23  ;;  %p5522_p2 = scmp.lt.s32.totalorder %s323_s16, %s323_s16 }
 0x1a9   :  { %p5523_p3 = scmp.lt.s32.totalorder %s5521_s12, %s5517_s23 }
 0x1ab   :  { %p5524_p4 = por %p5523_p3, %p5522_p2 }
 0x1ad   :  { %p5525_p5 = pnand %p5524_p4, %p5518_p1 }
 0x1af   :  { %5528 = shalt.err (!%p5525_p5)
}
 0x1b0   :  { %325 = dma.hbm_to_vmem [thread:$0]  %s6613_s20, 16, %s323_s16, [#allocation30]  }
 0x1b1   :  { %s5659_s6 = smov [#allocation34]   ;;  %s5529_s28 = scalar_lea.hbm %s5866_s5, 1024 }
 0x1b2   :  { %s347_s26 = sshll.u32 %s5659_s6, 4  ;;  %p5530_p6 = scmp.ne.s32.totalorder %s5866_s5, %s5529_s28  ;;  %s348_s26 = int_to_ptr.vmem [resolvable:$true] %s347_s26 }
 0x1b3   :  { %p5533_p7 = scmp.lt.u32.totalorder %s5529_s28, %s5866_s5 }
 0x1b5   :  { %p5535_p8 = pnand %p5533_p7, %p5530_p6 }
 0x1b7   :  { %5538 = shalt.err (!%p5535_p8)
}
 0x1b8   :  { %s5539_s1 = scalar_lea.vmem %s348_s26, 1024  ;;  %p5544_p10 = scmp.lt.s32.totalorder %s348_s26, %s348_s26 }
 0x1b9   :  { %p5540_p9 = scmp.ne.s32.totalorder %s348_s26, %s5539_s1  ;;  %p5545_p11 = scmp.lt.s32.totalorder %s5539_s1, %s5539_s1 }
 0x1bb   :  { %p5546_p12 = por %p5545_p11, %p5544_p10 }
 0x1bd   :  { %p5547_p13 = pnand %p5546_p12, %p5540_p9 }
 0x1bf   :  { %5550 = shalt.err (!%p5547_p13)
}
 0x1c0   :  { %353 = dma.hbm_to_vmem [thread:$0]  %s5866_s5, 1024, %s348_s26, [#allocation33], %s5643_s24, %s5643_s24, %s5644_s18  }
 0x1c1   :  { %5573 = dma.done.wait [#allocation3], 1024  }
 0x1c2   :  { %5574 = vsyncadd [#allocation3], 4294966272 }
 0x1c3   :  { %5575 = dma.done.wait [#allocation6], 32  }
 0x1c4   :  { %5576 = vsyncadd [#allocation6], 4294967264 }
 0x1c5   :  { %5577 = dma.done.wait [#allocation9], 144  }
 0x1c6   :  { %5578 = vsyncadd [#allocation9], 4294967152 }
 0x1c7   :  { %5579 = dma.done.wait [#allocation12], 32  }
 0x1c8   :  { %5580 = vsyncadd [#allocation12], 4294967264 }
 0x1c9   :  { %5581 = dma.done.wait [#allocation15], 32  }
 0x1ca   :  { %5582 = vsyncadd [#allocation15], 4294967264 }
 0x1cb   :  { %5583 = dma.done.wait [#allocation18], 1040  }
 0x1cc   :  { %5584 = vsyncadd [#allocation18], 4294966256 }
 0x1cd   :  { %5585 = dma.done.wait [#allocation21], 1072  }
 0x1ce   :  { %5586 = vsyncadd [#allocation21], 4294966224 }
 0x1cf   :  { %5587 = dma.done.wait [#allocation24], 48  }
 0x1d0   :  { %5588 = vsyncadd [#allocation24], 4294967248 }
 0x1d1   :  { %5589 = dma.done.wait [#allocation27], 32  }
 0x1d2   :  { %5590 = vsyncadd [#allocation27], 4294967264 }
 0x1d3   :  { %5591 = dma.done.wait [#allocation30], 32  }
 0x1d4   :  { %5592 = vsyncadd [#allocation30], 4294967264 }
 0x1d5   :  { %5593 = dma.done.wait [#allocation33], 2048  }
 0x1d6   :  { %5594 = vsyncadd [#allocation33], 4294965248  ;;  %s6614_s5 = sld [smem:[#allocation62_spill]]  ;;  %v5660_v0 = vmov 0   ;;  %v421_v6 = vld [vmem:[%s5871_s14 + $0x8] sm:$0xff]  ;;  %vm524_vm0 = vcmask 523264   ;;  %v573_v17 = vlaneseq }
 0x1d7   :  { %528 = vmatprep.subr.bf16.mxu0 %v5660_v0  ;;  %920 = vmatprep.mubr.bf16.mxu1 %v5660_v0  ;;  %v451_v7 = vpack.c.bf16 %v421_v6, %v421_v6  ;;  %s6615_s18 = sld [smem:[#allocation50_spill]]  ;;  %v420_v15 = vld [vmem:[%s5871_s14] sm:$0xff]  ;;  %vm6584_vm1 = vcmask 1040384   ;;  %vm582_vm2 = vcmask 1044480   ;;  %vm6585_vm3 = vcmask 1041408   ;;  %s6616_s14 = sld [smem:[#allocation65_spill]] }
 0x1d8   :  { %4745 = vset.pattern.permute.xlu1 %v5660_v0  ;;  %4744 = vset.pattern.permute.xlu0 %v5660_v0  ;;  %v450_v16 = vpack.c.bf16 %v420_v15, %v420_v15  ;;  %v6023_v18 = vshrl.u32 %v573_v17, 7  ;;  %v586_v19 = vld [vmem:[#allocation8] sm:$0x1f]  ;;  %vm584_vm4 = vcmask 1045504   ;;  %v4049_v53 = vld [vmem:[#allocation14] ss:$0 sm:$0xff] }
 0x1d9   :  { %4048 = vmatprep.mubr.msk.bf16.mxu0 %vm524_vm0, %v451_v7  ;;  %v588_v22 = vrot.slane %v586_v19, 3  ;;  %v4050_v55 = vld [vmem:[#allocation13] ss:$0 sm:$0xff]  ;;  %vm5662_vm5 = vmmov 0   ;;  %vm974_vm6 = vcmask 261120   ;;  %s5664_s17 = smov 96  }
 0x1da   :  { %v6026_v20 = vsub.s32 0, %v6023_v18  ;;  %vm644_vm9 = vcmp.lt.s32.totalorder %v6023_v18, 5  ;;  %vm653_vm11 = vcmp.ge.s32.totalorder %v6023_v18, 5  ;;  %s5665_s30 = smov 32   ;;  %s6617_s9 = sld [smem:[#allocation69_spill]] }
 0x1db   :  { %v590_v35 = vsel %vm582_vm2, %v586_v19, %v588_v22  ;;  %s6620_s2 = sld [smem:[#allocation70_spill]]  ;;  %s6624_s21 = sld [smem:[#allocation48_spill]] }
 0x1dc   :  { %v4761_v1 = vld [vmem:[%s6614_s5] sm:$0xff]   ;;  %v4762_v2 = vld [vmem:[%s6614_s5 + $0x8] sm:$0xff]   ;;  %v4763_v3 = vld [vmem:[%s6614_s5 + $0x10] sm:$0xff]   ;;  %s6625_s25 = sld [smem:[#allocation53_spill]]  ;;  %s6626_s0 = sld [smem:[#allocation57_spill]] }
 0x1dd   :  { %529 = vmatpush1.bf16.msra.mxu0 %v4761_v1  ;;  %v4764_v4 = vld [vmem:[%s6614_s5 + $0x18] sm:$0xff]   ;;  %v4765_v5 = vld [vmem:[%s6614_s5 + $0x20] sm:$0xff]   ;;  %v4766_v8 = vld [vmem:[%s6614_s5 + $0x28] sm:$0xff]   ;;  %s6627_s7 = sld [smem:[#allocation56_spill]]  ;;  %s6628_s3 = sld [smem:[#allocation52_spill]] }
 0x1de   :  { %530 = vmatprep.subr.bf16.mxu0 %v5660_v0  ;;  %v4767_v9 = vld [vmem:[%s6614_s5 + $0x30] sm:$0xff]   ;;  %v4768_v10 = vld [vmem:[%s6614_s5 + $0x38] sm:$0xff]   ;;  %v4769_v11 = vld [vmem:[%s6614_s5 + $0x40] sm:$0xff]   ;;  %s6634_s29 = sld [smem:[#allocation60_spill]]  ;;  %s6635_s10 = sld [smem:[#allocation59_spill]] }
 0x1df   :  { %v4770_v12 = vld [vmem:[%s6614_s5 + $0x48] sm:$0xff]   ;;  %v4771_v13 = vld [vmem:[%s6614_s5 + $0x50] sm:$0xff]   ;;  %v4772_v14 = vld [vmem:[%s6614_s5 + $0x58] sm:$0xff]   ;;  %s6636_s27 = sld [smem:[#allocation58_spill]]  ;;  %s6637_s11 = sld [smem:[#allocation61_spill]] }
 0x1e0   :  { %v568_v21 = vld [vmem:[%s6615_s18] sm:$0x1]  ;;  %v4773_v63 = vld [vmem:[%s6616_s14 + $0x4] ss:$12 sps:$4 sm:$0xff]   ;;  %v4782_v15 = vld [vmem:[%s6616_s14 + $0x4c] ss:$12 sps:$4 sm:$0xff]  }
 0x1e1   :  { %531 = vmatpush1.bf16.msra.mxu0 %v4762_v2  ;;  %v576_v24 = vrot.slane %v568_v21, %v6026_v20  ;;  %v4775_v1 = vld [vmem:[%s6616_s14] ss:$12 sps:$4 sm:$0xff]   ;;  %v4776_v2 = vld [vmem:[%s6616_s14 + $0x1c] ss:$12 sps:$4 sm:$0xff]   ;;  %888 = vmatprep.subr.bf16.mxu1 %v4773_v63  ;;  %v4785_v19 = vld [vmem:[%s6616_s14 + $0x64] ss:$12 sps:$4 sm:$0xff]  }
 0x1e2   :  { %532 = vmatprep.subr.bf16.mxu0 %v5660_v0  ;;  %889 = vmatpush1.bf16.msra.mxu1 %v4775_v1  ;;  %s6638_s15 = sld [smem:[#allocation54_spill]]  ;;  %s6639_s16 = sld [smem:[#allocation55_spill]] }
 0x1e3   :  { %890 = vmatprep.subr.bf16.mxu1 %v4776_v2  ;;  %s6640_s8 = sld [smem:[#allocation49_spill]]  ;;  %s5667_s20 = smov [#allocation35]  }
 0x1e4   :  { %s3977_s4 = sshll.u32 %s5667_s20, 4  ;;  %s3978_s4 = int_to_ptr.vmem [resolvable:$true] %s3977_s4 }
 0x1e5   :  { %533 = vmatpush1.bf16.msra.mxu0 %v4763_v3  ;;  %v4778_v3 = vld [vmem:[%s6616_s14 + $0x18] ss:$12 sps:$4 sm:$0xff]   ;;  %s5551_s6 = scalar_lea.vmem %s3978_s4, 16  ;;  %s5555_s26 = scalar_lea.vmem %s3978_s4, 32 }
 0x1e6   :  { %534 = vmatprep.subr.bf16.mxu0 %v5660_v0  ;;  %891 = vmatpush1.bf16.msra.mxu1 %v4778_v3  ;;  %p5552_p0 = scmp.ne.s32.totalorder %s3978_s4, %s5551_s6  ;;  %p5556_p1 = scmp.lt.s32.totalorder %s3978_s4, %s3978_s4 }
 0x1e7   :  { %p5557_p2 = scmp.lt.s32.totalorder %s5555_s26, %s5551_s6 }
 0x1e9   :  { %535 = vmatpush1.bf16.msra.mxu0 %v4764_v4  ;;  %p5558_p3 = por %p5557_p2, %p5556_p1 }
 0x1ea   :  { %536 = vmatprep.subr.bf16.mxu0 %v5660_v0 }
 0x1eb   :  { %p5559_p4 = pnand %p5558_p3, %p5552_p0 }
 0x1ed   :  { %537 = vmatpush1.bf16.msra.mxu0 %v4765_v5 }
 0x1ee   :  { %538 = vmatprep.subr.bf16.mxu0 %v5660_v0 }
 0x1f1   :  { %539 = vmatpush1.bf16.msra.mxu0 %v4766_v8 }
 0x1f2   :  { %540 = vmatprep.subr.bf16.mxu0 %v5660_v0 }
 0x1f5   :  { %541 = vmatpush1.bf16.msra.mxu0 %v4767_v9 }
 0x1f6   :  { %542 = vmatprep.subr.bf16.mxu0 %v5660_v0 }
 0x1f9   :  { %543 = vmatpush1.bf16.msra.mxu0 %v4768_v10 }
 0x1fa   :  { %544 = vmatprep.subr.bf16.mxu0 %v5660_v0 }
 0x1fd   :  { %545 = vmatpush1.bf16.msra.mxu0 %v4769_v11 }
 0x1fe   :  { %546 = vmatprep.subr.bf16.mxu0 %v5660_v0 }
 0x201   :  { %547 = vmatpush1.bf16.msra.mxu0 %v4770_v12 }
 0x202   :  { %548 = vmatprep.subr.bf16.mxu0 %v5660_v0 }
 0x205   :  { %549 = vmatpush1.bf16.msra.mxu0 %v4771_v13  ;;  %v4779_v13 = vld [vmem:[%s6616_s14 + $0x34] ss:$12 sps:$4 sm:$0xff]  }
 0x206   :  { %550 = vmatprep.subr.bf16.mxu0 %v5660_v0  ;;  %892 = vmatprep.subr.bf16.mxu1 %v4779_v13 }
 0x209   :  { %551 = vmatpush1.bf16.msra.mxu0 %v4772_v14  ;;  %v4781_v14 = vld [vmem:[%s6616_s14 + $0x30] ss:$12 sps:$4 sm:$0xff]  }
 0x20a   :  { %893 = vmatpush1.bf16.msra.mxu1 %v4781_v14 }
 0x20b   :  { %894 = vmatprep.subr.bf16.mxu1 %v4782_v15 }
 0x20c   :  { %561 = vmatmul.mubr.bf16.vlgmr.msra.gmra.mrb[0].mxu0 %v450_v16  ;;  %v4784_v16 = vld [vmem:[%s6616_s14 + $0x48] ss:$12 sps:$4 sm:$0xff]  }
 0x20e   :  { %895 = vmatpush1.bf16.msra.mxu1 %v4784_v16 }
 0x20f   :  { %896 = vmatprep.subr.bf16.mxu1 %v4785_v19 }
 0x2df   :  { %v562_v23 = vpop.f32.mrb[0].mxu0 }
 0x2e0   :  { %v570_v25 = vrot.slane %v562_v23, 7  ;;  %v578_v26 = vrot.slane %v562_v23, 6  ;;  %v564_v27 = vpop.f32.mrb[1].mxu0  ;;  %v4790_v23 = vld [vmem:[%s6616_s14 + $0x78] ss:$12 sps:$4 sm:$0xff]  }
 0x2e1   :  { %v565_v28 = vpop.f32.mrb[2].mxu0  ;;  %v4794_v27 = vld [vmem:[%s6616_s14 + $0xac] ss:$12 sps:$4 sm:$0xff]  }
 0x2e2   :  { %v581_v29 = vsel %vm6584_vm1, %v568_v21, %v570_v25  ;;  %v566_v30 = vpop.f32.mrb[3].mxu0  ;;  %v592_v31 = vadd.f32 %v588_v22, %v578_v26  ;;  %v4787_v21 = vld [vmem:[%s6616_s14 + $0x60] ss:$12 sps:$4 sm:$0xff]   ;;  %v4788_v22 = vld [vmem:[%s6616_s14 + $0x7c] ss:$12 sps:$4 sm:$0xff]  }
 0x2e3   :  { %v583_v32 = vsel %vm582_vm2, %v581_v29, %v576_v24  ;;  %897 = vmatpush1.bf16.msra.mxu1 %v4787_v21  ;;  %v5661_v24 = vmov 0.0   ;;  %v4791_v25 = vld [vmem:[%s6616_s14 + $0x94] ss:$12 sps:$4 sm:$0xff]   ;;  %v6110_v21 = vand.u32 127, %v573_v17 }
 0x2e4   :  { %v598_v33 = vsel %vm6585_vm3, %v592_v31, 0.0  ;;  %v585_v34 = vsel %vm584_vm4, %v583_v32, %v578_v26  ;;  %4416 = vmatprep.subr.bf16.mxu0 %v5661_v24  ;;  %898 = vmatprep.subr.bf16.mxu1 %v4788_v22  ;;  %v4793_v26 = vld [vmem:[%s6616_s14 + $0x90] ss:$12 sps:$4 sm:$0xff]   ;;  %v4796_v28 = vld [vmem:[%s6616_s14 + $0xa8] ss:$12 sps:$4 sm:$0xff]   ;;  %v6118_v22 = vadd.s32 8, %v6023_v18 }
 0x2e5   :  { %599 = vadd.xlane.f32.xlu0 %v598_v33  ;;  %v591_v36 = vadd.f32 %v590_v35, %v585_v34  ;;  %4418 = vmatprep.mubr.msk.bf16.mxu0 %vm5662_vm5, %v5661_v24  ;;  %vm659_vm7 = vcmp.ge.s32.totalorder %v6110_v21, 5  ;;  %vm660_vm8 = vcmp.lt.s32.totalorder %v6110_v21, 10  ;;  %vm649_vm10 = vcmp.lt.s32.totalorder %v6110_v21, 5 }
 0x2e6   :  { %vm661_vm12 = vmand %vm659_vm7, %vm660_vm8  ;;  %vm656_vm15 = vcmp.lt.s32.totalorder %v6118_v22, 10  ;;  %vm1030_vm7 = vcmask 74752   ;;  %vm6621_vm8 = vcmask 1040384  }
 0x2e7   :  { %899 = vmatpush1.bf16.msra.mxu1 %v4790_v23  ;;  %vm651_vm13 = vmand %vm644_vm9, %vm649_vm10  ;;  %v5663_v23 = vmov -1e+09  }
 0x2e8   :  { %900 = vmatprep.subr.bf16.mxu1 %v4791_v25  ;;  %vm662_vm14 = vmand %vm653_vm11, %vm661_vm12 }
 0x2e9   :  { %595 = vadd.xlane.f32.xlu0 %v591_v36  ;;  %vm664_vm4 = vmor %vm651_vm13, %vm662_vm14  ;;  %vm2423_vm14 = vcmp.ge.s32.totalorder %v6110_v21, 8 }
 0x2ea   :  { %vm663_vm1 = vmand %vm656_vm15, %vm661_vm12  ;;  %v6121_v25 = vsel %vm664_vm4, 0.0, %v5663_v23  ;;  %vm2424_vm15 = vcmp.lt.s32.totalorder %v6110_v21, 16  ;;  %vm2413_vm4 = vcmp.lt.s32.totalorder %v6110_v21, 8 }
 0x2eb   :  { %901 = vmatpush1.bf16.msra.mxu1 %v4793_v26 }
 0x2ec   :  { %902 = vmatprep.subr.bf16.mxu1 %v4794_v27 }
 0x2ef   :  { %903 = vmatpush1.bf16.msra.mxu1 %v4796_v28 }
 0x2f0   :  { %4396 = vmatprep.subr.bf16.mxu1 %v5661_v24 }
 0x372   :  { %v600_v37 = vpop.xlane.xlu0 %599 }
 0x373   :  { %v603_v38 = vmul.f32 0.0078125, %v600_v37 }
 0x375   :  { %v605_v39 = vsub.f32 %v592_v31, %v603_v38 }
 0x376   :  { %v596_v40 = vpop.xlane.xlu0 %595 }
 0x377   :  { %v602_v41 = vmul.f32 0.0078125, %v596_v40  ;;  %v607_v42 = vmul.f32 %v605_v39, %v605_v39 }
 0x379   :  { %v604_v43 = vsub.f32 %v591_v36, %v602_v41  ;;  %v610_v44 = vsel %vm6585_vm3, %v607_v42, 0.0  ;;  %v4051_v36 = vld [vmem:[#allocation28] ss:$0 sm:$0xff]  ;;  %v4052_v41 = vld [vmem:[#allocation26] ss:$0 sm:$0xff] }
 0x37a   :  { %611 = vadd.xlane.f32.xlu1 %v610_v44 }
 0x37b   :  { %v606_v45 = vmul.f32 %v604_v43, %v604_v43 }
 0x37e   :  { %608 = vadd.xlane.f32.xlu1 %v606_v45  ;;  %v4797_v45 = vld [vmem:[%s6616_s14 + $0x8] ss:$12 sps:$4 sm:$0xff]  }
 0x407   :  { %v612_v46 = vpop.xlane.xlu1 %611 }
 0x408   :  { %v614_v47 = vmul.f32 0.0078125, %v612_v46 }
 0x40a   :  { %v616_v48 = vadd.f32 1e-05, %v614_v47  ;;  %v4798_v47 = vld [vmem:[%s6616_s14 + $0x20] ss:$12 sps:$4 sm:$0xff]  }
 0x40b   :  { %v609_v49 = vpop.xlane.xlu1 %608 }
 0x40c   :  { %4957 = vrsqrt.f32 %v616_v48  ;;  %v613_v50 = vmul.f32 0.0078125, %v609_v49  ;;  %v4799_v48 = vld [vmem:[%s6616_s14 + $0x38] ss:$12 sps:$4 sm:$0xff]   ;;  %v4800_v49 = vld [vmem:[%s6616_s14 + $0x50] ss:$12 sps:$4 sm:$0xff]  }
 0x40e   :  { %v615_v51 = vadd.f32 1e-05, %v613_v50  ;;  %v4801_v50 = vld [vmem:[%s6616_s14 + $0x68] ss:$12 sps:$4 sm:$0xff]  }
 0x410   :  { %4959 = vrsqrt.f32 %v615_v51  ;;  %v4802_v51 = vld [vmem:[%s6616_s14 + $0x80] ss:$12 sps:$4 sm:$0xff]  }
 0x416   :  { %v4958_v52 = vpop.eup %4957 }
 0x417   :  { %v620_v54 = vmul.f32 %v4958_v52, %v605_v39  ;;  %v4803_v52 = vld [vmem:[%s6616_s14 + $0x98] ss:$12 sps:$4 sm:$0xff]  }
 0x419   :  { %v628_v56 = vmul.f32 %v4049_v53, %v620_v54  ;;  %v743_v54 = vld [vmem:[#allocation20] sm:$0x7] }
 0x41a   :  { %v4960_v57 = vpop.eup %4959 }
 0x41b   :  { %v6035_v58 = vadd.f32 %v4050_v55, %v628_v56  ;;  %v619_v59 = vmul.f32 %v4960_v57, %v604_v43  ;;  %v748_v56 = vrot.slane %v743_v54, %v6026_v20 }
 0x41d   :  { %v672_v60 = vsel %vm6585_vm3, %v6035_v58, 0.0  ;;  %v627_v61 = vmul.f32 %v4049_v53, %v619_v59  ;;  %v4804_v53 = vld [vmem:[%s6616_s14 + $0xb0] ss:$12 sps:$4 sm:$0xff]  }
 0x41e   :  { %673 = vadd.xlane.f32.xlu0 %v672_v60 }
 0x41f   :  { %v6039_v62 = vadd.f32 %v4050_v55, %v627_v61  ;;  %v6086_v55 = vsub.s32 1, %v6023_v18 }
 0x421   :  { %670 = vadd.xlane.f32.xlu1 %v6039_v62  ;;  %v752_v59 = vrot.slane %v743_v54, %v6086_v55 }
 0x4ab   :  { %v674_v4 = vpop.xlane.xlu0 %673 }
 0x4ac   :  { %v676_v5 = vmul.f32 0.0078125, %v674_v4 }
 0x4ae   :  { %v678_v6 = vsub.f32 %v6035_v58, %v676_v5  ;;  %v671_v7 = vpop.xlane.xlu1 %670 }
 0x4af   :  { %v675_v8 = vmul.f32 0.0078125, %v671_v7 }
 0x4b0   :  { %v680_v9 = vmul.f32 %v678_v6, %v678_v6 }
 0x4b1   :  { %v677_v10 = vsub.f32 %v6039_v62, %v675_v8  ;;  %v755_v8 = vsub.s32 2, %v6023_v18 }
 0x4b2   :  { %v683_v11 = vsel %vm6585_vm3, %v680_v9, 0.0  ;;  %vm1026_vm3 = vcmask 80896  }
 0x4b3   :  { %684 = vadd.xlane.f32.xlu1 %v683_v11  ;;  %v679_v12 = vmul.f32 %v677_v10, %v677_v10  ;;  %v756_v9 = vrot.slane %v743_v54, %v755_v8 }
 0x4b5   :  { %681 = vadd.xlane.f32.xlu0 %v679_v12 }
 0x540   :  { %v685_v29 = vpop.xlane.xlu1 %684 }
 0x541   :  { %v687_v30 = vmul.f32 0.0078125, %v685_v29  ;;  %v6123_v29 = vsel %vm663_vm1, 0.0, %v5663_v23  ;;  %vm1511_vm1 = vcmask 785408  }
 0x542   :  { %v682_v31 = vpop.xlane.xlu0 %681 }
 0x543   :  { %v689_v32 = vadd.f32 1e-05, %v687_v30  ;;  %v686_v33 = vmul.f32 0.0078125, %v682_v31 }
 0x545   :  { %4961 = vrsqrt.f32 %v689_v32  ;;  %v688_v34 = vadd.f32 1e-05, %v686_v33 }
 0x547   :  { %4963 = vrsqrt.f32 %v688_v34 }
 0x54f   :  { %v4962_v35 = vpop.eup %4961 }
 0x550   :  { %v693_v37 = vmul.f32 %v4962_v35, %v678_v6 }
 0x551   :  { %v4964_v38 = vpop.eup %4963 }
 0x552   :  { %v692_v39 = vmul.f32 %v4964_v38, %v677_v10  ;;  %v701_v40 = vmul.f32 %v4051_v36, %v693_v37 }
 0x554   :  { %v700_v42 = vmul.f32 %v4051_v36, %v692_v39  ;;  %v709_v44 = vadd.f32 %v4052_v41, %v701_v40 }
 0x556   :  { %v708_v43 = vadd.f32 %v4052_v41, %v700_v42 }
 0x558   :  { %v742_v46 = vpack.c.bf16 %v709_v44, %v708_v43 }
 0x55a   :  { %921 = vmatmul.mubr.bf16.vlgmr.msra.gmra.mrb[0].mxu1 %v742_v46 }
 0x55b   :  { %4397 = vmatpush3.bf16.msra.mxu1 %v4797_v45  ;;  %4412 = vmatprep.mubr.msk.bf16.mxu1 %vm5662_vm5, %v5661_v24 }
 0x55c   :  { %4398 = vmatprep.subr.bf16.mxu1 %v5661_v24 }
 0x55f   :  { %4399 = vmatpush3.bf16.msra.mxu1 %v4798_v47 }
 0x560   :  { %4400 = vmatprep.subr.bf16.mxu1 %v5661_v24 }
 0x563   :  { %4401 = vmatpush3.bf16.msra.mxu1 %v4799_v48 }
 0x564   :  { %4402 = vmatprep.subr.bf16.mxu1 %v5661_v24 }
 0x567   :  { %4403 = vmatpush3.bf16.msra.mxu1 %v4800_v49 }
 0x568   :  { %4404 = vmatprep.subr.bf16.mxu1 %v5661_v24 }
 0x56b   :  { %4405 = vmatpush3.bf16.msra.mxu1 %v4801_v50 }
 0x56c   :  { %4406 = vmatprep.subr.bf16.mxu1 %v5661_v24 }
 0x56f   :  { %4407 = vmatpush3.bf16.msra.mxu1 %v4802_v51 }
 0x570   :  { %4408 = vmatprep.subr.bf16.mxu1 %v5661_v24 }
 0x573   :  { %4409 = vmatpush3.bf16.msra.mxu1 %v4803_v52 }
 0x574   :  { %4410 = vmatprep.subr.bf16.mxu1 %v5661_v24 }
 0x577   :  { %4411 = vmatpush3.bf16.msra.mxu1 %v4804_v53 }
 0x578   :  { %4458 = vmatprep.subr.bf16.mxu1 %v5661_v24 }
 0x57a   :  { %4413 = vmatmul.mubr.bf16.vlgmr.msra.gmra.mrb[4].mxu1 %v742_v46 }
 0x57b   :  { %4460 = vmatprep.mubr.msk.bf16.mxu1 %vm5662_vm5, %v5661_v24 }
 0x62d   :  { %v922_v57 = vpop.f32.mrb[0].mxu1 }
 0x62e   :  { %v924_v60 = vpop.f32.mrb[1].mxu1  ;;  %v923_v63 = vadd.f32 %v922_v57, %v748_v56 }
 0x62f   :  { %v926_v61 = vpop.f32.mrb[2].mxu1  ;;  %v925_v3 = vadd.f32 %v924_v60, %v752_v59 }
 0x630   :  { %v927_v1 = vadd.f32 %v926_v61, %v748_v56  ;;  %v928_v2 = vpop.f32.mrb[3].mxu1 }
 0x631   :  { %v929_v4 = vadd.f32 %v928_v2, %v752_v59 }
 0x632   :  { %v6090_v5 = vpack.c.bf16 %v927_v1, %v923_v63 }
 0x633   :  { %v6092_v6 = vpack.c.bf16 %v929_v4, %v925_v3 }
 0x635   :  { %v979_v7 = vsel %vm974_vm6, %v6092_v6, 0 }
 0x636   :  { %4417 = vmatpush3.bf16.xpose.msra.mxu0 %v979_v7 }
 0x637   :  { %4422 = vmatprep.subr.bf16.mxu0 %v5661_v24 }
 0x63d   :  { %4419 = vmatmul.mubr.msk.bf16.vlgmr.msra.gmra.mrb[4].mxu0 %vm974_vm6, %v6090_v5 }
 0x63e   :  { %4424 = vmatprep.mubr.msk.bf16.mxu0 %vm5662_vm5, %v5661_v24 }
 0x64d   :  { %v965_v10 = vpop.f32.mrb[4].mxu1 }
 0x64e   :  { %v4414_v11 = vpop.f32.mrb[5].mxu1  ;;  %v966_v13 = vadd.f32 %v965_v10, %v756_v9 }
 0x64f   :  { %v968_v12 = vpop.f32.mrb[6].mxu1 }
 0x650   :  { %v969_v14 = vadd.f32 %v968_v12, %v756_v9  ;;  %v4415_v15 = vpop.f32.mrb[7].mxu1 }
 0x652   :  { %v6104_v16 = vpack.c.bf16 %v969_v14, %v966_v13 }
 0x654   :  { %v1056_v19 = vsel %vm582_vm2, %v6104_v16, 0 }
 0x655   :  { %4423 = vmatpush3.bf16.msra.mxu0 %v1056_v19 }
 0x656   :  { %4428 = vmatprep.subr.bf16.mxu0 %v5661_v24 }
 0x710   :  { %v1015_v17 = vpop.f32.mrb[4].mxu0 }
 0x711   :  { %v1022_v26 = vmul.f32 0.17677669, %v1015_v17  ;;  %v4420_v27 = vpop.f32.mrb[5].mxu0 }
 0x712   :  { %v1018_v28 = vpop.f32.mrb[6].mxu0 }
 0x713   :  { %v1023_v30 = vmul.f32 0.17677669, %v1018_v28  ;;  %v4421_v31 = vpop.f32.mrb[7].mxu0  ;;  %v1024_v32 = vadd.f32 %v1022_v26, %v6121_v25 }
 0x715   :  { %v1027_v33 = vsel %vm1026_vm3, %v1024_v32, -inf  ;;  %v1025_v34 = vadd.f32 %v1023_v30, %v6123_v29 }
 0x716   :  { %1028 = vmax.xlane.f32.xlu0 %v1027_v33 }
 0x717   :  { %v1031_v35 = vsel %vm1030_vm7, %v1025_v34, -inf }
 0x718   :  { %1032 = vmax.xlane.f32.xlu1 %v1031_v35 }
 0x7a3   :  { %v1029_v36 = vpop.xlane.xlu0 %1028 }
 0x7a4   :  { %v1034_v37 = vsub.f32 %v1024_v32, %v1029_v36 }
 0x7a5   :  { %v1033_v38 = vpop.xlane.xlu1 %1032 }
 0x7a6   :  { %v1036_v39 = vmul.f32 1.442695, %v1034_v37  ;;  %v1035_v40 = vsub.f32 %v1025_v34, %v1033_v38 }
 0x7a8   :  { %4965 = vpow2.f32 %v1036_v39  ;;  %v1038_v41 = vmul.f32 1.442695, %v1035_v40 }
 0x7aa   :  { %4967 = vpow2.f32 %v1038_v41 }
 0x7b2   :  { %v4966_v42 = vpop.eup %4965 }
 0x7b3   :  { %v1040_v43 = vsel %vm1026_vm3, %v4966_v42, 0.0 }
 0x7b4   :  { %v4968_v44 = vpop.eup %4967  ;;  %1041 = vadd.xlane.f32.xlu0 %v1040_v43 }
 0x7b5   :  { %v1043_v45 = vsel %vm1030_vm7, %v4968_v44, 0.0 }
 0x7b6   :  { %1044 = vadd.xlane.f32.xlu1 %v1043_v45 }
 0x7c7   :  { %1100 = vrot.lane.b32.xlu1 %v6090_v5, %s5664_s17 }
 0x7ca   :  { %1103 = vrot.lane.b32.xlu0 %v6092_v6, %s5664_s17 }
 0x841   :  { %v1042_v46 = vpop.xlane.xlu0 %1041 }
 0x842   :  { %4969 = vrcp.f32 %v1042_v46 }
 0x843   :  { %v1045_v47 = vpop.xlane.xlu1 %1044 }
 0x844   :  { %4971 = vrcp.f32 %v1045_v47 }
 0x845   :  { %v1104_v52 = vpop.permute.xlu0 %1103 }
 0x846   :  { %v1109_v54 = vsel %vm974_vm6, %v1104_v52, 0 }
 0x847   :  { %v1101_v56 = vpop.permute.xlu1 %1100 }
 0x84c   :  { %v4970_v48 = vpop.eup %4969 }
 0x84d   :  { %v1048_v50 = vmul.f32 %v4970_v48, %v4966_v42 }
 0x84e   :  { %v4972_v49 = vpop.eup %4971 }
 0x84f   :  { %v1049_v51 = vmul.f32 %v4972_v49, %v4968_v44 }
 0x851   :  { %v1050_v53 = vpack.c.bf16 %v1049_v51, %v1048_v50 }
 0x853   :  { %4425 = vmatmul.mubr.msk.bf16.vlgmr.msra.gmra.mrb[8].mxu0 %vm1026_vm3, %v1050_v53 }
 0x854   :  { %4429 = vmatpush3.bf16.xpose.msra.mxu0 %v1109_v54  ;;  %4430 = vmatprep.mubr.msk.bf16.mxu0 %vm5662_vm5, %v5661_v24 }
 0x855   :  { %4434 = vmatprep.subr.bf16.mxu0 %v5661_v24 }
 0x85b   :  { %4431 = vmatmul.mubr.msk.bf16.vlgmr.msra.gmra.mrb[12].mxu0 %vm974_vm6, %v1101_v56 }
 0x85c   :  { %4436 = vmatprep.mubr.msk.bf16.mxu0 %vm5662_vm5, %v5661_v24 }
 0x926   :  { %v6143_v57 = vpop.f32.mrb[8].mxu0 }
 0x927   :  { %v4426_v59 = vpop.f32.mrb[9].mxu0 }
 0x928   :  { %v6145_v60 = vpop.f32.mrb[10].mxu0 }
 0x929   :  { %v4427_v61 = vpop.f32.mrb[11].mxu0 }
 0x92e   :  { %v1145_v63 = vpop.f32.mrb[12].mxu0 }
 0x92f   :  { %v1152_v1 = vmul.f32 0.17677669, %v1145_v63  ;;  %v4432_v2 = vpop.f32.mrb[13].mxu0 }
 0x930   :  { %v1148_v3 = vpop.f32.mrb[14].mxu0 }
 0x931   :  { %v1153_v4 = vmul.f32 0.17677669, %v1148_v3  ;;  %v4433_v7 = vpop.f32.mrb[15].mxu0  ;;  %v1154_v9 = vadd.f32 %v1152_v1, %v6121_v25 }
 0x933   :  { %v1156_v10 = vsel %vm1026_vm3, %v1154_v9, -inf  ;;  %v1155_v11 = vadd.f32 %v1153_v4, %v6123_v29 }
 0x934   :  { %1157 = vmax.xlane.f32.xlu1 %v1156_v10 }
 0x935   :  { %v1159_v12 = vsel %vm1030_vm7, %v1155_v11, -inf }
 0x936   :  { %1160 = vmax.xlane.f32.xlu0 %v1159_v12 }
 0x9c1   :  { %v1158_v13 = vpop.xlane.xlu1 %1157 }
 0x9c2   :  { %v1162_v14 = vsub.f32 %v1154_v9, %v1158_v13 }
 0x9c3   :  { %v1161_v15 = vpop.xlane.xlu0 %1160 }
 0x9c4   :  { %v1164_v19 = vmul.f32 1.442695, %v1162_v14  ;;  %v1163_v17 = vsub.f32 %v1155_v11, %v1161_v15 }
 0x9c6   :  { %4973 = vpow2.f32 %v1164_v19  ;;  %v1166_v23 = vmul.f32 1.442695, %v1163_v17 }
 0x9c8   :  { %4975 = vpow2.f32 %v1166_v23 }
 0x9d0   :  { %v4974_v26 = vpop.eup %4973 }
 0x9d1   :  { %v1168_v27 = vsel %vm1026_vm3, %v4974_v26, 0.0 }
 0x9d2   :  { %v4976_v28 = vpop.eup %4975  ;;  %1169 = vadd.xlane.f32.xlu0 %v1168_v27 }
 0x9d3   :  { %v1171_v30 = vsel %vm1030_vm7, %v4976_v28, 0.0 }
 0x9d4   :  { %1172 = vadd.xlane.f32.xlu1 %v1171_v30 }
 0x9e5   :  { %1231 = vrot.lane.b32.xlu1 %v6092_v6, %s5643_s24 }
 0x9e8   :  { %1180 = vrot.lane.b32.xlu0 %v6104_v16, %s5664_s17 }
 0x9e9   :  { %1229 = vrot.lane.b32.xlu1 %v6090_v5, %s5643_s24 }
 0xa5f   :  { %v1170_v31 = vpop.xlane.xlu0 %1169 }
 0xa60   :  { %4977 = vrcp.f32 %v1170_v31 }
 0xa61   :  { %v1173_v32 = vpop.xlane.xlu1 %1172 }
 0xa62   :  { %4979 = vrcp.f32 %v1173_v32 }
 0xa63   :  { %v1181_v33 = vpop.permute.xlu0 %1180 }
 0xa64   :  { %v1186_v34 = vsel %vm582_vm2, %v1181_v33, 0 }
 0xa65   :  { %4435 = vmatpush3.bf16.msra.mxu0 %v1186_v34  ;;  %v1232_v39 = vpop.permute.xlu1 %1231 }
 0xa66   :  { %4440 = vmatprep.subr.bf16.mxu0 %v5661_v24  ;;  %v1237_v41 = vsel %vm974_vm6, %v1232_v39, 0 }
 0xa69   :  { %v1230_v42 = vpop.permute.xlu1 %1229 }
 0xa6a   :  { %v4978_v35 = vpop.eup %4977 }
 0xa6b   :  { %v1176_v37 = vmul.f32 %v4978_v35, %v4974_v26 }
 0xa6c   :  { %v4980_v36 = vpop.eup %4979 }
 0xa6d   :  { %v1177_v38 = vmul.f32 %v4980_v36, %v4976_v28 }
 0xa6f   :  { %v1178_v40 = vpack.c.bf16 %v1177_v38, %v1176_v37 }
 0xa71   :  { %4437 = vmatmul.mubr.msk.bf16.vlgmr.msra.gmra.mrb[16].mxu0 %vm1026_vm3, %v1178_v40 }
 0xa72   :  { %4441 = vmatpush3.bf16.xpose.msra.mxu0 %v1237_v41  ;;  %4442 = vmatprep.mubr.msk.bf16.mxu0 %vm5662_vm5, %v5661_v24 }
 0xa73   :  { %4446 = vmatprep.subr.bf16.mxu0 %v5661_v24 }
 0xa79   :  { %4443 = vmatmul.mubr.msk.bf16.vlgmr.msra.gmra.mrb[20].mxu0 %vm974_vm6, %v1230_v42 }
 0xa7a   :  { %4448 = vmatprep.mubr.msk.bf16.mxu0 %vm5662_vm5, %v5661_v24 }
 0xb44   :  { %v6169_v43 = vpop.f32.mrb[16].mxu0 }
 0xb45   :  { %v4438_v44 = vpop.f32.mrb[17].mxu0 }
 0xb46   :  { %v6171_v45 = vpop.f32.mrb[18].mxu0 }
 0xb47   :  { %v4729_v46 = vpack.i.bf16 %v6171_v45, %v6169_v43  ;;  %v4439_v47 = vpop.f32.mrb[19].mxu0  ;;  %v4806_v43 = vld [vmem:[#allocation22 + $0x8] sm:$0xff]   ;;  %v4807_v45 = vld [vmem:[#allocation22 + $0x10] sm:$0xff]  }
 0xb4c   :  { %v1273_v48 = vpop.f32.mrb[20].mxu0 }
 0xb4d   :  { %v1280_v49 = vmul.f32 0.17677669, %v1273_v48  ;;  %v4444_v50 = vpop.f32.mrb[21].mxu0 }
 0xb4e   :  { %v1276_v51 = vpop.f32.mrb[22].mxu0 }
 0xb4f   :  { %v1281_v52 = vmul.f32 0.17677669, %v1276_v51  ;;  %v4445_v53 = vpop.f32.mrb[23].mxu0  ;;  %v1282_v54 = vadd.f32 %v1280_v49, %v6121_v25 }
 0xb51   :  { %v1284_v56 = vsel %vm1026_vm3, %v1282_v54, -inf  ;;  %v1283_v59 = vadd.f32 %v1281_v52, %v6123_v29 }
 0xb52   :  { %1285 = vmax.xlane.f32.xlu1 %v1284_v56 }
 0xb53   :  { %v1287_v61 = vsel %vm1030_vm7, %v1283_v59, -inf }
 0xb54   :  { %1288 = vmax.xlane.f32.xlu0 %v1287_v61 }
 0xb63   :  { %1307 = vrot.lane.b32.xlu1 %v6104_v16, %s5643_s24 }
 0xb67   :  { %1356 = vrot.lane.b32.xlu1 %v6090_v5, %s5665_s30 }
 0xbdf   :  { %v1286_v63 = vpop.xlane.xlu1 %1285 }
 0xbe0   :  { %v1290_v1 = vsub.f32 %v1282_v54, %v1286_v63 }
 0xbe1   :  { %v1289_v2 = vpop.xlane.xlu0 %1288 }
 0xbe2   :  { %v1292_v3 = vmul.f32 1.442695, %v1290_v1  ;;  %v1291_v4 = vsub.f32 %v1283_v59, %v1289_v2 }
 0xbe3   :  { %v1308_v7 = vpop.permute.xlu1 %1307 }
 0xbe4   :  { %4981 = vpow2.f32 %v1292_v3  ;;  %v1294_v9 = vmul.f32 1.442695, %v1291_v4  ;;  %v1313_v10 = vsel %vm582_vm2, %v1308_v7, 0 }
 0xbe5   :  { %4447 = vmatpush3.bf16.msra.mxu0 %v1313_v10 }
 0xbe6   :  { %4983 = vpow2.f32 %v1294_v9  ;;  %4452 = vmatprep.subr.bf16.mxu0 %v5661_v24 }
 0xbee   :  { %v4982_v11 = vpop.eup %4981 }
 0xbef   :  { %v1296_v12 = vsel %vm1026_vm3, %v4982_v11, 0.0 }
 0xbf0   :  { %v4984_v13 = vpop.eup %4983  ;;  %1297 = vadd.xlane.f32.xlu0 %v1296_v12  ;;  %v4810_v12 = vld [vmem:[#allocation22 + $0x28] sm:$0xff]  }
 0xbf1   :  { %v1299_v5 = vsel %vm1030_vm7, %v4984_v13, 0.0 }
 0xbf4   :  { %1300 = vadd.xlane.f32.xlu0 %v1299_v5  ;;  %v4812_v5 = vld [vmem:[#allocation22 + $0x38] sm:$0xff]  }
 0xc0a   :  { %1358 = vrot.lane.b32.xlu0 %v6092_v6, %s5665_s30  ;;  %v1357_v6 = vpop.permute.xlu1 %1356 }
 0xc7d   :  { %v1298_v14 = vpop.xlane.xlu0 %1297 }
 0xc7e   :  { %4985 = vrcp.f32 %v1298_v14 }
 0xc81   :  { %v1301_v15 = vpop.xlane.xlu0 %1300 }
 0xc82   :  { %4987 = vrcp.f32 %v1301_v15 }
 0xc85   :  { %v1359_v27 = vpop.permute.xlu0 %1358 }
 0xc86   :  { %v1364_v30 = vsel %vm974_vm6, %v1359_v27, 0 }
 0xc88   :  { %v4986_v19 = vpop.eup %4985 }
 0xc89   :  { %v1304_v23 = vmul.f32 %v4986_v19, %v4982_v11  ;;  %v4809_v11 = vld [vmem:[#allocation22 + $0x20] sm:$0xff]  }
 0xc8c   :  { %v4988_v17 = vpop.eup %4987 }
 0xc8d   :  { %v1305_v26 = vmul.f32 %v4988_v17, %v4984_v13  ;;  %v4811_v13 = vld [vmem:[#allocation22 + $0x30] sm:$0xff]  }
 0xc8f   :  { %v1306_v28 = vpack.c.bf16 %v1305_v26, %v1304_v23 }
 0xc91   :  { %4449 = vmatmul.mubr.msk.bf16.vlgmr.msra.gmra.mrb[24].mxu0 %vm1026_vm3, %v1306_v28 }
 0xc92   :  { %4453 = vmatpush3.bf16.xpose.msra.mxu0 %v1364_v30  ;;  %4454 = vmatprep.mubr.msk.bf16.mxu0 %vm5662_vm5, %v5661_v24 }
 0xc93   :  { %4464 = vmatprep.subr.bf16.mxu0 %v5661_v24 }
 0xc99   :  { %4455 = vmatmul.mubr.msk.bf16.vlgmr.msra.gmra.mrb[28].mxu0 %vm974_vm6, %v1357_v6 }
 0xc9a   :  { %4480 = vmatprep.mubr.msk.bf16.mxu0 %vm5662_vm5, %v5661_v24 }
 0xd64   :  { %v1349_v31 = vpop.f32.mrb[24].mxu0 }
 0xd65   :  { %v4450_v32 = vpop.f32.mrb[25].mxu0 }
 0xd66   :  { %v1352_v33 = vpop.f32.mrb[26].mxu0 }
 0xd67   :  { %v4734_v34 = vpack.i.bf16 %v1352_v33, %v1349_v31  ;;  %v4451_v35 = vpop.f32.mrb[27].mxu0 }
 0xd6c   :  { %v1400_v36 = vpop.f32.mrb[28].mxu0 }
 0xd6d   :  { %v1407_v37 = vmul.f32 0.17677669, %v1400_v36  ;;  %v4456_v38 = vpop.f32.mrb[29].mxu0 }
 0xd6e   :  { %v1403_v39 = vpop.f32.mrb[30].mxu0 }
 0xd6f   :  { %v1408_v40 = vmul.f32 0.17677669, %v1403_v39  ;;  %v4457_v41 = vpop.f32.mrb[31].mxu0  ;;  %v1409_v42 = vadd.f32 %v1407_v37, %v6121_v25 }
 0xd71   :  { %v1411_v44 = vsel %vm1026_vm3, %v1409_v42, -inf  ;;  %v1410_v47 = vadd.f32 %v1408_v40, %v6123_v29 }
 0xd72   :  { %1412 = vmax.xlane.f32.xlu1 %v1411_v44 }
 0xd73   :  { %v1414_v48 = vsel %vm1030_vm7, %v1410_v47, -inf }
 0xd74   :  { %1415 = vmax.xlane.f32.xlu0 %v1414_v48 }
 0xdff   :  { %v1413_v49 = vpop.xlane.xlu1 %1412 }
 0xe00   :  { %v1417_v50 = vsub.f32 %v1409_v42, %v1413_v49  ;;  %v4085_v42 = vld [vmem:[#allocation19] ss:$0 sm:$0xff] }
 0xe01   :  { %v1416_v51 = vpop.xlane.xlu0 %1415 }
 0xe02   :  { %v1419_v52 = vmul.f32 1.442695, %v1417_v50  ;;  %v1418_v53 = vsub.f32 %v1410_v47, %v1416_v51 }
 0xe04   :  { %4989 = vpow2.f32 %v1419_v52  ;;  %v1421_v54 = vmul.f32 1.442695, %v1418_v53  ;;  %v4813_v53 = vld [vmem:[%s6617_s9] ss:$8 sps:$4 sm:$0xff]  }
 0xe06   :  { %4991 = vpow2.f32 %v1421_v54  ;;  %v4815_v54 = vld [vmem:[%s6617_s9 + $0x4] ss:$8 sps:$4 sm:$0xff]  }
 0xe0e   :  { %v4990_v56 = vpop.eup %4989 }
 0xe0f   :  { %v1423_v59 = vsel %vm1026_vm3, %v4990_v56, 0.0 }
 0xe10   :  { %v4992_v25 = vpop.eup %4991  ;;  %1424 = vadd.xlane.f32.xlu0 %v1423_v59  ;;  %v4816_v59 = vld [vmem:[%s6617_s9 + $0x10] ss:$8 sps:$4 sm:$0xff]  }
 0xe11   :  { %v1426_v61 = vsel %vm1030_vm7, %v4992_v25, 0.0  ;;  %vm2430_vm7 = vcmp.le.s32.totalorder %v6110_v21, %v6023_v18 }
 0xe12   :  { %1427 = vadd.xlane.f32.xlu1 %v1426_v61 }
 0xe23   :  { %4730 = vrot.lane.b32.xlu1 %v4729_v46, %s5665_s30  ;;  %v4808_v46 = vld [vmem:[#allocation22 + $0x18] sm:$0xff]  }
 0xe26   :  { %1434 = vrot.lane.b32.xlu0 %v6104_v16, %s5665_s30  ;;  %v4805_v16 = vld [vmem:[#allocation22] sm:$0xff]  }
 0xe27   :  { %4735 = vrot.lane.b32.xlu1 %v4734_v34, %s5643_s24  ;;  %4465 = vmatpush3.bf16.msra.mxu0 %v4805_v16  ;;  %v4827_v16 = vld [vmem:[%s6617_s9 + $0x44] ss:$8 sps:$4 sm:$0xff]  }
 0xe28   :  { %4466 = vmatprep.subr.bf16.mxu0 %v5661_v24 }
 0xe2b   :  { %4467 = vmatpush3.bf16.msra.mxu0 %v4806_v43  ;;  %v4825_v43 = vld [vmem:[%s6617_s9 + $0x40] ss:$8 sps:$4 sm:$0xff]  }
 0xe2c   :  { %4468 = vmatprep.subr.bf16.mxu0 %v5661_v24 }
 0xe2f   :  { %4469 = vmatpush3.bf16.msra.mxu0 %v4807_v45  ;;  %v4830_v45 = vld [vmem:[%s6617_s9 + $0x54] ss:$8 sps:$4 sm:$0xff]  }
 0xe30   :  { %4470 = vmatprep.subr.bf16.mxu0 %v5661_v24 }
 0xe33   :  { %4471 = vmatpush3.bf16.msra.mxu0 %v4808_v46  ;;  %v4828_v46 = vld [vmem:[%s6617_s9 + $0x50] ss:$8 sps:$4 sm:$0xff]  }
 0xe34   :  { %4472 = vmatprep.subr.bf16.mxu0 %v5661_v24 }
 0xe37   :  { %4473 = vmatpush3.bf16.msra.mxu0 %v4809_v11  ;;  %v4833_v11 = vld [vmem:[%s6617_s9 + $0x64] ss:$8 sps:$4 sm:$0xff]  }
 0xe38   :  { %4474 = vmatprep.subr.bf16.mxu0 %v5661_v24 }
 0xe3b   :  { %4475 = vmatpush3.bf16.msra.mxu0 %v4810_v12  ;;  %v4831_v12 = vld [vmem:[%s6617_s9 + $0x60] ss:$8 sps:$4 sm:$0xff]  }
 0xe3c   :  { %4476 = vmatprep.subr.bf16.mxu0 %v5661_v24 }
 0xe3f   :  { %4477 = vmatpush3.bf16.msra.mxu0 %v4811_v13  ;;  %v4836_v13 = vld [vmem:[%s6617_s9 + $0x74] ss:$8 sps:$4 sm:$0xff]  }
 0xe40   :  { %4478 = vmatprep.subr.bf16.mxu0 %v5661_v24 }
 0xe43   :  { %4479 = vmatpush3.bf16.msra.mxu0 %v4812_v5  ;;  %v4834_v5 = vld [vmem:[%s6617_s9 + $0x70] ss:$8 sps:$4 sm:$0xff]  }
 0xe9d   :  { %v1425_v29 = vpop.xlane.xlu0 %1424 }
 0xe9e   :  { %4993 = vrcp.f32 %v1425_v29 }
 0xe9f   :  { %v1428_v63 = vpop.xlane.xlu1 %1427 }
 0xea0   :  { %4995 = vrcp.f32 %v1428_v63 }
 0xea1   :  { %v1435_v1 = vpop.permute.xlu0 %1434 }
 0xea2   :  { %v1440_v2 = vsel %vm582_vm2, %v1435_v1, 0  ;;  %vm6618_vm2 = vcmask 1041408  }
 0xea3   :  { %4459 = vmatpush3.bf16.msra.mxu1 %v1440_v2  ;;  %v4731_v26 = vpop.permute.xlu1 %4730  ;;  %vm6622_vm9 = vmmov %vm6618_vm2 }
 0xea4   :  { %v4733_v28 = vunpack.i.h.bf16 %v4731_v26  ;;  %v4732_v30 = vunpack.i.l.bf16 %v4731_v26  ;;  %1780 = vmatprep.subr.bf16.mxu1 %v4815_v54  ;;  %v4851_v54 = vld [vmem:[%s6620_s2 + $0x78] sm:$0xff]   ;;  %vm6623_vm10 = vmmov %vm6618_vm2 }
 0xea6   :  { %v1508_v33 = vsel %vm974_vm6, %v6145_v60, %v4733_v28  ;;  %v1507_v34 = vsel %vm974_vm6, %v6143_v57, %v4732_v30  ;;  %v4094_v30 = vld [vmem:[#allocation31] ss:$0 sm:$0xff] }
 0xea7   :  { %v4736_v27 = vpop.permute.xlu1 %4735 }
 0xea8   :  { %v4994_v3 = vpop.eup %4993  ;;  %v4738_v6 = vunpack.i.h.bf16 %v4736_v27  ;;  %v4737_v31 = vunpack.i.l.bf16 %v4736_v27 }
 0xea9   :  { %v1431_v7 = vmul.f32 %v4994_v3, %v4990_v56  ;;  %v4818_v56 = vld [vmem:[%s6617_s9 + $0x14] ss:$8 sps:$4 sm:$0xff]  }
 0xeaa   :  { %v4996_v4 = vpop.eup %4995  ;;  %v1509_v37 = vsel %vm524_vm0, %v1507_v34, %v4737_v31  ;;  %v1510_v38 = vsel %vm524_vm0, %v1508_v33, %v4738_v6  ;;  %v4095_v33 = vld [vmem:[#allocation29] ss:$0 sm:$0xff] }
 0xeab   :  { %v1432_v9 = vmul.f32 %v4996_v4, %v4992_v25  ;;  %v4821_v4 = vld [vmem:[%s6617_s9 + $0x24] ss:$8 sps:$4 sm:$0xff]  }
 0xead   :  { %v1433_v10 = vpack.c.bf16 %v1432_v9, %v1431_v7  ;;  %v4819_v7 = vld [vmem:[%s6617_s9 + $0x20] ss:$8 sps:$4 sm:$0xff]   ;;  %v4824_v9 = vld [vmem:[%s6617_s9 + $0x34] ss:$8 sps:$4 sm:$0xff]  }
 0xeaf   :  { %4461 = vmatmul.mubr.msk.bf16.vlgmr.msra.gmra.mrb[8].mxu1 %vm1026_vm3, %v1433_v10  ;;  %vm6619_vm3 = vmmov %vm6618_vm2  ;;  %v4822_v10 = vld [vmem:[%s6617_s9 + $0x30] ss:$8 sps:$4 sm:$0xff]  }
 0xeb0   :  { %1812 = vmatprep.mubr.bf16.mxu1 %v5660_v0  ;;  %1781 = vmatpush1.bf16.msra.mxu1 %v4813_v53  ;;  %v4850_v53 = vld [vmem:[%s6620_s2 + $0x30] sm:$0xff]  }
 0xeb1   :  { %1782 = vmatprep.subr.bf16.mxu1 %v4818_v56  ;;  %v4852_v56 = vld [vmem:[%s6620_s2 + $0x38] sm:$0xff]  }
 0xeb4   :  { %1783 = vmatpush1.bf16.msra.mxu1 %v4816_v59  ;;  %v1688_v59 = vld [vmem:[#allocation23] sm:$0x3] }
 0xeb5   :  { %1784 = vmatprep.subr.bf16.mxu1 %v4821_v4 }
 0xeb8   :  { %1785 = vmatpush1.bf16.msra.mxu1 %v4819_v7 }
 0xeb9   :  { %1786 = vmatprep.subr.bf16.mxu1 %v4824_v9 }
 0xebc   :  { %1787 = vmatpush1.bf16.msra.mxu1 %v4822_v10 }
 0xebd   :  { %1788 = vmatprep.subr.bf16.mxu1 %v4827_v16 }
 0xec0   :  { %1789 = vmatpush1.bf16.msra.mxu1 %v4825_v43 }
 0xec1   :  { %1790 = vmatprep.subr.bf16.mxu1 %v4830_v45 }
 0xec4   :  { %1791 = vmatpush1.bf16.msra.mxu1 %v4828_v46 }
 0xec5   :  { %1792 = vmatprep.subr.bf16.mxu1 %v4833_v11 }
 0xec8   :  { %1793 = vmatpush1.bf16.msra.mxu1 %v4831_v12 }
 0xec9   :  { %1794 = vmatprep.subr.bf16.mxu1 %v4836_v13 }
 0xecc   :  { %1795 = vmatpush1.bf16.msra.mxu1 %v4834_v5 }
 0xecd   :  { %4484 = vmatprep.subr.bf16.mxu1 %v5661_v24 }
 0xf82   :  { %v1476_v14 = vpop.f32.mrb[8].mxu1 }
 0xf83   :  { %v4462_v15 = vpop.f32.mrb[9].mxu1 }
 0xf84   :  { %v1479_v19 = vpop.f32.mrb[10].mxu1 }
 0xf85   :  { %v4739_v17 = vpack.i.bf16 %v1479_v19, %v1476_v14  ;;  %v4463_v23 = vpop.f32.mrb[11].mxu1 }
 0xf87   :  { %4740 = vrot.lane.b32.xlu1 %v4739_v17, %s5664_s17 }
 0xff9   :  { %v4741_v32 = vpop.permute.xlu1 %4740 }
 0xffa   :  { %v4743_v35 = vunpack.i.h.bf16 %v4741_v32  ;;  %v4742_v36 = vunpack.i.l.bf16 %v4741_v32 }
 0xffc   :  { %v1513_v39 = vsel %vm1511_vm1, %v1510_v38, %v4743_v35  ;;  %v1512_v40 = vsel %vm1511_vm1, %v1509_v37, %v4742_v36  ;;  %v4837_v38 = vld [vmem:[%s6620_s2 + $0x40] sm:$0xff]  }
 0xffd   :  { %v1530_v41 = vpack.c.bf16 %v1513_v39, %v1512_v40  ;;  %v4838_v39 = vld [vmem:[%s6620_s2] sm:$0xff]   ;;  %4282 = vmatprep.subr.bf16.mxu0 %v4837_v38  ;;  %v4839_v40 = vld [vmem:[%s6620_s2 + $0x48] sm:$0xff]  }
 0xfff   :  { %4481 = vmatmul.mubr.bf16.vlgmr.msra.gmra.mrb[32].mxu0 %v1530_v41  ;;  %v4840_v41 = vld [vmem:[%s6620_s2 + $0x8] sm:$0xff]  }
0x1000   :  { %4283 = vmatpush3.bf16.msra.mxu0 %v4838_v39 }
0x1001   :  { %4284 = vmatprep.subr.bf16.mxu0 %v4839_v40 }
0x1004   :  { %4285 = vmatpush3.bf16.msra.mxu0 %v4840_v41 }
0x10d2   :  { %v1620_v60 = vpop.f32.mrb[32].mxu0 }
0x10d3   :  { %v1621_v44 = vadd.f32 %v4085_v42, %v1620_v60  ;;  %v4482_v57 = vpop.f32.mrb[33].mxu0  ;;  %v4842_v60 = vld [vmem:[%s6620_s2 + $0x10] sm:$0xff]  }
0x10d4   :  { %v1623_v47 = vpop.f32.mrb[34].mxu0  ;;  %v4844_v57 = vld [vmem:[%s6620_s2 + $0x18] sm:$0xff]  }
0x10d5   :  { %v6230_v48 = vadd.f32 %v1621_v44, %v6039_v62  ;;  %v1624_v49 = vadd.f32 %v4085_v42, %v1623_v47  ;;  %v4483_v50 = vpop.f32.mrb[35].mxu0  ;;  %v4841_v42 = vld [vmem:[%s6620_s2 + $0x50] sm:$0xff]   ;;  %v4843_v44 = vld [vmem:[%s6620_s2 + $0x58] sm:$0xff]   ;;  %v4845_v47 = vld [vmem:[%s6620_s2 + $0x60] sm:$0xff]  }
0x10d6   :  { %4286 = vmatprep.subr.bf16.mxu0 %v4841_v42  ;;  %v4847_v50 = vld [vmem:[%s6620_s2 + $0x68] sm:$0xff]  }
0x10d7   :  { %1631 = vadd.xlane.f32.xlu1 %v6230_v48  ;;  %v1628_v51 = vadd.f32 %v1624_v49, %v6035_v58  ;;  %4287 = vmatpush3.bf16.msra.mxu0 %v4842_v60  ;;  %v4846_v49 = vld [vmem:[%s6620_s2 + $0x20] sm:$0xff]  }
0x10d8   :  { %4288 = vmatprep.subr.bf16.mxu0 %v4843_v44 }
0x10d9   :  { %v1633_v52 = vsel %vm6618_vm2, %v1628_v51, 0.0  ;;  %vm2425_vm2 = vmand %vm2423_vm14, %vm2424_vm15 }
0x10da   :  { %1634 = vadd.xlane.f32.xlu0 %v1633_v52  ;;  %v4849_v52 = vld [vmem:[%s6620_s2 + $0x70] sm:$0xff]  }
0x10db   :  { %4289 = vmatpush3.bf16.msra.mxu0 %v4844_v57 }
0x10dc   :  { %4290 = vmatprep.subr.bf16.mxu0 %v4845_v47 }
0x10df   :  { %4291 = vmatpush3.bf16.msra.mxu0 %v4846_v49  ;;  %v4853_v49 = vld [vmem:[#allocation32] sm:$0xff]  }
0x10e0   :  { %4292 = vmatprep.subr.bf16.mxu0 %v4847_v50  ;;  %v4854_v50 = vld [vmem:[#allocation32 + $0x8] sm:$0xff]  }
0x1164   :  { %v1632_v62 = vpop.xlane.xlu1 %1631 }
0x1165   :  { %v1636_v25 = vmul.f32 0.0078125, %v1632_v62  ;;  %v1693_v62 = vrot.slane %v1688_v59, %v6026_v20 }
0x1167   :  { %v1638_v61 = vsub.f32 %v6230_v48, %v1636_v25  ;;  %v1635_v58 = vpop.xlane.xlu0 %1634  ;;  %v1697_v25 = vrot.slane %v1688_v59, %v6086_v55  ;;  %v4856_v59 = vld [vmem:[#allocation32 + $0x18] sm:$0xff]  }
0x1168   :  { %v1637_v29 = vmul.f32 0.0078125, %v1635_v58 }
0x1169   :  { %v1640_v63 = vmul.f32 %v1638_v61, %v1638_v61 }
0x116a   :  { %v1639_v1 = vsub.f32 %v1628_v51, %v1637_v29  ;;  %v4848_v51 = vld [vmem:[%s6620_s2 + $0x28] sm:$0xff]  }
0x116b   :  { %1642 = vadd.xlane.f32.xlu0 %v1640_v63  ;;  %4293 = vmatpush3.bf16.msra.mxu0 %v4848_v51 }
0x116c   :  { %v1641_v2 = vmul.f32 %v1639_v1, %v1639_v1  ;;  %4294 = vmatprep.subr.bf16.mxu0 %v4849_v52 }
0x116e   :  { %v1644_v3 = vsel %vm6619_vm3, %v1641_v2, 0.0  ;;  %vm2431_vm3 = vcmp.le.s32.totalorder %v6110_v21, %v6118_v22 }
0x116f   :  { %1645 = vadd.xlane.f32.xlu0 %v1644_v3  ;;  %4295 = vmatpush3.bf16.msra.mxu0 %v4850_v53 }
0x1170   :  { %4296 = vmatprep.subr.bf16.mxu0 %v4851_v54 }
0x1173   :  { %4297 = vmatpush3.bf16.msra.mxu0 %v4852_v56  ;;  %v4855_v56 = vld [vmem:[#allocation32 + $0x10] sm:$0xff]  }
0x1174   :  { %4504 = vmatprep.subr.bf16.mxu0 %v5661_v24 }
0x11f8   :  { %v1643_v14 = vpop.xlane.xlu0 %1642 }
0x11f9   :  { %v1647_v15 = vmul.f32 0.0078125, %v1643_v14 }
0x11fb   :  { %v1649_v19 = vadd.f32 1e-05, %v1647_v15 }
0x11fc   :  { %v1646_v17 = vpop.xlane.xlu0 %1645 }
0x11fd   :  { %4997 = vrsqrt.f32 %v1649_v19  ;;  %v1648_v23 = vmul.f32 0.0078125, %v1646_v17 }
0x11ff   :  { %v1650_v26 = vadd.f32 1e-05, %v1648_v23 }
0x1201   :  { %4999 = vrsqrt.f32 %v1650_v26 }
0x1207   :  { %v4998_v27 = vpop.eup %4997 }
0x1208   :  { %v1653_v28 = vmul.f32 %v4998_v27, %v1638_v61 }
0x120a   :  { %v1661_v32 = vmul.f32 %v4094_v30, %v1653_v28 }
0x120b   :  { %v5000_v6 = vpop.eup %4999 }
0x120c   :  { %v1654_v31 = vmul.f32 %v5000_v6, %v1639_v1  ;;  %v1669_v35 = vadd.f32 %v4095_v33, %v1661_v32 }
0x120e   :  { %v1662_v34 = vmul.f32 %v4094_v30, %v1654_v31 }
0x1210   :  { %v1670_v36 = vadd.f32 %v4095_v33, %v1662_v34 }
0x1212   :  { %v1687_v37 = vpack.c.bf16 %v1670_v36, %v1669_v35 }
0x1214   :  { %1813 = vmatmul.mubr.bf16.vlgmr.msra.gmra.mrb[12].mxu1 %v1687_v37  ;;  %v4116_v37 = vld [vmem:[#allocation25] ss:$0 sm:$0xff] }
0x1215   :  { %4500 = vmatprep.mubr.msk.bf16.mxu1 %vm5662_vm5, %v5661_v24  ;;  %4485 = vmatpush3.bf16.msra.mxu1 %v4853_v49 }
0x1216   :  { %4486 = vmatprep.subr.bf16.mxu1 %v5661_v24 }
0x1219   :  { %4487 = vmatpush3.bf16.msra.mxu1 %v4854_v50 }
0x121a   :  { %4488 = vmatprep.subr.bf16.mxu1 %v5661_v24 }
0x121d   :  { %4489 = vmatpush3.bf16.msra.mxu1 %v4855_v56  ;;  %v4877_v56 = vld [vmem:[%s6625_s25] ss:$12 sps:$4 sm:$0xff]  }
0x121e   :  { %4490 = vmatprep.subr.bf16.mxu1 %v5661_v24 }
0x1221   :  { %4491 = vmatpush3.bf16.msra.mxu1 %v4856_v59  ;;  %v4879_v59 = vld [vmem:[%s6625_s25 + $0x4] ss:$12 sps:$4 sm:$0xff]  }
0x1222   :  { %4492 = vmatprep.subr.bf16.mxu1 %v5661_v24 }
0x12e7   :  { %v1814_v61 = vpop.f32.mrb[12].mxu1 }
0x12e8   :  { %v1815_v58 = vadd.f32 %v1814_v61, %v1693_v62  ;;  %v1816_v29 = vpop.f32.mrb[13].mxu1  ;;  %v4859_v61 = vld [vmem:[#allocation32 + $0x30] sm:$0xff]  }
0x12e9   :  { %v1817_v63 = vadd.f32 %v1816_v29, %v1697_v25  ;;  %v1818_v1 = vpop.f32.mrb[14].mxu1  ;;  %v422_v29 = vld [vmem:[%s6624_s21] sm:$0xff] }
0x12ea   :  { %v4112_v2 = vmul.f32 -1.702, %v1815_v58  ;;  %v1819_v3 = vadd.f32 %v1818_v1, %v1693_v62  ;;  %v1820_v4 = vpop.f32.mrb[15].mxu1  ;;  %v4857_v62 = vld [vmem:[#allocation32 + $0x20] sm:$0xff]   ;;  %v4861_v1 = vld [vmem:[#allocation17] sm:$0xff]  }
0x12eb   :  { %v4113_v7 = vmul.f32 -1.702, %v1817_v63  ;;  %v1821_v9 = vadd.f32 %v1820_v4, %v1697_v25  ;;  %4493 = vmatpush3.bf16.msra.mxu1 %v4857_v62  ;;  %v4858_v25 = vld [vmem:[#allocation32 + $0x28] sm:$0xff]  }
0x12ec   :  { %v1831_v10 = vmul.f32 1.442695, %v4112_v2  ;;  %v4114_v16 = vmul.f32 -1.702, %v1819_v3  ;;  %4494 = vmatprep.subr.bf16.mxu1 %v5661_v24  ;;  %v4863_v2 = vld [vmem:[#allocation17 + $0x8] sm:$0xff]   ;;  %v4867_v4 = vld [vmem:[#allocation17 + $0x18] sm:$0xff]  }
0x12ed   :  { %v1833_v43 = vmul.f32 1.442695, %v4113_v7  ;;  %v4115_v45 = vmul.f32 -1.702, %v1821_v9  ;;  %v4869_v7 = vld [vmem:[#allocation17 + $0x20] sm:$0xff]  }
0x12ee   :  { %5001 = vpow2.f32 %v1831_v10  ;;  %v1835_v46 = vmul.f32 1.442695, %v4114_v16  ;;  %v4873_v10 = vld [vmem:[#allocation17 + $0x30] sm:$0xff]  }
0x12ef   :  { %5003 = vpow2.f32 %v1833_v43  ;;  %v1837_v11 = vmul.f32 1.442695, %v4115_v45  ;;  %4495 = vmatpush3.bf16.msra.mxu1 %v4858_v25  ;;  %v4880_v62 = vld [vmem:[%s6625_s25 + $0x8] ss:$12 sps:$4 sm:$0xff]  }
0x12f0   :  { %5005 = vpow2.f32 %v1835_v46  ;;  %4496 = vmatprep.subr.bf16.mxu1 %v5661_v24  ;;  %v4883_v25 = vld [vmem:[%s6625_s25 + $0x1c] ss:$12 sps:$4 sm:$0xff]  }
0x12f1   :  { %5007 = vpow2.f32 %v1837_v11  ;;  %v4133_v11 = vld [vmem:[#allocation11] ss:$0 sm:$0xff] }
0x12f3   :  { %4497 = vmatpush3.bf16.msra.mxu1 %v4859_v61  ;;  %v4881_v61 = vld [vmem:[%s6625_s25 + $0x18] ss:$12 sps:$4 sm:$0xff]  }
0x12f4   :  { %4498 = vmatprep.subr.bf16.mxu1 %v5661_v24 }
0x12f8   :  { %v5002_v12 = vpop.eup %5001 }
0x12f9   :  { %v5004_v13 = vpop.eup %5003  ;;  %v1839_v5 = vadd.f32 1.0, %v5002_v12 }
0x12fa   :  { %v5006_v14 = vpop.eup %5005  ;;  %v1840_v15 = vadd.f32 1.0, %v5004_v13  ;;  %v4134_v13 = vld [vmem:[#allocation10] ss:$0 sm:$0xff] }
0x12fb   :  { %v5008_v19 = vpop.eup %5007  ;;  %5009 = vrcp.f32 %v1839_v5  ;;  %v1841_v17 = vadd.f32 1.0, %v5006_v14 }
0x12fc   :  { %5011 = vrcp.f32 %v1840_v15  ;;  %v1842_v23 = vadd.f32 1.0, %v5008_v19  ;;  %v4862_v15 = vld [vmem:[#allocation34] sm:$0xff]  }
0x12fd   :  { %5013 = vrcp.f32 %v1841_v17  ;;  %v4864_v17 = vld [vmem:[#allocation34 + $0x8] sm:$0xff]  }
0x12fe   :  { %5015 = vrcp.f32 %v1842_v23  ;;  %v4866_v23 = vld [vmem:[#allocation34 + $0x10] sm:$0xff]  }
0x1305   :  { %v5010_v26 = vpop.eup %5009 }
0x1306   :  { %v5012_v27 = vpop.eup %5011  ;;  %v1851_v6 = vmul.f32 %v5010_v26, %v1815_v58  ;;  %v4860_v58 = vld [vmem:[#allocation32 + $0x38] sm:$0xff]  }
0x1307   :  { %v5014_v28 = vpop.eup %5013  ;;  %v1852_v32 = vmul.f32 %v5012_v27, %v1817_v63  ;;  %4499 = vmatpush3.bf16.msra.mxu1 %v4860_v58  ;;  %v423_v63 = vld [vmem:[%s6624_s21 + $0x8] sm:$0xff]  ;;  %v4868_v26 = vld [vmem:[#allocation34 + $0x18] sm:$0xff]  }
0x1308   :  { %v5016_v30 = vpop.eup %5015  ;;  %v1853_v31 = vmul.f32 %v5014_v28, %v1819_v3  ;;  %4524 = vmatprep.subr.bf16.mxu1 %v5661_v24  ;;  %v4865_v3 = vld [vmem:[#allocation17 + $0x10] sm:$0xff]   ;;  %v4872_v28 = vld [vmem:[#allocation34 + $0x28] sm:$0xff]  }
0x1309   :  { %v1854_v33 = vmul.f32 %v5016_v30, %v1821_v9  ;;  %v4871_v9 = vld [vmem:[#allocation17 + $0x28] sm:$0xff]   ;;  %v4870_v27 = vld [vmem:[#allocation34 + $0x20] sm:$0xff]  }
0x130a   :  { %v1887_v34 = vpack.c.bf16 %v1853_v31, %v1851_v6  ;;  %v4874_v30 = vld [vmem:[#allocation34 + $0x30] sm:$0xff]   ;;  %v4875_v6 = vld [vmem:[#allocation17 + $0x38] sm:$0xff]   ;;  %v4876_v31 = vld [vmem:[#allocation34 + $0x38] sm:$0xff]  }
0x130b   :  { %v1888_v35 = vpack.c.bf16 %v1854_v33, %v1852_v32 }
0x130d   :  { %2024 = vmatprep.mubr.bf16.mxu0 %v1888_v35 }
0x130e   :  { %2025 = vmatmul.mubr.bf16.vlgmr.msra.gmra.mrb[36].mxu0 %v1887_v34  ;;  %v5666_v34 = vmov 1.0|1.0  }
0x130f   :  { %4520 = vmatprep.mubr.msk.bf16.mxu0 %vm5662_vm5, %v5661_v24  ;;  %4505 = vmatpush3.bf16.msra.mxu0 %v4861_v1 }
0x1310   :  { %4506 = vmatprep.subr.bf16.mxu0 %v5661_v24 }
0x1313   :  { %4507 = vmatpush3.bf16.msra.mxu0 %v4863_v2 }
0x1314   :  { %4508 = vmatprep.subr.bf16.mxu0 %v5661_v24 }
0x1317   :  { %4509 = vmatpush3.bf16.msra.mxu0 %v4865_v3 }
0x1318   :  { %4510 = vmatprep.subr.bf16.mxu0 %v5661_v24 }
0x131b   :  { %4511 = vmatpush3.bf16.msra.mxu0 %v4867_v4 }
0x131c   :  { %4512 = vmatprep.subr.bf16.mxu0 %v5661_v24 }
0x131f   :  { %4513 = vmatpush3.bf16.msra.mxu0 %v4869_v7 }
0x1320   :  { %4514 = vmatprep.subr.bf16.mxu0 %v5661_v24 }
0x1323   :  { %4515 = vmatpush3.bf16.msra.mxu0 %v4871_v9  ;;  %v4884_v9 = vld [vmem:[%s6625_s25 + $0x20] ss:$12 sps:$4 sm:$0xff]  }
0x1324   :  { %4516 = vmatprep.subr.bf16.mxu0 %v5661_v24 }
0x1327   :  { %4517 = vmatpush3.bf16.msra.mxu0 %v4873_v10  ;;  %v4887_v10 = vld [vmem:[%s6625_s25 + $0x34] ss:$12 sps:$4 sm:$0xff]  }
0x1328   :  { %4518 = vmatprep.subr.bf16.mxu0 %v5661_v24 }
0x132b   :  { %4519 = vmatpush3.bf16.msra.mxu0 %v4875_v6 }
0x132c   :  { %2672 = vmatprep.subr.bf16.mxu0 %v4879_v59 }
0x13e1   :  { %v4298_v36 = vpop.f32.mrb[36].mxu0 }
0x13e2   :  { %v4299_v38 = vpop.f32.mrb[37].mxu0 }
0x13e3   :  { %v4300_v39 = vadd.f32 %v4299_v38, %v4298_v36  ;;  %v4301_v40 = vpop.f32.mrb[38].mxu0 }
0x13e4   :  { %v4302_v41 = vpop.f32.mrb[39].mxu0 }
0x13e5   :  { %v2027_v42 = vadd.f32 %v4300_v39, %v4116_v37 }
0x13e7   :  { %v2032_v60 = vadd.f32 %v2027_v42, %v6230_v48 }
0x13e9   :  { %v2034_v44 = vrot.slane %v2032_v60, 4 }
0x13eb   :  { %v2036_v57 = vsel %vm6621_vm8, %v2032_v60, %v2034_v44  ;;  %v4143_v44 = vld [vmem:[#allocation16] ss:$0 sm:$0xff]  ;;  %vm6413_vm8 = vmand %vm2413_vm4, %vm2430_vm7 }
0x13ec   :  { %v2039_v47 = vsel %vm6622_vm9, %v2036_v57, 0.0  ;;  %vm6417_vm9 = vmand %vm2425_vm2, %vm2431_vm3 }
0x13ed   :  { %2040 = vadd.xlane.f32.xlu0 %v2039_v47 }
0x1403   :  { %2284 = vperm.xlu0 %4744, %v422_v29  }
0x147a   :  { %v2041_v51 = vpop.xlane.xlu0 %2040 }
0x147b   :  { %v2042_v52 = vmul.f32 0.0078125, %v2041_v51 }
0x147d   :  { %v2043_v53 = vsub.f32 %v2036_v57, %v2042_v52 }
0x147f   :  { %v2044_v54 = vmul.f32 %v2043_v53, %v2043_v53 }
0x1481   :  { %v2045_v48 = vsel %vm6623_vm10, %v2044_v54, 0.0  ;;  %vm2809_vm10 = vcmask 130048  }
0x1482   :  { %2046 = vadd.xlane.f32.xlu1 %v2045_v48  ;;  %v2285_v33 = vpop.permute.xlu0 %2284 }
0x1483   :  { %vm2289_vm12 = vcmp.eq.s32.totalorder %v6110_v21, %v2285_v33 }
0x1493   :  { %2287 = vperm.xlu1 %4745, %v423_v63  }
0x150f   :  { %v2047_v16 = vpop.xlane.xlu1 %2046 }
0x1510   :  { %v2048_v43 = vmul.f32 0.0078125, %v2047_v16  ;;  %v4885_v16 = vld [vmem:[%s6625_s25 + $0x30] ss:$12 sps:$4 sm:$0xff]  }
0x1512   :  { %v2049_v45 = vadd.f32 1e-05, %v2048_v43  ;;  %v4888_v43 = vld [vmem:[%s6625_s25 + $0x38] ss:$12 sps:$4 sm:$0xff]  }
0x1513   :  { %v2288_v32 = vpop.permute.xlu1 %2287 }
0x1514   :  { %5017 = vrsqrt.f32 %v2049_v45  ;;  %vm2290_vm11 = vcmp.eq.s32.totalorder %v6110_v21, %v2288_v32  ;;  %v4891_v45 = vld [vmem:[%s6625_s25 + $0x4c] ss:$12 sps:$4 sm:$0xff]  }
0x1515   :  { %vm4162_vm13 = vmpackc.low %vm2290_vm11, %vm2289_vm12  ;;  %vm3939_vm11 = vcmask 7168   ;;  %vm3969_vm12 = vcmask 0  }
0x151e   :  { %v5018_v46 = vpop.eup %5017 }
0x151f   :  { %v2051_v12 = vmul.f32 %v5018_v46, %v2043_v53  ;;  %v4889_v46 = vld [vmem:[%s6625_s25 + $0x48] ss:$12 sps:$4 sm:$0xff]  }
0x1521   :  { %v2058_v5 = vmul.f32 %v4133_v11, %v2051_v12  ;;  %v4892_v11 = vld [vmem:[%s6625_s25 + $0x50] ss:$12 sps:$4 sm:$0xff]  }
0x1522   :  { %v4895_v12 = vld [vmem:[%s6625_s25 + $0x64] ss:$12 sps:$4 sm:$0xff]  }
0x1523   :  { %v2065_v14 = vadd.f32 %v4134_v13, %v2058_v5  ;;  %v4893_v13 = vld [vmem:[%s6625_s25 + $0x60] ss:$12 sps:$4 sm:$0xff]   ;;  %v4896_v5 = vld [vmem:[%s6625_s25 + $0x68] ss:$12 sps:$4 sm:$0xff]  }
0x1525   :  { %v2082_v19 = vpack.c.bf16 %v2065_v14, %v2065_v14  ;;  %v4899_v14 = vld [vmem:[%s6625_s25 + $0x7c] ss:$12 sps:$4 sm:$0xff]  }
0x1527   :  { %4501 = vmatmul.mubr.bf16.vlgmr.msra.gmra.mrb[16].mxu1 %v2082_v19  ;;  %v4900_v19 = vld [vmem:[%s6625_s25 + $0x80] ss:$12 sps:$4 sm:$0xff]  }
0x1528   :  { %4525 = vmatpush3.bf16.msra.mxu1 %v4862_v15  ;;  %4540 = vmatprep.mubr.msk.bf16.mxu1 %vm5662_vm5, %v5661_v24  ;;  %v4897_v15 = vld [vmem:[%s6625_s25 + $0x78] ss:$12 sps:$4 sm:$0xff]  }
0x1529   :  { %4526 = vmatprep.subr.bf16.mxu1 %v5661_v24 }
0x152c   :  { %4527 = vmatpush3.bf16.msra.mxu1 %v4864_v17  ;;  %v4903_v17 = vld [vmem:[%s6625_s25 + $0x94] ss:$12 sps:$4 sm:$0xff]  }
0x152d   :  { %4528 = vmatprep.subr.bf16.mxu1 %v5661_v24 }
0x1530   :  { %4529 = vmatpush3.bf16.msra.mxu1 %v4866_v23  ;;  %v4901_v23 = vld [vmem:[%s6625_s25 + $0x90] ss:$12 sps:$4 sm:$0xff]  }
0x1531   :  { %4530 = vmatprep.subr.bf16.mxu1 %v5661_v24 }
0x1534   :  { %4531 = vmatpush3.bf16.msra.mxu1 %v4868_v26  ;;  %v4904_v26 = vld [vmem:[%s6625_s25 + $0x98] ss:$12 sps:$4 sm:$0xff]  }
0x1535   :  { %4532 = vmatprep.subr.bf16.mxu1 %v5661_v24 }
0x1538   :  { %4533 = vmatpush3.bf16.msra.mxu1 %v4870_v27  ;;  %v4907_v27 = vld [vmem:[%s6625_s25 + $0xac] ss:$12 sps:$4 sm:$0xff]  }
0x1539   :  { %4534 = vmatprep.subr.bf16.mxu1 %v5661_v24 }
0x153c   :  { %4535 = vmatpush3.bf16.msra.mxu1 %v4872_v28  ;;  %v4905_v28 = vld [vmem:[%s6625_s25 + $0xa8] ss:$12 sps:$4 sm:$0xff]  }
0x153d   :  { %4536 = vmatprep.subr.bf16.mxu1 %v5661_v24 }
0x1540   :  { %4537 = vmatpush3.bf16.msra.mxu1 %v4874_v30  ;;  %v4908_v30 = vld [vmem:[%s6625_s25 + $0xb0] ss:$12 sps:$4 sm:$0xff]  }
0x1541   :  { %4538 = vmatprep.subr.bf16.mxu1 %v5661_v24 }
0x1544   :  { %4539 = vmatpush3.bf16.msra.mxu1 %v4876_v31 }
0x1545   :  { %4544 = vmatprep.subr.bf16.mxu1 %v5661_v24 }
0x1547   :  { %4541 = vmatmul.mubr.msk.bf16.vlgmr.msra.gmra.mrb[20].mxu1 %vm4162_vm13, %v5666_v34 }
0x1548   :  { %4560 = vmatprep.mubr.msk.bf16.mxu1 %vm5662_vm5, %v5661_v24  ;;  %4545 = vmatpush3.bf16.msra.mxu1 %v4880_v62 }
0x1549   :  { %4546 = vmatprep.subr.bf16.mxu1 %v5661_v24 }
0x154c   :  { %4547 = vmatpush3.bf16.msra.mxu1 %v4884_v9 }
0x154d   :  { %4548 = vmatprep.subr.bf16.mxu1 %v5661_v24 }
0x1550   :  { %4549 = vmatpush3.bf16.msra.mxu1 %v4888_v43 }
0x1551   :  { %4550 = vmatprep.subr.bf16.mxu1 %v5661_v24 }
0x1554   :  { %4551 = vmatpush3.bf16.msra.mxu1 %v4892_v11 }
0x1555   :  { %4552 = vmatprep.subr.bf16.mxu1 %v5661_v24 }
0x1558   :  { %4553 = vmatpush3.bf16.msra.mxu1 %v4896_v5 }
0x1559   :  { %4554 = vmatprep.subr.bf16.mxu1 %v5661_v24 }
0x155c   :  { %4555 = vmatpush3.bf16.msra.mxu1 %v4900_v19  ;;  %v2434_v19 = vsub.s32 %v6110_v21, %v6023_v18 }
0x155d   :  { %4556 = vmatprep.subr.bf16.mxu1 %v5661_v24 }
0x1560   :  { %4557 = vmatpush3.bf16.msra.mxu1 %v4904_v26 }
0x1561   :  { %4558 = vmatprep.subr.bf16.mxu1 %v5661_v24 }
0x1564   :  { %4559 = vmatpush3.bf16.msra.mxu1 %v4908_v30 }
0x1565   :  { %4570 = vmatprep.subr.bf16.mxu1 %v5661_v24 }
0x15fa   :  { %v2165_v35 = vpop.f32.mrb[16].mxu1 }
0x15fb   :  { %v2187_v36 = vpack.c.bf16 %v2165_v35, %v2165_v35  ;;  %v4502_v37 = vpop.f32.mrb[17].mxu1 }
0x15fc   :  { %v2168_v38 = vpop.f32.mrb[18].mxu1 }
0x15fd   :  { %v4503_v39 = vpop.f32.mrb[19].mxu1  ;;  %4521 = vmatmul.mubr.bf16.vlgmr.msra.gmra.mrb[40].mxu0 %v2187_v36  ;;  %v4164_v38 = vld [vmem:[%s6626_s0] ss:$0 sm:$0xff] }
0x15fe   :  { %2704 = vmatprep.mubr.bf16.mxu0 %v5660_v0  ;;  %2673 = vmatpush1.bf16.msra.mxu0 %v4877_v56 }
0x15ff   :  { %2674 = vmatprep.subr.bf16.mxu0 %v4883_v25 }
0x1602   :  { %2675 = vmatpush1.bf16.msra.mxu0 %v4881_v61 }
0x1603   :  { %2676 = vmatprep.subr.bf16.mxu0 %v4887_v10 }
0x1606   :  { %2677 = vmatpush1.bf16.msra.mxu0 %v4885_v16 }
0x1607   :  { %2678 = vmatprep.subr.bf16.mxu0 %v4891_v45 }
0x160a   :  { %2679 = vmatpush1.bf16.msra.mxu0 %v4889_v46 }
0x160b   :  { %2680 = vmatprep.subr.bf16.mxu0 %v4895_v12 }
0x160e   :  { %2681 = vmatpush1.bf16.msra.mxu0 %v4893_v13 }
0x160f   :  { %2682 = vmatprep.subr.bf16.mxu0 %v4899_v14 }
0x1612   :  { %2683 = vmatpush1.bf16.msra.mxu0 %v4897_v15 }
0x1613   :  { %2684 = vmatprep.subr.bf16.mxu0 %v4903_v17  ;;  %v2435_v17 = vsub.s32 %v6110_v21, %v6118_v22 }
0x1615   :  { %v2437_v26 = vcvt.s32.f32 %v2435_v17 }
0x1616   :  { %2685 = vmatpush1.bf16.msra.mxu0 %v4901_v23  ;;  %v2436_v23 = vcvt.s32.f32 %v2434_v19 }
0x1617   :  { %2686 = vmatprep.subr.bf16.mxu0 %v4907_v27  ;;  %v2439_v30 = vmul.f32 0.25, %v2437_v26 }
0x1618   :  { %v2438_v27 = vmul.f32 0.25, %v2436_v23 }
0x1619   :  { %v2441_v22 = vsel %vm6417_vm9, %v2439_v30, -1e+09 }
0x161a   :  { %v2402_v40 = vpop.f32.mrb[20].mxu1  ;;  %2687 = vmatpush1.bf16.msra.mxu0 %v4905_v28 }
0x161b   :  { %v4542_v41 = vpop.f32.mrb[21].mxu1  ;;  %4564 = vmatprep.subr.bf16.mxu0 %v5661_v24 }
0x161c   :  { %v2405_v42 = vpop.f32.mrb[22].mxu1 }
0x161d   :  { %v4543_v60 = vpop.f32.mrb[23].mxu1 }
0x16d0   :  { %v2277_v57 = vpop.f32.mrb[40].mxu0 }
0x16d1   :  { %v2278_v47 = vadd.f32 %v4143_v44, %v2277_v57  ;;  %v4522_v49 = vpop.f32.mrb[41].mxu0 }
0x16d2   :  { %v2280_v50 = vpop.f32.mrb[42].mxu0  ;;  %v2527_v49 = vld [vmem:[%s6628_s3] sm:$0x7] }
0x16d3   :  { %v2315_v51 = vrot.slane %v2278_v47, %v6026_v20  ;;  %v4523_v52 = vpop.f32.mrb[43].mxu0  ;;  %v2319_v53 = vrot.slane %v2278_v47, %v6086_v55  ;;  %v2532_v50 = vrot.slane %v2527_v49, %v6026_v20  ;;  %v2536_v56 = vrot.slane %v2527_v49, %v6086_v55 }
0x16d5   :  { %v6315_v54 = vadd.f32 %v2402_v40, %v2315_v51  ;;  %v6317_v48 = vadd.f32 %v2405_v42, %v2319_v53  ;;  %v4165_v42 = vld [vmem:[%s6627_s7] ss:$0 sm:$0xff]  ;;  %v2540_v51 = vrot.slane %v2527_v49, %v755_v8 }
0x16d7   :  { %2456 = vadd.xlane.f32.xlu1 %v6315_v54  ;;  %2458 = vadd.xlane.f32.xlu0 %v6317_v48 }
0x1764   :  { %v2457_v58 = vpop.xlane.xlu1 %2456  ;;  %v2459_v29 = vpop.xlane.xlu0 %2458 }
0x1765   :  { %v2460_v63 = vmul.f32 0.0078125, %v2457_v58  ;;  %v2461_v1 = vmul.f32 0.0078125, %v2459_v29 }
0x1767   :  { %v2462_v2 = vsub.f32 %v6315_v54, %v2460_v63  ;;  %v6329_v3 = vsub.f32 %v6317_v48, %v2461_v1 }
0x1769   :  { %v2464_v4 = vmul.f32 %v2462_v2, %v2462_v2  ;;  %v2465_v7 = vmul.f32 %v6329_v3, %v6329_v3 }
0x176b   :  { %2466 = vadd.xlane.f32.xlu1 %v2464_v4 }
0x176f   :  { %2468 = vadd.xlane.f32.xlu1 %v2465_v7 }
0x17f8   :  { %v2467_v6 = vpop.xlane.xlu1 %2466 }
0x17f9   :  { %v2470_v31 = vmul.f32 0.0078125, %v2467_v6 }
0x17fb   :  { %v2472_v32 = vadd.f32 1e-05, %v2470_v31 }
0x17fc   :  { %v2469_v33 = vpop.xlane.xlu1 %2468 }
0x17fd   :  { %5019 = vrsqrt.f32 %v2472_v32  ;;  %v2471_v34 = vmul.f32 0.0078125, %v2469_v33  ;;  %v2440_v32 = vsel %vm6413_vm8, %v2438_v27, -1e+09 }
0x17ff   :  { %v2473_v35 = vadd.f32 1e-05, %v2471_v34 }
0x1801   :  { %5021 = vrsqrt.f32 %v2473_v35 }
0x1807   :  { %v5020_v36 = vpop.eup %5019 }
0x1808   :  { %v2476_v37 = vmul.f32 %v5020_v36, %v2462_v2 }
0x180a   :  { %v2484_v41 = vmul.f32 %v4164_v38, %v2476_v37 }
0x180b   :  { %v5022_v39 = vpop.eup %5021 }
0x180c   :  { %v2477_v40 = vmul.f32 %v5022_v39, %v6329_v3  ;;  %v2492_v44 = vadd.f32 %v4165_v42, %v2484_v41  ;;  %v2442_v41 = vmul.f32 0.0625, %v2436_v23 }
0x180e   :  { %v2485_v60 = vmul.f32 %v4164_v38, %v2477_v40 }
0x1810   :  { %v2493_v57 = vadd.f32 %v4165_v42, %v2485_v60  ;;  %v2443_v42 = vmul.f32 0.0625, %v2437_v26 }
0x1812   :  { %v2526_v47 = vpack.c.bf16 %v2493_v57, %v2492_v44  ;;  %v2444_v44 = vsel %vm6413_vm8, %v2442_v41, -1e+09 }
0x1814   :  { %2705 = vmatmul.mubr.bf16.vlgmr.msra.gmra.mrb[44].mxu0 %v2526_v47  ;;  %4561 = vmatmul.mubr.bf16.vlgmr.msra.gmra.mrb[24].mxu1 %v2526_v47 }
0x1815   :  { %4566 = vmatprep.mubr.msk.bf16.mxu0 %vm5662_vm5, %v5661_v24  ;;  %4572 = vmatprep.mubr.msk.bf16.mxu1 %vm5662_vm5, %v5661_v24 }
0x18e7   :  { %v2706_v52 = vpop.f32.mrb[44].mxu0  ;;  %v2749_v53 = vpop.f32.mrb[24].mxu1 }
0x18e8   :  { %v2708_v59 = vpop.f32.mrb[45].mxu0  ;;  %v4562_v62 = vpop.f32.mrb[25].mxu1  ;;  %v2707_v58 = vadd.f32 %v2706_v52, %v2532_v50  ;;  %v2750_v29 = vadd.f32 %v2749_v53, %v2540_v51 }
0x18e9   :  { %v2710_v25 = vpop.f32.mrb[46].mxu0  ;;  %v2752_v61 = vpop.f32.mrb[26].mxu1  ;;  %v2709_v4 = vadd.f32 %v2708_v59, %v2536_v56 }
0x18ea   :  { %v2711_v63 = vadd.f32 %v2710_v25, %v2532_v50  ;;  %v2753_v1 = vadd.f32 %v2752_v61, %v2540_v51  ;;  %v2712_v2 = vpop.f32.mrb[47].mxu0  ;;  %v4563_v3 = vpop.f32.mrb[27].mxu1  ;;  %v2445_v50 = vsel %vm6417_vm9, %v2443_v42, -1e+09  ;;  %v2447_v25 = vmul.f32 0.015625, %v2437_v26 }
0x18eb   :  { %v2713_v7 = vadd.f32 %v2712_v2, %v2536_v56  ;;  %v2446_v56 = vmul.f32 0.015625, %v2436_v23 }
0x18ec   :  { %v2756_v9 = vpack.c.bf16 %v2711_v63, %v2707_v58  ;;  %v6372_v10 = vpack.c.bf16 %v2753_v1, %v2750_v29  ;;  %v2449_v3 = vsel %vm6417_vm9, %v2447_v25, -1e+09 }
0x18ed   :  { %v2757_v8 = vpack.c.bf16 %v2713_v7, %v2709_v4  ;;  %v2448_v29 = vsel %vm6413_vm8, %v2446_v56, -1e+09 }
0x18ee   :  { %2879 = vrot.lane.b32.xlu0 %v2756_v9, %s5664_s17  ;;  %4571 = vmatpush3.bf16.msra.mxu1 %v6372_v10 }
0x18ef   :  { %2882 = vrot.lane.b32.xlu1 %v2757_v8, %s5664_s17  ;;  %v2762_v16 = vsel %vm974_vm6, %v2757_v8, 0  ;;  %4582 = vmatprep.subr.bf16.mxu1 %v5661_v24 }
0x18f0   :  { %4565 = vmatpush3.bf16.xpose.msra.mxu0 %v2762_v16 }
0x18f1   :  { %4576 = vmatprep.subr.bf16.mxu0 %v5661_v24 }
0x18f3   :  { %3008 = vrot.lane.b32.xlu1 %v2757_v8, %s5643_s24 }
0x18f7   :  { %3006 = vrot.lane.b32.xlu1 %v2756_v9, %s5643_s24  ;;  %4567 = vmatmul.mubr.msk.bf16.vlgmr.msra.gmra.mrb[48].mxu0 %vm974_vm6, %v2756_v9 }
0x18f8   :  { %4578 = vmatprep.mubr.msk.bf16.mxu0 %vm5662_vm5, %v5661_v24 }
0x18fb   :  { %3133 = vrot.lane.b32.xlu1 %v2757_v8, %s5665_s30  ;;  %v2450_v8 = vmul.f32 0.00390625, %v2436_v23 }
0x18ff   :  { %3131 = vrot.lane.b32.xlu1 %v2756_v9, %s5665_s30 }
0x1960   :  { %v2880_v11 = vpop.permute.xlu0 %2879 }
0x1961   :  { %v2883_v43 = vpop.permute.xlu1 %2882 }
0x1962   :  { %v2888_v45 = vsel %vm974_vm6, %v2883_v43, 0 }
0x1963   :  { %4577 = vmatpush3.bf16.xpose.msra.mxu0 %v2888_v45  ;;  %v2451_v45 = vmul.f32 0.00390625, %v2437_v26 }
0x1964   :  { %4588 = vmatprep.subr.bf16.mxu0 %v5661_v24 }
0x1965   :  { %v3009_v46 = vpop.permute.xlu1 %3008 }
0x1966   :  { %v3014_v13 = vsel %vm974_vm6, %v3009_v46, 0 }
0x1969   :  { %v3007_v12 = vpop.permute.xlu1 %3006 }
0x196a   :  { %4579 = vmatmul.mubr.msk.bf16.vlgmr.msra.gmra.mrb[52].mxu0 %vm974_vm6, %v2880_v11 }
0x196b   :  { %4589 = vmatpush3.bf16.xpose.msra.mxu0 %v3014_v13  ;;  %4590 = vmatprep.mubr.msk.bf16.mxu0 %vm5662_vm5, %v5661_v24 }
0x196c   :  { %4600 = vmatprep.subr.bf16.mxu0 %v5661_v24 }
0x196d   :  { %v3134_v5 = vpop.permute.xlu1 %3133 }
0x196e   :  { %v3139_v14 = vsel %vm974_vm6, %v3134_v5, 0 }
0x1971   :  { %v3132_v15 = vpop.permute.xlu1 %3131 }
0x1972   :  { %4591 = vmatmul.mubr.msk.bf16.vlgmr.msra.gmra.mrb[56].mxu0 %vm974_vm6, %v3007_v12  ;;  %v2452_v12 = vsel %vm6413_vm8, %v2450_v8, -1e+09 }
0x1973   :  { %4601 = vmatpush3.bf16.xpose.msra.mxu0 %v3139_v14  ;;  %4602 = vmatprep.mubr.msk.bf16.mxu0 %vm5662_vm5, %v5661_v24 }
0x1974   :  { %4612 = vmatprep.subr.bf16.mxu0 %v5661_v24 }
0x197a   :  { %4603 = vmatmul.mubr.msk.bf16.vlgmr.msra.gmra.mrb[60].mxu0 %vm974_vm6, %v3132_v15  ;;  %v2453_v15 = vsel %vm6417_vm9, %v2451_v45, -1e+09 }
0x197b   :  { %4628 = vmatprep.mubr.msk.bf16.mxu0 %vm5662_vm5, %v5661_v24 }
0x19ca   :  { %v2798_v31 = vpop.f32.mrb[48].mxu0 }
0x19cb   :  { %v2805_v18 = vmul.f32 0.17677669, %v2798_v31  ;;  %v4568_v33 = vpop.f32.mrb[49].mxu0 }
0x19cc   :  { %v2801_v34 = vpop.f32.mrb[50].mxu0 }
0x19cd   :  { %v2806_v35 = vmul.f32 0.17677669, %v2801_v34  ;;  %v4569_v36 = vpop.f32.mrb[51].mxu0  ;;  %v2807_v37 = vadd.f32 %v2805_v18, %v2440_v32 }
0x19cf   :  { %v2810_v38 = vsel %vm2809_vm10, %v2807_v37, -inf  ;;  %v2808_v39 = vadd.f32 %v2806_v35, %v2441_v22 }
0x19d0   :  { %2811 = vmax.xlane.f32.xlu1 %v2810_v38 }
0x19d1   :  { %v2813_v40 = vsel %vm2809_vm10, %v2808_v39, -inf }
0x19d2   :  { %2814 = vmax.xlane.f32.xlu0 %v2813_v40 }
0x1a3d   :  { %v2924_v60 = vpop.f32.mrb[52].mxu0 }
0x1a3e   :  { %v2931_v57 = vmul.f32 0.17677669, %v2924_v60  ;;  %v4580_v47 = vpop.f32.mrb[53].mxu0 }
0x1a3f   :  { %v2927_v49 = vpop.f32.mrb[54].mxu0 }
0x1a40   :  { %v2932_v51 = vmul.f32 0.17677669, %v2927_v49  ;;  %v4581_v52 = vpop.f32.mrb[55].mxu0  ;;  %v2933_v53 = vadd.f32 %v2931_v57, %v2444_v44 }
0x1a42   :  { %v2935_v59 = vsel %vm2809_vm10, %v2933_v53, -inf  ;;  %v2934_v62 = vadd.f32 %v2932_v51, %v2445_v50 }
0x1a43   :  { %2936 = vmax.xlane.f32.xlu0 %v2935_v59 }
0x1a44   :  { %v2938_v61 = vsel %vm2809_vm10, %v2934_v62, -inf }
0x1a45   :  { %2939 = vmax.xlane.f32.xlu1 %v2938_v61  ;;  %v3050_v58 = vpop.f32.mrb[56].mxu0 }
0x1a46   :  { %v3057_v63 = vmul.f32 0.17677669, %v3050_v58  ;;  %v4592_v1 = vpop.f32.mrb[57].mxu0 }
0x1a47   :  { %v3053_v2 = vpop.f32.mrb[58].mxu0 }
0x1a48   :  { %v3058_v4 = vmul.f32 0.17677669, %v3053_v2  ;;  %v4593_v7 = vpop.f32.mrb[59].mxu0  ;;  %v3059_v9 = vadd.f32 %v3057_v63, %v2448_v29 }
0x1a4a   :  { %v3061_v16 = vsel %vm2809_vm10, %v3059_v9, -inf  ;;  %v3060_v43 = vadd.f32 %v3058_v4, %v2449_v3 }
0x1a4b   :  { %3062 = vmax.xlane.f32.xlu0 %v3061_v16 }
0x1a4c   :  { %v3064_v46 = vsel %vm2809_vm10, %v3060_v43, -inf }
0x1a4d   :  { %3065 = vmax.xlane.f32.xlu1 %v3064_v46  ;;  %v3175_v11 = vpop.f32.mrb[60].mxu0 }
0x1a4e   :  { %v3182_v13 = vmul.f32 0.17677669, %v3175_v11  ;;  %v4604_v5 = vpop.f32.mrb[61].mxu0 }
0x1a4f   :  { %v3178_v14 = vpop.f32.mrb[62].mxu0 }
0x1a50   :  { %v3183_v19 = vmul.f32 0.17677669, %v3178_v14  ;;  %v4605_v17 = vpop.f32.mrb[63].mxu0  ;;  %v3184_v23 = vadd.f32 %v3182_v13, %v2452_v12 }
0x1a52   :  { %v3186_v27 = vsel %vm2809_vm10, %v3184_v23, -inf  ;;  %v6444_v30 = vadd.f32 %v3183_v19, %v2453_v15 }
0x1a53   :  { %3187 = vmax.xlane.f32.xlu0 %v3186_v27 }
0x1a54   :  { %v3189_v26 = vsel %vm2809_vm10, %v6444_v30, -inf }
0x1a55   :  { %3190 = vmax.xlane.f32.xlu1 %v3189_v26 }
0x1a5d   :  { %v2812_v28 = vpop.xlane.xlu1 %2811 }
0x1a5e   :  { %v2816_v31 = vsub.f32 %v2807_v37, %v2812_v28 }
0x1a5f   :  { %v2815_v32 = vpop.xlane.xlu0 %2814 }
0x1a60   :  { %v2818_v18 = vmul.f32 1.442695, %v2816_v31  ;;  %v2817_v33 = vsub.f32 %v2808_v39, %v2815_v32 }
0x1a62   :  { %5023 = vpow2.f32 %v2818_v18  ;;  %v2820_v6 = vmul.f32 1.442695, %v2817_v33 }
0x1a64   :  { %5025 = vpow2.f32 %v2820_v6 }
0x1a6c   :  { %v5024_v34 = vpop.eup %5023 }
0x1a6d   :  { %v2822_v22 = vsel %vm2809_vm10, %v5024_v34, 0.0 }
0x1a6e   :  { %v5026_v35 = vpop.eup %5025  ;;  %2823 = vadd.xlane.f32.xlu0 %v2822_v22 }
0x1a6f   :  { %v2825_v36 = vsel %vm2809_vm10, %v5026_v35, 0.0 }
0x1a70   :  { %2826 = vadd.xlane.f32.xlu1 %v2825_v36 }
0x1ad0   :  { %v2937_v38 = vpop.xlane.xlu0 %2936 }
0x1ad1   :  { %v2941_v40 = vsub.f32 %v2933_v53, %v2937_v38 }
0x1ad2   :  { %v2940_v41 = vpop.xlane.xlu1 %2939 }
0x1ad3   :  { %v2943_v42 = vmul.f32 1.442695, %v2941_v40  ;;  %v2942_v60 = vsub.f32 %v2934_v62, %v2940_v41 }
0x1ad5   :  { %5027 = vpow2.f32 %v2943_v42  ;;  %v2945_v37 = vmul.f32 1.442695, %v2942_v60 }
0x1ad7   :  { %5029 = vpow2.f32 %v2945_v37 }
0x1ad8   :  { %v3063_v39 = vpop.xlane.xlu0 %3062 }
0x1ad9   :  { %v3067_v44 = vsub.f32 %v3059_v9, %v3063_v39 }
0x1ada   :  { %v3066_v57 = vpop.xlane.xlu1 %3065 }
0x1adb   :  { %v3069_v47 = vmul.f32 1.442695, %v3067_v44  ;;  %v3068_v49 = vsub.f32 %v3060_v43, %v3066_v57 }
0x1add   :  { %5031 = vpow2.f32 %v3069_v47  ;;  %v3071_v50 = vmul.f32 1.442695, %v3068_v49 }
0x1adf   :  { %v5028_v51 = vpop.eup %5027  ;;  %5033 = vpow2.f32 %v3071_v50  ;;  %v4909_v50 = vld [vmem:[#allocation2] sm:$0xff]  }
0x1ae0   :  { %v3188_v52 = vpop.xlane.xlu0 %3187  ;;  %v2947_v56 = vsel %vm2809_vm10, %v5028_v51, 0.0  ;;  %4613 = vmatpush3.bf16.msra.mxu0 %v4909_v50  ;;  %v4926_v50 = vld [vmem:[%s6634_s29 + $0x30] ss:$8 sps:$4 sm:$0xff]  }
0x1ae1   :  { %v5030_v59 = vpop.eup %5029  ;;  %v3192_v53 = vsub.f32 %v3184_v23, %v3188_v52  ;;  %2948 = vadd.xlane.f32.xlu0 %v2947_v56  ;;  %v4910_v56 = vld [vmem:[#allocation2 + $0x8] sm:$0xff]   ;;  %4614 = vmatprep.subr.bf16.mxu0 %v5661_v24 }
0x1ae2   :  { %v2950_v62 = vsel %vm2809_vm10, %v5030_v59, 0.0  ;;  %v3191_v3 = vpop.xlane.xlu1 %3190 }
0x1ae3   :  { %v3194_v25 = vmul.f32 1.442695, %v3192_v53  ;;  %2951 = vadd.xlane.f32.xlu1 %v2950_v62  ;;  %v3193_v45 = vsub.f32 %v6444_v30, %v3191_v3  ;;  %v4911_v53 = vld [vmem:[#allocation2 + $0x10] sm:$0xff]  }
0x1ae4   :  { %4615 = vmatpush3.bf16.msra.mxu0 %v4910_v56  ;;  %v4934_v56 = vld [vmem:[%s6634_s29 + $0x54] ss:$8 sps:$4 sm:$0xff]  }
0x1ae5   :  { %5035 = vpow2.f32 %v3194_v25  ;;  %v3196_v11 = vmul.f32 1.442695, %v3193_v45  ;;  %4616 = vmatprep.subr.bf16.mxu0 %v5661_v24 }
0x1ae7   :  { %v5032_v61 = vpop.eup %5031 }
0x1ae8   :  { %v3073_v58 = vsel %vm2809_vm10, %v5032_v61, 0.0  ;;  %4617 = vmatpush3.bf16.msra.mxu0 %v4911_v53  ;;  %v4937_v53 = vld [vmem:[%s6634_s29 + $0x64] ss:$8 sps:$4 sm:$0xff]  }
0x1ae9   :  { %v5034_v29 = vpop.eup %5033  ;;  %3074 = vadd.xlane.f32.xlu0 %v3073_v58  ;;  %v4912_v58 = vld [vmem:[#allocation2 + $0x18] sm:$0xff]   ;;  %4618 = vmatprep.subr.bf16.mxu0 %v5661_v24 }
0x1aea   :  { %v3076_v63 = vsel %vm2809_vm10, %v5034_v29, 0.0 }
0x1aeb   :  { %3077 = vadd.xlane.f32.xlu1 %v3076_v63  ;;  %v4914_v63 = vld [vmem:[#allocation2 + $0x28] sm:$0xff]  }
0x1aec   :  { %4619 = vmatpush3.bf16.msra.mxu0 %v4912_v58 }
0x1aed   :  { %4620 = vmatprep.subr.bf16.mxu0 %v5661_v24 }
0x1aef   :  { %v5036_v1 = vpop.eup %5035 }
0x1af0   :  { %v3198_v2 = vsel %vm2809_vm10, %v5036_v1, 0.0 }
0x1af1   :  { %3199 = vadd.xlane.f32.xlu0 %v3198_v2  ;;  %v4916_v2 = vld [vmem:[#allocation2 + $0x38] sm:$0xff]  }
0x1afb   :  { %v2824_v4 = vpop.xlane.xlu0 %2823 }
0x1afc   :  { %5037 = vrcp.f32 %v2824_v4  ;;  %3084 = vrot.lane.b32.xlu1 %v6372_v10, %s5643_s24 }
0x1afd   :  { %v2827_v7 = vpop.xlane.xlu1 %2826 }
0x1afe   :  { %5039 = vrcp.f32 %v2827_v7 }
0x1aff   :  { %5041 = vpow2.f32 %v3196_v11 }
0x1b06   :  { %v5038_v9 = vpop.eup %5037 }
0x1b07   :  { %2959 = vrot.lane.b32.xlu0 %v6372_v10, %s5664_s17  ;;  %v2830_v16 = vmul.f32 %v5038_v9, %v5024_v34 }
0x1b08   :  { %v5040_v8 = vpop.eup %5039 }
0x1b09   :  { %v2831_v43 = vmul.f32 %v5040_v8, %v5026_v35  ;;  %v5042_v12 = vpop.eup %5041 }
0x1b0a   :  { %v3201_v13 = vsel %vm2809_vm10, %v5042_v12, 0.0 }
0x1b0b   :  { %v2832_v46 = vpack.c.bf16 %v2831_v43, %v2830_v16 }
0x1b0d   :  { %4573 = vmatmul.mubr.msk.bf16.vlgmr.msra.gmra.mrb[28].mxu1 %vm2809_vm10, %v2832_v46 }
0x1b0e   :  { %4584 = vmatprep.mubr.msk.bf16.mxu1 %vm5662_vm5, %v5661_v24 }
0x1b20   :  { %3202 = vadd.xlane.f32.xlu1 %v3201_v13 }
0x1b31   :  { %3209 = vrot.lane.b32.xlu1 %v6372_v10, %s5665_s30 }
0x1b6e   :  { %v2949_v14 = vpop.xlane.xlu0 %2948 }
0x1b70   :  { %v2952_v5 = vpop.xlane.xlu1 %2951 }
0x1b71   :  { %5043 = vrcp.f32 %v2952_v5 }
0x1b72   :  { %5045 = vrcp.f32 %v2949_v14 }
0x1b76   :  { %v3075_v19 = vpop.xlane.xlu0 %3074 }
0x1b78   :  { %v3078_v15 = vpop.xlane.xlu1 %3077 }
0x1b79   :  { %5047 = vrcp.f32 %v3078_v15 }
0x1b7a   :  { %5049 = vrcp.f32 %v3075_v19 }
0x1b7b   :  { %v5044_v17 = vpop.eup %5043 }
0x1b7c   :  { %v5046_v27 = vpop.eup %5045  ;;  %v2956_v30 = vmul.f32 %v5044_v17, %v5030_v59  ;;  %v3085_v10 = vpop.permute.xlu1 %3084 }
0x1b7d   :  { %v2955_v26 = vmul.f32 %v5046_v27, %v5028_v51 }
0x1b7e   :  { %v3200_v23 = vpop.xlane.xlu0 %3199 }
0x1b7f   :  { %v2957_v31 = vpack.c.bf16 %v2956_v30, %v2955_v26  ;;  %5051 = vrcp.f32 %v3200_v23 }
0x1b82   :  { %v2960_v28 = vpop.permute.xlu0 %2959 }
0x1b83   :  { %4583 = vmatpush3.bf16.msra.mxu1 %v2960_v28  ;;  %v5048_v32 = vpop.eup %5047 }
0x1b84   :  { %4594 = vmatprep.subr.bf16.mxu1 %v5661_v24  ;;  %v5050_v18 = vpop.eup %5049  ;;  %v3082_v33 = vmul.f32 %v5048_v32, %v5034_v29  ;;  %v4913_v29 = vld [vmem:[#allocation2 + $0x20] sm:$0xff]  }
0x1b85   :  { %v3081_v6 = vmul.f32 %v5050_v18, %v5032_v61  ;;  %4621 = vmatpush3.bf16.msra.mxu0 %v4913_v29 }
0x1b86   :  { %4585 = vmatmul.mubr.msk.bf16.vlgmr.msra.gmra.mrb[32].mxu1 %vm2809_vm10, %v2957_v31  ;;  %4622 = vmatprep.subr.bf16.mxu0 %v5661_v24 }
0x1b87   :  { %4595 = vmatpush3.bf16.msra.mxu1 %v3085_v10  ;;  %4596 = vmatprep.mubr.msk.bf16.mxu1 %vm5662_vm5, %v5661_v24  ;;  %v3083_v34 = vpack.c.bf16 %v3082_v33, %v3081_v6 }
0x1b88   :  { %4606 = vmatprep.subr.bf16.mxu1 %v5661_v24 }
0x1b89   :  { %v5052_v36 = vpop.eup %5051  ;;  %4623 = vmatpush3.bf16.msra.mxu0 %v4914_v63 }
0x1b8a   :  { %v3206_v40 = vmul.f32 %v5052_v36, %v5036_v1  ;;  %v4915_v1 = vld [vmem:[#allocation2 + $0x30] sm:$0xff]   ;;  %4624 = vmatprep.subr.bf16.mxu0 %v5661_v24  ;;  %v4919_v36 = vld [vmem:[%s6634_s29 + $0x4] ss:$8 sps:$4 sm:$0xff]  }
0x1b8d   :  { %4625 = vmatpush3.bf16.msra.mxu0 %v4915_v1 }
0x1b8e   :  { %4597 = vmatmul.mubr.msk.bf16.vlgmr.msra.gmra.mrb[36].mxu1 %vm2809_vm10, %v3083_v34  ;;  %4626 = vmatprep.subr.bf16.mxu0 %v5661_v24 }
0x1b8f   :  { %4608 = vmatprep.mubr.msk.bf16.mxu1 %vm5662_vm5, %v5661_v24 }
0x1b91   :  { %4627 = vmatpush3.bf16.msra.mxu0 %v4916_v2 }
0x1bad   :  { %v3203_v22 = vpop.xlane.xlu1 %3202 }
0x1bae   :  { %5053 = vrcp.f32 %v3203_v22 }
0x1bb1   :  { %v3210_v35 = vpop.permute.xlu1 %3209 }
0x1bb2   :  { %4607 = vmatpush3.bf16.msra.mxu1 %v3210_v35  ;;  %v4917_v35 = vld [vmem:[%s6634_s29] ss:$8 sps:$4 sm:$0xff]  }
0x1bb3   :  { %3550 = vmatprep.subr.bf16.mxu1 %v4919_v36  ;;  %v4951_v36 = vld [vmem:[%s6637_s11 + $0x68] sm:$0xff]  }
0x1bb8   :  { %v5054_v38 = vpop.eup %5053 }
0x1bb9   :  { %v3207_v41 = vmul.f32 %v5054_v38, %v5042_v12  ;;  %v4922_v38 = vld [vmem:[%s6634_s29 + $0x14] ss:$8 sps:$4 sm:$0xff]  }
0x1bbb   :  { %v3208_v42 = vpack.c.bf16 %v3207_v41, %v3206_v40  ;;  %v4920_v40 = vld [vmem:[%s6634_s29 + $0x10] ss:$8 sps:$4 sm:$0xff]  }
0x1bbd   :  { %4609 = vmatmul.mubr.msk.bf16.vlgmr.msra.gmra.mrb[40].mxu1 %vm2809_vm10, %v3208_v42 }
0x1bbe   :  { %3582 = vmatprep.mubr.bf16.mxu1 %v5660_v0  ;;  %3551 = vmatpush1.bf16.msra.mxu1 %v4917_v35  ;;  %v4950_v35 = vld [vmem:[%s6637_s11 + $0x20] sm:$0xff]  }
0x1bbf   :  { %3552 = vmatprep.subr.bf16.mxu1 %v4922_v38  ;;  %v4952_v38 = vld [vmem:[%s6637_s11 + $0x28] sm:$0xff]  }
0x1bc2   :  { %3553 = vmatpush1.bf16.msra.mxu1 %v4920_v40  ;;  %v4953_v40 = vld [vmem:[%s6637_s11 + $0x70] sm:$0xff]  }
0x1be0   :  { %v2871_v60 = vpop.f32.mrb[28].mxu1 }
0x1be1   :  { %v4574_v37 = vpop.f32.mrb[29].mxu1 }
0x1be2   :  { %v2874_v39 = vpop.f32.mrb[30].mxu1 }
0x1be3   :  { %v4575_v44 = vpop.f32.mrb[31].mxu1 }
0x1c59   :  { %v2999_v57 = vpop.f32.mrb[32].mxu1 }
0x1c5a   :  { %v4586_v47 = vpop.f32.mrb[33].mxu1 }
0x1c5b   :  { %v3002_v49 = vpop.f32.mrb[34].mxu1  ;;  %v4923_v47 = vld [vmem:[%s6634_s29 + $0x20] ss:$8 sps:$4 sm:$0xff]  }
0x1c5c   :  { %v4746_v51 = vpack.i.bf16 %v3002_v49, %v2999_v57  ;;  %v4587_v52 = vpop.f32.mrb[35].mxu1  ;;  %v4925_v57 = vld [vmem:[%s6634_s29 + $0x24] ss:$8 sps:$4 sm:$0xff]   ;;  %v4928_v49 = vld [vmem:[%s6634_s29 + $0x34] ss:$8 sps:$4 sm:$0xff]  }
0x1c5d   :  { %3554 = vmatprep.subr.bf16.mxu1 %v4925_v57  ;;  %v4929_v52 = vld [vmem:[%s6634_s29 + $0x40] ss:$8 sps:$4 sm:$0xff]  }
0x1c5e   :  { %4747 = vrot.lane.b32.xlu0 %v4746_v51, %s5665_s30  ;;  %3555 = vmatpush1.bf16.msra.mxu1 %v4923_v47  ;;  %v4931_v51 = vld [vmem:[%s6634_s29 + $0x44] ss:$8 sps:$4 sm:$0xff]  }
0x1c5f   :  { %3556 = vmatprep.subr.bf16.mxu1 %v4928_v49 }
0x1c61   :  { %v3124_v59 = vpop.f32.mrb[36].mxu1 }
0x1c62   :  { %v4598_v0 = vpop.f32.mrb[37].mxu1  ;;  %3557 = vmatpush1.bf16.msra.mxu1 %v4926_v50 }
0x1c63   :  { %v3127_v62 = vpop.f32.mrb[38].mxu1  ;;  %3558 = vmatprep.subr.bf16.mxu1 %v4931_v51  ;;  %v4935_v0 = vld [vmem:[%s6634_s29 + $0x60] ss:$8 sps:$4 sm:$0xff]  }
0x1c64   :  { %v4751_v25 = vpack.i.bf16 %v3127_v62, %v3124_v59  ;;  %v4599_v61 = vpop.f32.mrb[39].mxu1  ;;  %v4932_v59 = vld [vmem:[%s6634_s29 + $0x50] ss:$8 sps:$4 sm:$0xff]   ;;  %v4940_v62 = vld [vmem:[%s6634_s29 + $0x74] ss:$8 sps:$4 sm:$0xff]  }
0x1c66   :  { %4752 = vrot.lane.b32.xlu1 %v4751_v25, %s5643_s24  ;;  %s6633_s24 = sld [smem:[#allocation51_spill]]  ;;  %3559 = vmatpush1.bf16.msra.mxu1 %v4929_v52  ;;  %v4938_v25 = vld [vmem:[%s6634_s29 + $0x70] ss:$8 sps:$4 sm:$0xff]  }
0x1c67   :  { %3560 = vmatprep.subr.bf16.mxu1 %v4934_v56 }
0x1c6a   :  { %3561 = vmatpush1.bf16.msra.mxu1 %v4932_v59 }
0x1c6b   :  { %3562 = vmatprep.subr.bf16.mxu1 %v4937_v53 }
0x1c6c   :  { %v4198_v28 = vld [vmem:[%s6633_s24] ss:$0 sm:$0xff] }
0x1c6e   :  { %3563 = vmatpush1.bf16.msra.mxu1 %v4935_v0 }
0x1c6f   :  { %3564 = vmatprep.subr.bf16.mxu1 %v4940_v62 }
0x1c72   :  { %3565 = vmatpush1.bf16.msra.mxu1 %v4938_v25 }
0x1c73   :  { %4632 = vmatprep.subr.bf16.mxu1 %v5661_v24 }
0x1c90   :  { %v3249_v3 = vpop.f32.mrb[40].mxu1 }
0x1c91   :  { %v4610_v4 = vpop.f32.mrb[41].mxu1 }
0x1c92   :  { %v3252_v7 = vpop.f32.mrb[42].mxu1  ;;  %v4207_v4 = vld [vmem:[%s6635_s10] ss:$0 sm:$0xff] }
0x1c93   :  { %v4756_v9 = vpack.i.bf16 %v3252_v7, %v3249_v3  ;;  %v4611_v8 = vpop.f32.mrb[43].mxu1 }
0x1c95   :  { %4757 = vrot.lane.b32.xlu0 %v4756_v9, %s5664_s17 }
0x1cd0   :  { %v4748_v16 = vpop.permute.xlu0 %4747 }
0x1cd1   :  { %v4750_v45 = vunpack.i.h.bf16 %v4748_v16  ;;  %v4749_v46 = vunpack.i.l.bf16 %v4748_v16 }
0x1cd3   :  { %v3281_v5 = vsel %vm974_vm6, %v2874_v39, %v4750_v45  ;;  %v3280_v14 = vsel %vm974_vm6, %v2871_v60, %v4749_v46 }
0x1cd8   :  { %v4753_v43 = vpop.permute.xlu1 %4752 }
0x1cd9   :  { %v4755_v11 = vunpack.i.h.bf16 %v4753_v43  ;;  %v4754_v12 = vunpack.i.l.bf16 %v4753_v43  ;;  %v4208_v43 = vld [vmem:[%s6636_s27] ss:$0 sm:$0xff] }
0x1cdb   :  { %v3283_v17 = vsel %vm524_vm0, %v3281_v5, %v4755_v11  ;;  %v3282_v23 = vsel %vm524_vm0, %v3280_v14, %v4754_v12  ;;  %v5082_v5 = vld [vmem:[#allocation34 + $0x8] sm:$0xff]   ;;  %v5083_v14 = vld [vmem:[#allocation34 + $0x10] sm:$0xff]  }
0x1d07   :  { %v4758_v13 = vpop.permute.xlu0 %4757 }
0x1d08   :  { %v4760_v15 = vunpack.i.h.bf16 %v4758_v13  ;;  %v4759_v19 = vunpack.i.l.bf16 %v4758_v13  ;;  %v5081_v13 = vld [vmem:[#allocation34] sm:$0xff]  }
0x1d0a   :  { %v3285_v27 = vsel %vm1511_vm1, %v3283_v17, %v4760_v15  ;;  %v3284_v30 = vsel %vm1511_vm1, %v3282_v23, %v4759_v19  ;;  %v5084_v15 = vld [vmem:[#allocation34 + $0x18] sm:$0xff]   ;;  %v5085_v19 = vld [vmem:[#allocation34 + $0x20] sm:$0xff]   ;;  %v5086_v17 = vld [vmem:[#allocation34 + $0x28] sm:$0xff]  }
0x1d0b   :  { %v3302_v26 = vpack.c.bf16 %v3285_v27, %v3284_v30  ;;  %v5087_v23 = vld [vmem:[#allocation34 + $0x30] sm:$0xff]   ;;  %v5088_v27 = vld [vmem:[#allocation34 + $0x38] sm:$0xff]  }
0x1d0c   :  { %v4941_v30 = vld [vmem:[%s6637_s11 + $0x40] sm:$0xff]  }
0x1d0d   :  { %4629 = vmatmul.mubr.bf16.vlgmr.msra.gmra.mrb[64].mxu0 %v3302_v26  ;;  %v4942_v26 = vld [vmem:[%s6637_s11] sm:$0xff]   ;;  %4365 = vmatprep.subr.bf16.mxu0 %v4941_v30 }
0x1d0e   :  { %4366 = vmatpush3.bf16.msra.mxu0 %v4942_v26 }
0x1de0   :  { %v3392_v31 = vpop.f32.mrb[64].mxu0 }
0x1de1   :  { %v3393_v32 = vadd.f32 %v4198_v28, %v3392_v31  ;;  %v4630_v10 = vpop.f32.mrb[65].mxu0  ;;  %v4944_v31 = vld [vmem:[%s6637_s11 + $0x8] sm:$0xff]  }
0x1de2   :  { %v3395_v18 = vpop.f32.mrb[66].mxu0  ;;  %v4946_v10 = vld [vmem:[%s6637_s11 + $0x10] sm:$0xff]  }
0x1de3   :  { %v6494_v33 = vadd.f32 %v3393_v32, %v6315_v54  ;;  %v3396_v6 = vadd.f32 %v4198_v28, %v3395_v18  ;;  %v4631_v34 = vpop.f32.mrb[67].mxu0  ;;  %v4943_v28 = vld [vmem:[%s6637_s11 + $0x48] sm:$0xff]   ;;  %v4945_v32 = vld [vmem:[%s6637_s11 + $0x50] sm:$0xff]   ;;  %v4947_v18 = vld [vmem:[%s6637_s11 + $0x58] sm:$0xff]  }
0x1de4   :  { %4367 = vmatprep.subr.bf16.mxu0 %v4943_v28  ;;  %v4949_v34 = vld [vmem:[%s6637_s11 + $0x60] sm:$0xff]  }
0x1de5   :  { %v6497_v22 = vadd.f32 %v3396_v6, %v6317_v48  ;;  %3403 = vadd.xlane.f32.xlu1 %v6494_v33  ;;  %4368 = vmatpush3.bf16.msra.mxu0 %v4944_v31  ;;  %v4948_v6 = vld [vmem:[%s6637_s11 + $0x18] sm:$0xff]  }
0x1de6   :  { %4369 = vmatprep.subr.bf16.mxu0 %v4945_v32 }
0x1de7   :  { %3405 = vadd.xlane.f32.xlu0 %v6497_v22 }
0x1de9   :  { %4370 = vmatpush3.bf16.msra.mxu0 %v4946_v10 }
0x1dea   :  { %4371 = vmatprep.subr.bf16.mxu0 %v4947_v18  ;;  %v4225_v18 = vld [vmem:[%s6639_s16] ss:$0 sm:$0xff] }
0x1ded   :  { %4372 = vmatpush3.bf16.msra.mxu0 %v4948_v6 }
0x1dee   :  { %4373 = vmatprep.subr.bf16.mxu0 %v4949_v34 }
0x1df1   :  { %4374 = vmatpush3.bf16.msra.mxu0 %v4950_v35 }
0x1df2   :  { %4375 = vmatprep.subr.bf16.mxu0 %v4951_v36 }
0x1df5   :  { %4376 = vmatpush3.bf16.msra.mxu0 %v4952_v38 }
0x1df6   :  { %4377 = vmatprep.subr.bf16.mxu0 %v4953_v40 }
0x1e72   :  { %v3404_v54 = vpop.xlane.xlu1 %3403 }
0x1e73   :  { %v3407_v41 = vmul.f32 0.0078125, %v3404_v54  ;;  %v4954_v54 = vld [vmem:[%s6637_s11 + $0x30] sm:$0xff]  }
0x1e74   :  { %v3406_v48 = vpop.xlane.xlu0 %3405  ;;  %4378 = vmatpush3.bf16.msra.mxu0 %v4954_v54 }
0x1e75   :  { %v3409_v42 = vsub.f32 %v6494_v33, %v3407_v41  ;;  %v3408_v60 = vmul.f32 0.0078125, %v3406_v48  ;;  %v4955_v41 = vld [vmem:[%s6637_s11 + $0x78] sm:$0xff]  }
0x1e76   :  { %v4956_v48 = vld [vmem:[%s6637_s11 + $0x38] sm:$0xff]   ;;  %4379 = vmatprep.subr.bf16.mxu0 %v4955_v41 }
0x1e77   :  { %v3410_v37 = vsub.f32 %v6497_v22, %v3408_v60  ;;  %v3411_v39 = vmul.f32 %v3409_v42, %v3409_v42 }
0x1e78   :  { %4380 = vmatpush3.bf16.msra.mxu0 %v4956_v48 }
0x1e79   :  { %3413 = vadd.xlane.f32.xlu0 %v3411_v39  ;;  %v3412_v44 = vmul.f32 %v3410_v37, %v3410_v37 }
0x1e7b   :  { %3415 = vadd.xlane.f32.xlu1 %v3412_v44 }
0x1f06   :  { %v3414_v61 = vpop.xlane.xlu0 %3413 }
0x1f07   :  { %v3417_v58 = vmul.f32 0.0078125, %v3414_v61 }
0x1f08   :  { %v3416_v29 = vpop.xlane.xlu1 %3415 }
0x1f09   :  { %v3419_v63 = vadd.f32 1e-05, %v3417_v58  ;;  %v3418_v1 = vmul.f32 0.0078125, %v3416_v29 }
0x1f0b   :  { %5055 = vrsqrt.f32 %v3419_v63  ;;  %v3420_v2 = vadd.f32 1e-05, %v3418_v1 }
0x1f0d   :  { %5057 = vrsqrt.f32 %v3420_v2 }
0x1f15   :  { %v5056_v3 = vpop.eup %5055 }
0x1f16   :  { %v3423_v7 = vmul.f32 %v5056_v3, %v3409_v42  ;;  %v3458_v42 = vld [vmem:[%s6638_s15] sm:$0x3] }
0x1f17   :  { %v5058_v9 = vpop.eup %5057  ;;  %v3463_v60 = vrot.slane %v3458_v42, %v6026_v20 }
0x1f18   :  { %v3424_v8 = vmul.f32 %v5058_v9, %v3410_v37  ;;  %v3431_v16 = vmul.f32 %v4207_v4, %v3423_v7  ;;  %v3467_v37 = vrot.slane %v3458_v42, %v6086_v55 }
0x1f1a   :  { %v3432_v45 = vmul.f32 %v4207_v4, %v3424_v8  ;;  %v3439_v46 = vadd.f32 %v4208_v43, %v3431_v16 }
0x1f1c   :  { %v3440_v11 = vadd.f32 %v4208_v43, %v3432_v45 }
0x1f1e   :  { %v3457_v12 = vpack.c.bf16 %v3440_v11, %v3439_v46 }
0x1f20   :  { %3583 = vmatmul.mubr.bf16.vlgmr.msra.gmra.mrb[44].mxu1 %v3457_v12 }
0x1f21   :  { %4633 = vmatpush3.bf16.xpose.msra.mxu1 %v5081_v13  ;;  %4648 = vmatprep.mubr.msk.bf16.mxu1 %vm5662_vm5, %v5661_v24 }
0x1f22   :  { %4634 = vmatprep.subr.bf16.mxu1 %v5661_v24 }
0x1f29   :  { %4635 = vmatpush3.bf16.xpose.msra.mxu1 %v5082_v5 }
0x1f2a   :  { %4636 = vmatprep.subr.bf16.mxu1 %v5661_v24 }
0x1f31   :  { %4637 = vmatpush3.bf16.xpose.msra.mxu1 %v5083_v14 }
0x1f32   :  { %4638 = vmatprep.subr.bf16.mxu1 %v5661_v24 }
0x1f39   :  { %4639 = vmatpush3.bf16.xpose.msra.mxu1 %v5084_v15 }
0x1f3a   :  { %4640 = vmatprep.subr.bf16.mxu1 %v5661_v24 }
0x1f41   :  { %4641 = vmatpush3.bf16.xpose.msra.mxu1 %v5085_v19 }
0x1f42   :  { %4642 = vmatprep.subr.bf16.mxu1 %v5661_v24 }
0x1f49   :  { %4643 = vmatpush3.bf16.xpose.msra.mxu1 %v5086_v17 }
0x1f4a   :  { %4644 = vmatprep.subr.bf16.mxu1 %v5661_v24 }
0x1f51   :  { %4645 = vmatpush3.bf16.xpose.msra.mxu1 %v5087_v23 }
0x1f52   :  { %4646 = vmatprep.subr.bf16.mxu1 %v5661_v24 }
0x1f59   :  { %4647 = vmatpush3.bf16.xpose.msra.mxu1 %v5088_v27 }
0x1ff3   :  { %v3584_v39 = vpop.f32.mrb[44].mxu1 }
0x1ff4   :  { %v3585_v44 = vadd.f32 %v3584_v39, %v3463_v60  ;;  %v3586_v57 = vpop.f32.mrb[45].mxu1 }
0x1ff5   :  { %v3587_v47 = vadd.f32 %v3586_v57, %v3467_v37  ;;  %v3588_v49 = vpop.f32.mrb[46].mxu1 }
0x1ff6   :  { %v3593_v50 = vmul.f32 %v3585_v44, %v3585_v44  ;;  %v3589_v51 = vadd.f32 %v3588_v49, %v3463_v60  ;;  %v3590_v52 = vpop.f32.mrb[47].mxu1 }
0x1ff7   :  { %v3594_v56 = vmul.f32 %v3587_v47, %v3587_v47  ;;  %v3591_v59 = vadd.f32 %v3590_v52, %v3467_v37 }
0x1ff8   :  { %v3597_v53 = vmul.f32 %v3593_v50, %v3585_v44  ;;  %v3595_v0 = vmul.f32 %v3589_v51, %v3589_v51 }
0x1ff9   :  { %v3598_v62 = vmul.f32 %v3594_v56, %v3587_v47  ;;  %v3596_v25 = vmul.f32 %v3591_v59, %v3591_v59 }
0x1ffa   :  { %v3601_v61 = vmul.f32 0.044715, %v3597_v53  ;;  %v3599_v58 = vmul.f32 %v3595_v0, %v3589_v51  ;;  %v4242_v53 = vld [vmem:[#allocation7] ss:$0 sm:$0xff] }
0x1ffb   :  { %v3602_v29 = vmul.f32 0.044715, %v3598_v62  ;;  %v3600_v20 = vmul.f32 %v3596_v25, %v3591_v59 }
0x1ffc   :  { %v3605_v63 = vadd.f32 %v3601_v61, %v3585_v44  ;;  %v3603_v55 = vmul.f32 0.044715, %v3599_v58  ;;  %v4243_v58 = vld [vmem:[#allocation5] ss:$0 sm:$0xff] }
0x1ffd   :  { %v3606_v1 = vadd.f32 %v3602_v29, %v3587_v47  ;;  %v3604_v2 = vmul.f32 0.044715, %v3600_v20 }
0x1ffe   :  { %v3609_v3 = vmul.f32 0.7978846, %v3605_v63  ;;  %v3607_v4 = vadd.f32 %v3603_v55, %v3589_v51 }
0x1fff   :  { %v3610_v7 = vmul.f32 0.7978846, %v3606_v1  ;;  %v3608_v9 = vadd.f32 %v3604_v2, %v3591_v59 }
0x2000   :  { %5059 = vtanh.f32 %v3609_v3  ;;  %v3611_v8 = vmul.f32 0.7978846, %v3607_v4 }
0x2001   :  { %5061 = vtanh.f32 %v3610_v7  ;;  %v3612_v16 = vmul.f32 0.7978846, %v3608_v9  ;;  %v425_v7 = vld [vmem:[%s6640_s8 + $0x8] sm:$0xff]  ;;  %v424_v9 = vld [vmem:[%s6640_s8] sm:$0xff] }
0x2002   :  { %5063 = vtanh.f32 %v3611_v8  ;;  %vm3930_vm6 = vcmp.ge.s32.totalorder %v425_v7, 0  ;;  %vm3929_vm1 = vcmp.ge.s32.totalorder %v424_v9, 0 }
0x2003   :  { %5065 = vtanh.f32 %v3612_v16 }
0x200a   :  { %v5060_v43 = vpop.eup %5059 }
0x200b   :  { %v5062_v45 = vpop.eup %5061  ;;  %v3617_v46 = vadd.f32 1.0, %v5060_v43 }
0x200c   :  { %v5064_v11 = vpop.eup %5063  ;;  %v3618_v12 = vadd.f32 1.0, %v5062_v45 }
0x200d   :  { %v5066_v13 = vpop.eup %5065  ;;  %v3621_v5 = vmul.f32 0.5, %v3617_v46  ;;  %v3619_v14 = vadd.f32 1.0, %v5064_v11 }
0x200e   :  { %v3620_v15 = vadd.f32 1.0, %v5066_v13  ;;  %v3622_v19 = vmul.f32 0.5, %v3618_v12 }
0x200f   :  { %v3623_v17 = vmul.f32 0.5, %v3619_v14  ;;  %v3625_v27 = vmul.f32 %v3621_v5, %v3585_v44 }
0x2010   :  { %v3624_v23 = vmul.f32 0.5, %v3620_v15  ;;  %v3626_v26 = vmul.f32 %v3622_v19, %v3587_v47 }
0x2011   :  { %v3627_v30 = vmul.f32 %v3623_v17, %v3589_v51 }
0x2012   :  { %v3628_v28 = vmul.f32 %v3624_v23, %v3591_v59 }
0x2013   :  { %v3661_v31 = vpack.c.bf16 %v3627_v30, %v3625_v27  ;;  %v4247_v27 = vsel %vm3930_vm6, 1.0, %v5661_v24  ;;  %v4246_v30 = vsel %vm3929_vm1, 1.0, %v5661_v24 }
0x2014   :  { %v3662_v32 = vpack.c.bf16 %v3628_v28, %v3626_v26  ;;  %v3952_v26 = vsel %vm3939_vm11, %v4246_v30, 0.0 }
0x2016   :  { %3798 = vmatprep.mubr.bf16.mxu0 %v3662_v32 }
0x2017   :  { %3799 = vmatmul.mubr.bf16.vlgmr.msra.gmra.mrb[68].mxu0 %v3661_v31 }
0x20ea   :  { %v4381_v10 = vpop.f32.mrb[68].mxu0 }
0x20eb   :  { %v4382_v6 = vpop.f32.mrb[69].mxu0 }
0x20ec   :  { %v4383_v34 = vadd.f32 %v4382_v6, %v4381_v10  ;;  %v4384_v35 = vpop.f32.mrb[70].mxu0 }
0x20ed   :  { %v4385_v36 = vpop.f32.mrb[71].mxu0 }
0x20ee   :  { %v3801_v38 = vadd.f32 %v4383_v34, %v4225_v18  ;;  %v4386_v40 = vadd.f32 %v4385_v36, %v4384_v35 }
0x20f0   :  { %v3804_v54 = vadd.f32 %v4386_v40, %v4225_v18  ;;  %v3807_v41 = vadd.f32 %v3801_v38, %v6494_v33 }
0x20f2   :  { %3811 = vadd.xlane.f32.xlu0 %v3807_v41  ;;  %v3808_v48 = vadd.f32 %v3804_v54, %v6497_v22 }
0x20f4   :  { %3813 = vadd.xlane.f32.xlu1 %v3808_v48 }
0x217f   :  { %v3812_v42 = vpop.xlane.xlu0 %3811 }
0x2180   :  { %v3815_v60 = vmul.f32 0.0078125, %v3812_v42 }
0x2181   :  { %v3814_v37 = vpop.xlane.xlu1 %3813 }
0x2182   :  { %v3817_v39 = vsub.f32 %v3807_v41, %v3815_v60  ;;  %v3816_v44 = vmul.f32 0.0078125, %v3814_v37 }
0x2184   :  { %v3818_v57 = vsub.f32 %v3808_v48, %v3816_v44  ;;  %v3819_v47 = vmul.f32 %v3817_v39, %v3817_v39 }
0x2186   :  { %3821 = vadd.xlane.f32.xlu0 %v3819_v47  ;;  %v3820_v49 = vmul.f32 %v3818_v57, %v3818_v57 }
0x2188   :  { %3823 = vadd.xlane.f32.xlu1 %v3820_v49 }
0x2213   :  { %v3822_v50 = vpop.xlane.xlu0 %3821 }
0x2214   :  { %v3825_v51 = vmul.f32 0.0078125, %v3822_v50 }
0x2215   :  { %v3824_v52 = vpop.xlane.xlu1 %3823 }
0x2216   :  { %v3827_v56 = vadd.f32 1e-05, %v3825_v51  ;;  %v3826_v59 = vmul.f32 0.0078125, %v3824_v52 }
0x2218   :  { %5067 = vrsqrt.f32 %v3827_v56  ;;  %v3828_v33 = vadd.f32 1e-05, %v3826_v59 }
0x221a   :  { %5069 = vrsqrt.f32 %v3828_v33 }
0x2222   :  { %v5068_v22 = vpop.eup %5067 }
0x2223   :  { %v3831_v0 = vmul.f32 %v5068_v22, %v3817_v39 }
0x2224   :  { %v5070_v62 = vpop.eup %5069 }
0x2225   :  { %v3832_v25 = vmul.f32 %v5070_v62, %v3818_v57  ;;  %v3839_v61 = vmul.f32 %v4242_v53, %v3831_v0 }
0x2227   :  { %v3840_v29 = vmul.f32 %v4242_v53, %v3832_v25  ;;  %v3847_v20 = vadd.f32 %v4243_v58, %v3839_v61 }
0x2229   :  { %v3848_v63 = vadd.f32 %v4243_v58, %v3840_v29 }
0x222b   :  { %v3849_v55 = vpack.c.bf16 %v3848_v63, %v3847_v20 }
0x222d   :  { %4649 = vmatmul.mubr.bf16.vlgmr.msra.gmra.mrb[48].mxu1 %v3849_v55 }
0x2300   :  { %v3884_v1 = vpop.f32.mrb[48].mxu1 }
0x2301   :  { %3891 = vmax.xlane.f32.xlu0 %v3884_v1  ;;  %v4650_v2 = vpop.f32.mrb[49].mxu1 }
0x2302   :  { %v3887_v3 = vpop.f32.mrb[50].mxu1 }
0x2303   :  { %3893 = vmax.xlane.f32.xlu1 %v3887_v3  ;;  %v4651_v4 = vpop.f32.mrb[51].mxu1 }
0x2314   :  { %3915 = vperm.xlu1 %4745, %v425_v7  }
0x2317   :  { %3912 = vperm.xlu0 %4744, %v424_v9  }
0x238e   :  { %v3892_v8 = vpop.xlane.xlu0 %3891 }
0x238f   :  { %v3895_v16 = vsub.f32 %v3884_v1, %v3892_v8 }
0x2390   :  { %v3894_v43 = vpop.xlane.xlu1 %3893 }
0x2391   :  { %v3897_v45 = vmul.f32 1.442695, %v3895_v16  ;;  %v3896_v46 = vsub.f32 %v3887_v3, %v3894_v43 }
0x2393   :  { %5071 = vpow2.f32 %v3897_v45  ;;  %v3899_v11 = vmul.f32 1.442695, %v3896_v46 }
0x2394   :  { %v3916_v12 = vpop.permute.xlu1 %3915 }
0x2395   :  { %5073 = vpow2.f32 %v3899_v11  ;;  %vm3918_vm0 = vcmp.eq.s32.totalorder %v6110_v21, %v3916_v12 }
0x2396   :  { %v3913_v13 = vpop.permute.xlu0 %3912  ;;  %v4245_v14 = vsel %vm3918_vm0, 1.0, %v5661_v24 }
0x2397   :  { %vm3917_vm5 = vcmp.eq.s32.totalorder %v6110_v21, %v3913_v13  ;;  %v3924_v17 = vmul.f32 %v4245_v14, %v3887_v3  ;;  %v3953_v21 = vsel %vm3939_vm11, %v4247_v27, 0.0 }
0x2398   :  { %v4244_v19 = vsel %vm3917_vm5, 1.0, %v5661_v24  ;;  %v3954_v28 = vadd.f32 %v3953_v21, %v3952_v26 }
0x2399   :  { %v3923_v23 = vmul.f32 %v4244_v19, %v3884_v1 }
0x239d   :  { %v5072_v5 = vpop.eup %5071 }
0x239e   :  { %3901 = vadd.xlane.f32.xlu1 %v5072_v5 }
0x239f   :  { %v5074_v15 = vpop.eup %5073 }
0x23a0   :  { %3903 = vadd.xlane.f32.xlu0 %v5074_v15 }
0x23a2   :  { %3927 = vadd.xlane.f32.xlu1 %v3924_v17 }
0x23a4   :  { %3925 = vadd.xlane.f32.xlu0 %v3923_v23 }
0x23a6   :  { %3955 = vadd.xlane.f32.xlu1 %v3954_v28 }
0x242b   :  { %v3902_v31 = vpop.xlane.xlu1 %3901 }
0x242c   :  { %5075 = vlog2.f32 %v3902_v31 }
0x242d   :  { %v3904_v32 = vpop.xlane.xlu0 %3903 }
0x242e   :  { %5077 = vlog2.f32 %v3904_v32 }
0x242f   :  { %v3928_v54 = vpop.xlane.xlu1 %3927 }
0x2431   :  { %v3926_v36 = vpop.xlane.xlu0 %3925 }
0x2433   :  { %v3956_v39 = vpop.xlane.xlu1 %3955 }
0x2434   :  { %v3957_v44 = vrot.slane %v3956_v39, 4 }
0x2436   :  { %v5076_v10 = vpop.eup %5075  ;;  %v3958_v57 = vadd.f32 %v3957_v44, %v3956_v39 }
0x2437   :  { %v3906_v18 = vmul.f32 0.6931472, %v5076_v10 }
0x2438   :  { %v5078_v6 = vpop.eup %5077  ;;  %v3959_v47 = vrot.slane %v3958_v57, 2 }
0x2439   :  { %v3908_v34 = vmul.f32 0.6931472, %v5078_v6  ;;  %v3909_v35 = vadd.f32 %v3906_v18, %v3892_v8 }
0x243a   :  { %v3960_v52 = vadd.f32 %v3959_v47, %v3958_v57 }
0x243b   :  { %v3910_v38 = vadd.f32 %v3908_v34, %v3894_v43  ;;  %v3935_v40 = vsub.f32 %v3909_v35, %v3926_v36 }
0x243c   :  { %v3961_v33 = vrot.slane %v3960_v52, 1 }
0x243d   :  { %v3936_v24 = vsub.f32 %v3910_v38, %v3928_v54  ;;  %v3937_v41 = vmul.f32 %v4246_v30, %v3935_v40 }
0x243e   :  { %v3962_v0 = vadd.f32 %v3961_v33, %v3960_v52 }
0x243f   :  { %v3938_v48 = vmul.f32 %v4247_v27, %v3936_v24  ;;  %v3940_v42 = vsel %vm3939_vm11, %v3937_v41, 0.0 }
0x2441   :  { %v3941_v60 = vsel %vm3939_vm11, %v3938_v48, 0.0 }
0x2442   :  { %v3942_v37 = vadd.f32 %v3941_v60, %v3940_v42 }
0x2444   :  { %3943 = vadd.xlane.f32.xlu0 %v3942_v37 }
0x24d1   :  { %v3944_v49 = vpop.xlane.xlu0 %3943 }
0x24d2   :  { %v3945_v50 = vrot.slane %v3944_v49, 4 }
0x24d4   :  { %v3946_v51 = vadd.f32 %v3945_v50, %v3944_v49 }
0x24d6   :  { %v3947_v56 = vrot.slane %v3946_v51, 2 }
0x24d8   :  { %v3948_v59 = vadd.f32 %v3947_v56, %v3946_v51 }
0x24da   :  { %v3949_v22 = vrot.slane %v3948_v59, 1 }
0x24dc   :  { %v3950_v53 = vadd.f32 %v3949_v22, %v3948_v59 }
0x24de   :  { %4652 = vpush %v3950_v53 }
0x24df   :  { %4654 = vpush %v3962_v0 }
0x250f   :  { %s4653_s22 = spop %4652 }
0x2510   :  { %s4655_s13 = spop %4654 }
0x2511   :  { %v3964_v62 = vstv %s4655_s13 }
0x2512   :  { %5079 = vrcp.f32 %v3964_v62 }
0x251c   :  { %v5080_v25 = vpop.eup %5079 }
0x251d   :  { %4656 = vpush %v5080_v25 }
0x254e   :  { %s4657_s23 = spop %4656 }
0x254f   :  { %s3967_s12 = smul.f32 %s4657_s23, %s4653_s22 }
0x2551   :  { %v3968_v61 = vstv %s3967_s12 }
0x2552   :  { %3970 = vst.msk [vmem:[#allocation35] sm:$0x1] %vm3969_vm12, %v3968_v61 }
0x2553   :  { %5562 = shalt.err (!%p5559_p4)
}
0x2554   :  { %s5563_s28 = scalar_lea.hbm %s5876_s19, 16 }
0x2555   :  { %p5564_p5 = scmp.ne.s32.totalorder %s5876_s19, %s5563_s28  ;;  %p5567_p6 = scmp.lt.u32.totalorder %s5563_s28, %s5876_s19 }
0x2557   :  { %p5569_p7 = pnand %p5567_p6, %p5564_p5 }
0x2559   :  { %5572 = shalt.err (!%p5569_p7)
}
0x255a   :  { %3980 = dma.vmem_to_hbm [thread:$0]  %s3978_s4, 16, %s5876_s19, [#allocation4]  }
0x255b   :  { %5595 = dma.done.wait [#allocation4], 16  }
0x255c   :  { %5596 = vsyncadd [#allocation4], 4294967280 }
0x255d   :  { %3984 = vsyncpa [#allocation3], 1 }
0x255e   :  { %3985 = vsyncpa [#allocation6], 1 }
0x255f   :  { %3986 = vsyncpa [#allocation9], 1 }
0x2560   :  { %3987 = vsyncpa [#allocation12], 1 }
0x2561   :  { %3988 = vsyncpa [#allocation15], 1 }
0x2562   :  { %3989 = vsyncpa [#allocation18], 1 }
0x2563   :  { %3990 = vsyncpa [#allocation21], 1 }
0x2564   :  { %3991 = vsyncpa [#allocation24], 1 }
0x2565   :  { %3992 = vsyncpa [#allocation27], 1 }
0x2566   :  { %3993 = vsyncpa [#allocation30], 1 }
0x2567   :  { %3994 = vsyncpa [#allocation33], 1 }
0x2568   :  { %3995 = vsyncpa [#allocation4], 1 }

</bundles_post_ra>
